<compile_context>
chip_gen: v6e
topology: v6e:2x2x1
jax: 0.10.0
libtpu: 0.0.40
codegen_flags: <defaults>
</compile_context>

<pallas_src>
import jax
import jax.numpy as jnp
import numpy as np
from jax import lax
from jax.experimental import pallas as pl
from jax.experimental.pallas import tpu as pltpu

# ----------------------------- model config --------------------------------
N_CHARS = 8          # len(chars)  (vocabulary size)
N_HIDDEN = 32        # n_hidden
N_LAYERS = 3         # n_layers
BATCH = 2
SEQ = 8
BP = 8               # batch padded to the 8-sublane vreg width


# --------------------- fused 3-layer LSTM + FC kernel -----------------------
def _fused_lstm_fc_kernel(
        x_ref,             # (S*BP, H)   time-major, feature-padded input
        wih_ref,           # (L, H, 4H)  layer-0 rows C..H-1 are zero
        whh_ref,           # (L, H, 4H)
        b_ref,             # (L, 1, 4H)  b_ih + b_hh
        h0_ref, c0_ref,    # (L, BP, H)
        fcw_ref, fcb_ref,  # (H, C), (1, C)
        logits_ref,        # (S*BP, C)   time-major, padded batch
        hN_ref, cN_ref,    # (L, BP, H)
        gx0_sc,            # (S*BP, 4H)  hoisted layer-0 input projection
        out_sc):           # (S*BP, H)   last-layer outputs, time-major
    L, BPk, H = h0_ref.shape
    S = x_ref.shape[0] // BPk

    # ---- hoisted layer-0 input projection: all timesteps in one GEMM ------
    gx0_sc[...] = (jnp.dot(x_ref[...], wih_ref[0],
                           preferred_element_type=jnp.float32) + b_ref[0])

    wih = [wih_ref[l] for l in range(L)]
    whh = [whh_ref[l] for l in range(L)]
    bias = [b_ref[l] for l in range(L)]

    def cell(gates, c_prev):
        # activate the whole (BP, 4H) = (8,128) gate vreg once, then slice
        sig = jax.nn.sigmoid(gates)
        tnh = jnp.tanh(gates)
        i_g = sig[:, 0 * H:1 * H]
        f_g = sig[:, 1 * H:2 * H]
        g_g = tnh[:, 2 * H:3 * H]
        o_g = sig[:, 3 * H:4 * H]
        c_new = f_g * c_prev + i_g * g_g
        h_new = o_g * jnp.tanh(c_new)
        return h_new, c_new

    h = [h0_ref[l] for l in range(L)]
    c = [c0_ref[l] for l in range(L)]

    # ---- wavefront: diagonal d computes (layer l, time t = d - l) ----------
    # Layer l at time t consumes layer l-1's output at time t, which was
    # produced on the *previous* diagonal and still sits in the carry h[l-1]
    # (we only read the carry and write fresh values into new_h/new_c).
    for d in range(S + L - 1):
        new_h = list(h)
        new_c = list(c)
        for l in range(L):
            t = d - l
            if 0 <= t < S:
                if l == 0:
                    gates = (gx0_sc[pl.ds(t * BPk, BPk), :]
                             + jnp.dot(h[0], whh[0],
                                       preferred_element_type=jnp.float32))
                else:
                    gates = (jnp.dot(h[l - 1], wih[l],
                                     preferred_element_type=jnp.float32)
                             + jnp.dot(h[l], whh[l],
                                       preferred_element_type=jnp.float32)
                             + bias[l])
                h_new, c_new = cell(gates, c[l])
                new_h[l] = h_new
                new_c[l] = c_new
                if l == L - 1:
                    out_sc[pl.ds(t * BPk, BPk), :] = h_new
        h, c = new_h, new_c

    for l in range(L):
        hN_ref[l] = h[l]
        cN_ref[l] = c[l]

    # ---- fused FC head on the VMEM-resident last-layer activations --------
    logits_ref[...] = (jnp.dot(out_sc[...], fcw_ref[...],
                               preferred_element_type=jnp.float32)
                       + fcb_ref[...])


# ------------------------------- full forward -------------------------------
@jax.jit
def lstm_forward(x, h0_all, c0_all, params):
    """Mirrors LSTM.forward(x, h): returns (logits (B*S, C), (hN, cN))."""
    B, S, C = x.shape
    H = N_HIDDEN
    L = N_LAYERS
    assert B <= BP

    # pack weights: stack per-layer tensors (layer-0 W_ih zero-padded to H rows)
    wih, whh, bias = [], [], []
    for l in range(L):
        w_ih, w_hh, b = params["lstm"][l]
        if w_ih.shape[0] < H:
            w_ih = jnp.pad(w_ih, ((0, H - w_ih.shape[0]), (0, 0)))
        wih.append(w_ih)
        whh.append(w_hh)
        bias.append(b.reshape(1, 4 * H))
    wih = jnp.stack(wih)        # (L, H, 4H)
    whh = jnp.stack(whh)        # (L, H, 4H)
    bias = jnp.stack(bias)      # (L, 1, 4H)

    # time-major flatten; pad batch to BP sublanes and features to H lanes
    x_tm = jnp.transpose(x, (1, 0, 2))                          # (S, B, C)
    x_tm = jnp.pad(x_tm, ((0, 0), (0, BP - B), (0, H - C)))     # (S, BP, H)
    x_tm = x_tm.reshape(S * BP, H)

    h0_p = jnp.pad(h0_all, ((0, 0), (0, BP - B), (0, 0)))       # (L, BP, H)
    c0_p = jnp.pad(c0_all, ((0, 0), (0, BP - B), (0, 0)))

    vmem = pl.BlockSpec(memory_space=pltpu.MemorySpace.VMEM)

    logits_tm, hN, cN = pl.pallas_call(
        _fused_lstm_fc_kernel,
        in_specs=[vmem] * 8,
        out_specs=(vmem, vmem, vmem),
        out_shape=(
            jax.ShapeDtypeStruct((S * BP, C), jnp.float32),      # logits (tm)
            jax.ShapeDtypeStruct((L, BP, H), jnp.float32),       # h_N
            jax.ShapeDtypeStruct((L, BP, H), jnp.float32),       # c_N
        ),
        scratch_shapes=[
            pltpu.VMEM((S * BP, 4 * H), jnp.float32),  # hoisted gate proj
            pltpu.VMEM((S * BP, H), jnp.float32),      # last-layer seq (tm)
        ],
    )(x_tm, wih, whh, bias, h0_p, c0_p,
      params["fc_w_t"], params["fc_b"].reshape(1, C))

    # (S*BP, C) time-major padded -> (B*S, C) batch-major (512 B relayout)
    logits = (logits_tm.reshape(S, BP, C)[:, :B]
              .transpose(1, 0, 2).reshape(B * S, C))
    return logits, (hN[:, :B], cN[:, :B])


# ------------------------- deterministic parameters -------------------------
def make_params(key):
    params = {"lstm": []}
    k = 1.0 / np.sqrt(N_HIDDEN)
    for l in range(N_LAYERS):
        in_dim = N_CHARS if l == 0 else N_HIDDEN
        key, k1, k2, k3, k4 = jax.random.split(key, 5)
        # PyTorch stores W_ih (4H, in), W_hh (4H, H); we keep them transposed.
        w_ih = jax.random.uniform(k1, (in_dim, 4 * N_HIDDEN), jnp.float32, -k, k)
        w_hh = jax.random.uniform(k2, (N_HIDDEN, 4 * N_HIDDEN), jnp.float32, -k, k)
        b_ih = jax.random.uniform(k3, (4 * N_HIDDEN,), jnp.float32, -k, k)
        b_hh = jax.random.uniform(k4, (4 * N_HIDDEN,), jnp.float32, -k, k)
        params["lstm"].append((w_ih, w_hh, b_ih + b_hh))
    key, k5, k6 = jax.random.split(key, 3)
    params["fc_w_t"] = jax.random.uniform(k5, (N_HIDDEN, N_CHARS),
                                          jnp.float32, -k, k)
    params["fc_b"] = jax.random.uniform(k6, (N_CHARS,), jnp.float32, -k, k)
    return params


# --------------------------- pure-JAX reference ------------------------------
def reference_forward(x, h0_all, c0_all, params):
    hi = lax.Precision.HIGHEST

    def cell(carry, x_t, w_ih, w_hh, bias):
        h, c = carry
        gates = (jnp.dot(x_t, w_ih, precision=hi)
                 + jnp.dot(h, w_hh, precision=hi) + bias)
        i, f, g, o = jnp.split(gates, 4, axis=-1)
        c = jax.nn.sigmoid(f) * c + jax.nn.sigmoid(i) * jnp.tanh(g)
        h = jax.nn.sigmoid(o) * jnp.tanh(c)
        return (h, c), h

    seq = jnp.transpose(x, (1, 0, 2))
    hNs, cNs = [], []
    for l in range(N_LAYERS):
        w_ih, w_hh, bias = params["lstm"][l]
        (hN, cN), outs = lax.scan(
            lambda carry, xt: cell(carry, xt, w_ih, w_hh, bias),
            (h0_all[l], c0_all[l]), seq)
        hNs.append(hN)
        cNs.append(cN)
        seq = outs
    r_out = jnp.transpose(seq, (1, 0, 2)).reshape(-1, N_HIDDEN)
    logits = jnp.dot(r_out, params["fc_w_t"], precision=hi) + params["fc_b"]
    return logits, (jnp.stack(hNs), jnp.stack(cNs))


# ----------------------------------- main ------------------------------------
if __name__ == "__main__":
    key = jax.random.PRNGKey(0)
    key, kx = jax.random.split(key)
    params = make_params(key)

    # character-feature input: (B, S, len(chars))
    x = jax.random.normal(kx, (BATCH, SEQ, N_CHARS), jnp.float32)
    # init_h(batch_size): zeros (n_layers, batch, n_hidden) x2
    h0 = jnp.zeros((N_LAYERS, BATCH, N_HIDDEN), jnp.float32)
    c0 = jnp.zeros((N_LAYERS, BATCH, N_HIDDEN), jnp.float32)

    logits, (hN, cN) = lstm_forward(x, h0, c0, params)
    jax.block_until_ready((logits, hN, cN))

    ref_logits, (ref_hN, ref_cN) = reference_forward(x, h0, c0, params)
    np.testing.assert_allclose(np.asarray(logits), np.asarray(ref_logits),
                               rtol=1e-4, atol=1e-5)
    np.testing.assert_allclose(np.asarray(hN), np.asarray(ref_hN),
                               rtol=1e-4, atol=1e-5)
    np.testing.assert_allclose(np.asarray(cN), np.asarray(ref_cN),
                               rtol=1e-4, atol=1e-5)

    assert logits.shape == (BATCH * SEQ, N_CHARS)
    assert hN.shape == (N_LAYERS, BATCH, N_HIDDEN)
    assert cN.shape == (N_LAYERS, BATCH, N_HIDDEN)
    print("KERNEL_OK")
</pallas_src>

<mosaic_0001>
module attributes {stable_mosaic.version = 11 : i64} {
  func.func @_fused_lstm_fc_kernel(%arg0: memref<64x32xf32, #tpu.memory_space<vmem>>, %arg1: memref<3x32x128xf32, #tpu.memory_space<vmem>>, %arg2: memref<3x32x128xf32, #tpu.memory_space<vmem>>, %arg3: memref<3x1x128xf32, #tpu.memory_space<vmem>>, %arg4: memref<3x8x32xf32, #tpu.memory_space<vmem>>, %arg5: memref<3x8x32xf32, #tpu.memory_space<vmem>>, %arg6: memref<32x8xf32, #tpu.memory_space<vmem>>, %arg7: memref<1x8xf32, #tpu.memory_space<vmem>>, %arg8: memref<64x8xf32, #tpu.memory_space<vmem>>, %arg9: memref<3x8x32xf32, #tpu.memory_space<vmem>>, %arg10: memref<3x8x32xf32, #tpu.memory_space<vmem>>, %arg11: memref<64x128xf32, #tpu.memory_space<vmem>>, %arg12: memref<64x32xf32, #tpu.memory_space<vmem>>) attributes {dimension_semantics = [], scalar_prefetch = 0 : i64, scratch_operands = 2 : i64, tpu.core_type = #tpu.core_type<tc>} {
    %c0 = arith.constant 0 : index
    %c0_0 = arith.constant 0 : index
    %0 = vector.load %arg0[%c0, %c0_0] : memref<64x32xf32, #tpu.memory_space<vmem>>, vector<64x32xf32>
    %c0_1 = arith.constant 0 : index
    %c0_2 = arith.constant 0 : index
    %c0_3 = arith.constant 0 : index
    %1 = vector.load %arg1[%c0_1, %c0_2, %c0_3] : memref<3x32x128xf32, #tpu.memory_space<vmem>>, vector<1x32x128xf32>
    %2 = vector.shape_cast %1 : vector<1x32x128xf32> to vector<32x128xf32>
    %cst = arith.constant dense<0.000000e+00> : vector<64x128xf32>
    %3 = tpu.matmul %0, %2, %cst {dimension_numbers = #tpu.dot_dimension_numbers<[1], [0], [0], [1], [0, 0, 1, 1], [], []>} : vector<64x32xf32>, vector<32x128xf32>, vector<64x128xf32> -> vector<64x128xf32>
    %c0_4 = arith.constant 0 : index
    %c0_5 = arith.constant 0 : index
    %c0_6 = arith.constant 0 : index
    %4 = vector.load %arg3[%c0_4, %c0_5, %c0_6] : memref<3x1x128xf32, #tpu.memory_space<vmem>>, vector<1x1x128xf32>
    %5 = vector.shape_cast %4 : vector<1x1x128xf32> to vector<1x128xf32>
    %6 = vector.broadcast %5 : vector<1x128xf32> to vector<64x128xf32>
    %7 = arith.addf %3, %6 : vector<64x128xf32>
    %c0_7 = arith.constant 0 : index
    %c0_8 = arith.constant 0 : index
    %8 = vector.load %arg11[%c0_7, %c0_8] : memref<64x128xf32, #tpu.memory_space<vmem>>, vector<64x128xf32>
    tpu.vector_store %arg11[%c0_7, %c0_8], %7 {strides = array<i32>} : memref<64x128xf32, #tpu.memory_space<vmem>>, vector<64x128xf32>,
    %c1 = arith.constant 1 : index
    %c0_9 = arith.constant 0 : index
    %c0_10 = arith.constant 0 : index
    %9 = vector.load %arg1[%c1, %c0_9, %c0_10] : memref<3x32x128xf32, #tpu.memory_space<vmem>>, vector<1x32x128xf32>
    %10 = vector.shape_cast %9 : vector<1x32x128xf32> to vector<32x128xf32>
    %c2 = arith.constant 2 : index
    %c0_11 = arith.constant 0 : index
    %c0_12 = arith.constant 0 : index
    %11 = vector.load %arg1[%c2, %c0_11, %c0_12] : memref<3x32x128xf32, #tpu.memory_space<vmem>>, vector<1x32x128xf32>
    %12 = vector.shape_cast %11 : vector<1x32x128xf32> to vector<32x128xf32>
    %c0_13 = arith.constant 0 : index
    %c0_14 = arith.constant 0 : index
    %c0_15 = arith.constant 0 : index
    %13 = vector.load %arg2[%c0_13, %c0_14, %c0_15] : memref<3x32x128xf32, #tpu.memory_space<vmem>>, vector<1x32x128xf32>
    %14 = vector.shape_cast %13 : vector<1x32x128xf32> to vector<32x128xf32>
    %c1_16 = arith.constant 1 : index
    %c0_17 = arith.constant 0 : index
    %c0_18 = arith.constant 0 : index
    %15 = vector.load %arg2[%c1_16, %c0_17, %c0_18] : memref<3x32x128xf32, #tpu.memory_space<vmem>>, vector<1x32x128xf32>
    %16 = vector.shape_cast %15 : vector<1x32x128xf32> to vector<32x128xf32>
    %c2_19 = arith.constant 2 : index
    %c0_20 = arith.constant 0 : index
    %c0_21 = arith.constant 0 : index
    %17 = vector.load %arg2[%c2_19, %c0_20, %c0_21] : memref<3x32x128xf32, #tpu.memory_space<vmem>>, vector<1x32x128xf32>
    %18 = vector.shape_cast %17 : vector<1x32x128xf32> to vector<32x128xf32>
    %c1_22 = arith.constant 1 : index
    %c0_23 = arith.constant 0 : index
    %c0_24 = arith.constant 0 : index
    %19 = vector.load %arg3[%c1_22, %c0_23, %c0_24] : memref<3x1x128xf32, #tpu.memory_space<vmem>>, vector<1x1x128xf32>
    %20 = vector.shape_cast %19 : vector<1x1x128xf32> to vector<1x128xf32>
    %c2_25 = arith.constant 2 : index
    %c0_26 = arith.constant 0 : index
    %c0_27 = arith.constant 0 : index
    %21 = vector.load %arg3[%c2_25, %c0_26, %c0_27] : memref<3x1x128xf32, #tpu.memory_space<vmem>>, vector<1x1x128xf32>
    %22 = vector.shape_cast %21 : vector<1x1x128xf32> to vector<1x128xf32>
    %c0_28 = arith.constant 0 : index
    %c0_29 = arith.constant 0 : index
    %c0_30 = arith.constant 0 : index
    %23 = vector.load %arg4[%c0_28, %c0_29, %c0_30] : memref<3x8x32xf32, #tpu.memory_space<vmem>>, vector<1x8x32xf32>
    %24 = vector.shape_cast %23 : vector<1x8x32xf32> to vector<8x32xf32>
    %c1_31 = arith.constant 1 : index
    %c0_32 = arith.constant 0 : index
    %c0_33 = arith.constant 0 : index
    %25 = vector.load %arg4[%c1_31, %c0_32, %c0_33] : memref<3x8x32xf32, #tpu.memory_space<vmem>>, vector<1x8x32xf32>
    %26 = vector.shape_cast %25 : vector<1x8x32xf32> to vector<8x32xf32>
    %c2_34 = arith.constant 2 : index
    %c0_35 = arith.constant 0 : index
    %c0_36 = arith.constant 0 : index
    %27 = vector.load %arg4[%c2_34, %c0_35, %c0_36] : memref<3x8x32xf32, #tpu.memory_space<vmem>>, vector<1x8x32xf32>
    %28 = vector.shape_cast %27 : vector<1x8x32xf32> to vector<8x32xf32>
    %c0_37 = arith.constant 0 : index
    %c0_38 = arith.constant 0 : index
    %c0_39 = arith.constant 0 : index
    %29 = vector.load %arg5[%c0_37, %c0_38, %c0_39] : memref<3x8x32xf32, #tpu.memory_space<vmem>>, vector<1x8x32xf32>
    %30 = vector.shape_cast %29 : vector<1x8x32xf32> to vector<8x32xf32>
    %c1_40 = arith.constant 1 : index
    %c0_41 = arith.constant 0 : index
    %c0_42 = arith.constant 0 : index
    %31 = vector.load %arg5[%c1_40, %c0_41, %c0_42] : memref<3x8x32xf32, #tpu.memory_space<vmem>>, vector<1x8x32xf32>
    %32 = vector.shape_cast %31 : vector<1x8x32xf32> to vector<8x32xf32>
    %c2_43 = arith.constant 2 : index
    %c0_44 = arith.constant 0 : index
    %c0_45 = arith.constant 0 : index
    %33 = vector.load %arg5[%c2_43, %c0_44, %c0_45] : memref<3x8x32xf32, #tpu.memory_space<vmem>>, vector<1x8x32xf32>
    %34 = vector.shape_cast %33 : vector<1x8x32xf32> to vector<8x32xf32>
    %c0_46 = arith.constant 0 : index
    %c0_47 = arith.constant 0 : index
    %35 = vector.load %arg11[%c0_46, %c0_47] : memref<64x128xf32, #tpu.memory_space<vmem>>, vector<8x128xf32>
    %cst_48 = arith.constant dense<0.000000e+00> : vector<8x128xf32>
    %36 = tpu.matmul %24, %14, %cst_48 {dimension_numbers = #tpu.dot_dimension_numbers<[1], [0], [0], [1], [0, 0, 1, 1], [], []>} : vector<8x32xf32>, vector<32x128xf32>, vector<8x128xf32> -> vector<8x128xf32>
    %37 = arith.addf %35, %36 : vector<8x128xf32>
    %38 = arith.negf %37 : vector<8x128xf32>
    %39 = math.exp %38 : vector<8x128xf32>
    %cst_49 = arith.constant 1.000000e+00 : f32
    %40 = vector.broadcast %cst_49 : f32 to vector<8x128xf32>
    %41 = arith.addf %40, %39 : vector<8x128xf32>
    %42 = arith.divf %40, %41 : vector<8x128xf32>
    %43 = math.tanh %37 : vector<8x128xf32>
    %44 = vector.extract_strided_slice %42 {offsets = [0, 0], sizes = [8, 32], strides = [1, 1]} : vector<8x128xf32> to vector<8x32xf32>
    %45 = vector.extract_strided_slice %42 {offsets = [0, 32], sizes = [8, 32], strides = [1, 1]} : vector<8x128xf32> to vector<8x32xf32>
    %46 = vector.extract_strided_slice %43 {offsets = [0, 64], sizes = [8, 32], strides = [1, 1]} : vector<8x128xf32> to vector<8x32xf32>
    %47 = vector.extract_strided_slice %42 {offsets = [0, 96], sizes = [8, 32], strides = [1, 1]} : vector<8x128xf32> to vector<8x32xf32>
    %48 = arith.mulf %45, %30 : vector<8x32xf32>
    %49 = arith.mulf %44, %46 : vector<8x32xf32>
    %50 = arith.addf %48, %49 : vector<8x32xf32>
    %51 = math.tanh %50 : vector<8x32xf32>
    %52 = arith.mulf %47, %51 : vector<8x32xf32>
    %c8 = arith.constant 8 : index
    %c0_50 = arith.constant 0 : index
    %53 = vector.load %arg11[%c8, %c0_50] : memref<64x128xf32, #tpu.memory_space<vmem>>, vector<8x128xf32>
    %cst_51 = arith.constant dense<0.000000e+00> : vector<8x128xf32>
    %54 = tpu.matmul %52, %14, %cst_51 {dimension_numbers = #tpu.dot_dimension_numbers<[1], [0], [0], [1], [0, 0, 1, 1], [], []>} : vector<8x32xf32>, vector<32x128xf32>, vector<8x128xf32> -> vector<8x128xf32>
    %55 = arith.addf %53, %54 : vector<8x128xf32>
    %56 = arith.negf %55 : vector<8x128xf32>
    %57 = math.exp %56 : vector<8x128xf32>
    %cst_52 = arith.constant 1.000000e+00 : f32
    %58 = vector.broadcast %cst_52 : f32 to vector<8x128xf32>
    %59 = arith.addf %58, %57 : vector<8x128xf32>
    %60 = arith.divf %58, %59 : vector<8x128xf32>
    %61 = math.tanh %55 : vector<8x128xf32>
    %62 = vector.extract_strided_slice %60 {offsets = [0, 0], sizes = [8, 32], strides = [1, 1]} : vector<8x128xf32> to vector<8x32xf32>
    %63 = vector.extract_strided_slice %60 {offsets = [0, 32], sizes = [8, 32], strides = [1, 1]} : vector<8x128xf32> to vector<8x32xf32>
    %64 = vector.extract_strided_slice %61 {offsets = [0, 64], sizes = [8, 32], strides = [1, 1]} : vector<8x128xf32> to vector<8x32xf32>
    %65 = vector.extract_strided_slice %60 {offsets = [0, 96], sizes = [8, 32], strides = [1, 1]} : vector<8x128xf32> to vector<8x32xf32>
    %66 = arith.mulf %63, %50 : vector<8x32xf32>
    %67 = arith.mulf %62, %64 : vector<8x32xf32>
    %68 = arith.addf %66, %67 : vector<8x32xf32>
    %69 = math.tanh %68 : vector<8x32xf32>
    %70 = arith.mulf %65, %69 : vector<8x32xf32>
    %cst_53 = arith.constant dense<0.000000e+00> : vector<8x128xf32>
    %71 = tpu.matmul %52, %10, %cst_53 {dimension_numbers = #tpu.dot_dimension_numbers<[1], [0], [0], [1], [0, 0, 1, 1], [], []>} : vector<8x32xf32>, vector<32x128xf32>, vector<8x128xf32> -> vector<8x128xf32>
    %cst_54 = arith.constant dense<0.000000e+00> : vector<8x128xf32>
    %72 = tpu.matmul %26, %16, %cst_54 {dimension_numbers = #tpu.dot_dimension_numbers<[1], [0], [0], [1], [0, 0, 1, 1], [], []>} : vector<8x32xf32>, vector<32x128xf32>, vector<8x128xf32> -> vector<8x128xf32>
    %73 = arith.addf %71, %72 : vector<8x128xf32>
    %74 = vector.broadcast %20 : vector<1x128xf32> to vector<8x128xf32>
    %75 = arith.addf %73, %74 : vector<8x128xf32>
    %76 = arith.negf %75 : vector<8x128xf32>
    %77 = math.exp %76 : vector<8x128xf32>
    %cst_55 = arith.constant 1.000000e+00 : f32
    %78 = vector.broadcast %cst_55 : f32 to vector<8x128xf32>
    %79 = arith.addf %78, %77 : vector<8x128xf32>
    %80 = arith.divf %78, %79 : vector<8x128xf32>
    %81 = math.tanh %75 : vector<8x128xf32>
    %82 = vector.extract_strided_slice %80 {offsets = [0, 0], sizes = [8, 32], strides = [1, 1]} : vector<8x128xf32> to vector<8x32xf32>
    %83 = vector.extract_strided_slice %80 {offsets = [0, 32], sizes = [8, 32], strides = [1, 1]} : vector<8x128xf32> to vector<8x32xf32>
    %84 = vector.extract_strided_slice %81 {offsets = [0, 64], sizes = [8, 32], strides = [1, 1]} : vector<8x128xf32> to vector<8x32xf32>
    %85 = vector.extract_strided_slice %80 {offsets = [0, 96], sizes = [8, 32], strides = [1, 1]} : vector<8x128xf32> to vector<8x32xf32>
    %86 = arith.mulf %83, %32 : vector<8x32xf32>
    %87 = arith.mulf %82, %84 : vector<8x32xf32>
    %88 = arith.addf %86, %87 : vector<8x32xf32>
    %89 = math.tanh %88 : vector<8x32xf32>
    %90 = arith.mulf %85, %89 : vector<8x32xf32>
    %c16 = arith.constant 16 : index
    %c0_56 = arith.constant 0 : index
    %91 = vector.load %arg11[%c16, %c0_56] : memref<64x128xf32, #tpu.memory_space<vmem>>, vector<8x128xf32>
    %cst_57 = arith.constant dense<0.000000e+00> : vector<8x128xf32>
    %92 = tpu.matmul %70, %14, %cst_57 {dimension_numbers = #tpu.dot_dimension_numbers<[1], [0], [0], [1], [0, 0, 1, 1], [], []>} : vector<8x32xf32>, vector<32x128xf32>, vector<8x128xf32> -> vector<8x128xf32>
    %93 = arith.addf %91, %92 : vector<8x128xf32>
    %94 = arith.negf %93 : vector<8x128xf32>
    %95 = math.exp %94 : vector<8x128xf32>
    %cst_58 = arith.constant 1.000000e+00 : f32
    %96 = vector.broadcast %cst_58 : f32 to vector<8x128xf32>
    %97 = arith.addf %96, %95 : vector<8x128xf32>
    %98 = arith.divf %96, %97 : vector<8x128xf32>
    %99 = math.tanh %93 : vector<8x128xf32>
    %100 = vector.extract_strided_slice %98 {offsets = [0, 0], sizes = [8, 32], strides = [1, 1]} : vector<8x128xf32> to vector<8x32xf32>
    %101 = vector.extract_strided_slice %98 {offsets = [0, 32], sizes = [8, 32], strides = [1, 1]} : vector<8x128xf32> to vector<8x32xf32>
    %102 = vector.extract_strided_slice %99 {offsets = [0, 64], sizes = [8, 32], strides = [1, 1]} : vector<8x128xf32> to vector<8x32xf32>
    %103 = vector.extract_strided_slice %98 {offsets = [0, 96], sizes = [8, 32], strides = [1, 1]} : vector<8x128xf32> to vector<8x32xf32>
    %104 = arith.mulf %101, %68 : vector<8x32xf32>
    %105 = arith.mulf %100, %102 : vector<8x32xf32>
    %106 = arith.addf %104, %105 : vector<8x32xf32>
    %107 = math.tanh %106 : vector<8x32xf32>
    %108 = arith.mulf %103, %107 : vector<8x32xf32>
    %cst_59 = arith.constant dense<0.000000e+00> : vector<8x128xf32>
    %109 = tpu.matmul %70, %10, %cst_59 {dimension_numbers = #tpu.dot_dimension_numbers<[1], [0], [0], [1], [0, 0, 1, 1], [], []>} : vector<8x32xf32>, vector<32x128xf32>, vector<8x128xf32> -> vector<8x128xf32>
    %cst_60 = arith.constant dense<0.000000e+00> : vector<8x128xf32>
    %110 = tpu.matmul %90, %16, %cst_60 {dimension_numbers = #tpu.dot_dimension_numbers<[1], [0], [0], [1], [0, 0, 1, 1], [], []>} : vector<8x32xf32>, vector<32x128xf32>, vector<8x128xf32> -> vector<8x128xf32>
    %111 = arith.addf %109, %110 : vector<8x128xf32>
    %112 = vector.broadcast %20 : vector<1x128xf32> to vector<8x128xf32>
    %113 = arith.addf %111, %112 : vector<8x128xf32>
    %114 = arith.negf %113 : vector<8x128xf32>
    %115 = math.exp %114 : vector<8x128xf32>
    %cst_61 = arith.constant 1.000000e+00 : f32
    %116 = vector.broadcast %cst_61 : f32 to vector<8x128xf32>
    %117 = arith.addf %116, %115 : vector<8x128xf32>
    %118 = arith.divf %116, %117 : vector<8x128xf32>
    %119 = math.tanh %113 : vector<8x128xf32>
    %120 = vector.extract_strided_slice %118 {offsets = [0, 0], sizes = [8, 32], strides = [1, 1]} : vector<8x128xf32> to vector<8x32xf32>
    %121 = vector.extract_strided_slice %118 {offsets = [0, 32], sizes = [8, 32], strides = [1, 1]} : vector<8x128xf32> to vector<8x32xf32>
    %122 = vector.extract_strided_slice %119 {offsets = [0, 64], sizes = [8, 32], strides = [1, 1]} : vector<8x128xf32> to vector<8x32xf32>
    %123 = vector.extract_strided_slice %118 {offsets = [0, 96], sizes = [8, 32], strides = [1, 1]} : vector<8x128xf32> to vector<8x32xf32>
    %124 = arith.mulf %121, %88 : vector<8x32xf32>
    %125 = arith.mulf %120, %122 : vector<8x32xf32>
    %126 = arith.addf %124, %125 : vector<8x32xf32>
    %127 = math.tanh %126 : vector<8x32xf32>
    %128 = arith.mulf %123, %127 : vector<8x32xf32>
    %cst_62 = arith.constant dense<0.000000e+00> : vector<8x128xf32>
    %129 = tpu.matmul %90, %12, %cst_62 {dimension_numbers = #tpu.dot_dimension_numbers<[1], [0], [0], [1], [0, 0, 1, 1], [], []>} : vector<8x32xf32>, vector<32x128xf32>, vector<8x128xf32> -> vector<8x128xf32>
    %cst_63 = arith.constant dense<0.000000e+00> : vector<8x128xf32>
    %130 = tpu.matmul %28, %18, %cst_63 {dimension_numbers = #tpu.dot_dimension_numbers<[1], [0], [0], [1], [0, 0, 1, 1], [], []>} : vector<8x32xf32>, vector<32x128xf32>, vector<8x128xf32> -> vector<8x128xf32>
    %131 = arith.addf %129, %130 : vector<8x128xf32>
    %132 = vector.broadcast %22 : vector<1x128xf32> to vector<8x128xf32>
    %133 = arith.addf %131, %132 : vector<8x128xf32>
    %134 = arith.negf %133 : vector<8x128xf32>
    %135 = math.exp %134 : vector<8x128xf32>
    %cst_64 = arith.constant 1.000000e+00 : f32
    %136 = vector.broadcast %cst_64 : f32 to vector<8x128xf32>
    %137 = arith.addf %136, %135 : vector<8x128xf32>
    %138 = arith.divf %136, %137 : vector<8x128xf32>
    %139 = math.tanh %133 : vector<8x128xf32>
    %140 = vector.extract_strided_slice %138 {offsets = [0, 0], sizes = [8, 32], strides = [1, 1]} : vector<8x128xf32> to vector<8x32xf32>
    %141 = vector.extract_strided_slice %138 {offsets = [0, 32], sizes = [8, 32], strides = [1, 1]} : vector<8x128xf32> to vector<8x32xf32>
    %142 = vector.extract_strided_slice %139 {offsets = [0, 64], sizes = [8, 32], strides = [1, 1]} : vector<8x128xf32> to vector<8x32xf32>
    %143 = vector.extract_strided_slice %138 {offsets = [0, 96], sizes = [8, 32], strides = [1, 1]} : vector<8x128xf32> to vector<8x32xf32>
    %144 = arith.mulf %141, %34 : vector<8x32xf32>
    %145 = arith.mulf %140, %142 : vector<8x32xf32>
    %146 = arith.addf %144, %145 : vector<8x32xf32>
    %147 = math.tanh %146 : vector<8x32xf32>
    %148 = arith.mulf %143, %147 : vector<8x32xf32>
    %c0_65 = arith.constant 0 : index
    %c0_66 = arith.constant 0 : index
    %149 = vector.load %arg12[%c0_65, %c0_66] : memref<64x32xf32, #tpu.memory_space<vmem>>, vector<8x32xf32>
    tpu.vector_store %arg12[%c0_65, %c0_66], %148 {strides = array<i32>} : memref<64x32xf32, #tpu.memory_space<vmem>>, vector<8x32xf32>,
    %c24 = arith.constant 24 : index
    %c0_67 = arith.constant 0 : index
    %150 = vector.load %arg11[%c24, %c0_67] : memref<64x128xf32, #tpu.memory_space<vmem>>, vector<8x128xf32>
    %cst_68 = arith.constant dense<0.000000e+00> : vector<8x128xf32>
    %151 = tpu.matmul %108, %14, %cst_68 {dimension_numbers = #tpu.dot_dimension_numbers<[1], [0], [0], [1], [0, 0, 1, 1], [], []>} : vector<8x32xf32>, vector<32x128xf32>, vector<8x128xf32> -> vector<8x128xf32>
    %152 = arith.addf %150, %151 : vector<8x128xf32>
    %153 = arith.negf %152 : vector<8x128xf32>
    %154 = math.exp %153 : vector<8x128xf32>
    %cst_69 = arith.constant 1.000000e+00 : f32
    %155 = vector.broadcast %cst_69 : f32 to vector<8x128xf32>
    %156 = arith.addf %155, %154 : vector<8x128xf32>
    %157 = arith.divf %155, %156 : vector<8x128xf32>
    %158 = math.tanh %152 : vector<8x128xf32>
    %159 = vector.extract_strided_slice %157 {offsets = [0, 0], sizes = [8, 32], strides = [1, 1]} : vector<8x128xf32> to vector<8x32xf32>
    %160 = vector.extract_strided_slice %157 {offsets = [0, 32], sizes = [8, 32], strides = [1, 1]} : vector<8x128xf32> to vector<8x32xf32>
    %161 = vector.extract_strided_slice %158 {offsets = [0, 64], sizes = [8, 32], strides = [1, 1]} : vector<8x128xf32> to vector<8x32xf32>
    %162 = vector.extract_strided_slice %157 {offsets = [0, 96], sizes = [8, 32], strides = [1, 1]} : vector<8x128xf32> to vector<8x32xf32>
    %163 = arith.mulf %160, %106 : vector<8x32xf32>
    %164 = arith.mulf %159, %161 : vector<8x32xf32>
    %165 = arith.addf %163, %164 : vector<8x32xf32>
    %166 = math.tanh %165 : vector<8x32xf32>
    %167 = arith.mulf %162, %166 : vector<8x32xf32>
    %cst_70 = arith.constant dense<0.000000e+00> : vector<8x128xf32>
    %168 = tpu.matmul %108, %10, %cst_70 {dimension_numbers = #tpu.dot_dimension_numbers<[1], [0], [0], [1], [0, 0, 1, 1], [], []>} : vector<8x32xf32>, vector<32x128xf32>, vector<8x128xf32> -> vector<8x128xf32>
    %cst_71 = arith.constant dense<0.000000e+00> : vector<8x128xf32>
    %169 = tpu.matmul %128, %16, %cst_71 {dimension_numbers = #tpu.dot_dimension_numbers<[1], [0], [0], [1], [0, 0, 1, 1], [], []>} : vector<8x32xf32>, vector<32x128xf32>, vector<8x128xf32> -> vector<8x128xf32>
    %170 = arith.addf %168, %169 : vector<8x128xf32>
    %171 = vector.broadcast %20 : vector<1x128xf32> to vector<8x128xf32>
    %172 = arith.addf %170, %171 : vector<8x128xf32>
    %173 = arith.negf %172 : vector<8x128xf32>
    %174 = math.exp %173 : vector<8x128xf32>
    %cst_72 = arith.constant 1.000000e+00 : f32
    %175 = vector.broadcast %cst_72 : f32 to vector<8x128xf32>
    %176 = arith.addf %175, %174 : vector<8x128xf32>
    %177 = arith.divf %175, %176 : vector<8x128xf32>
    %178 = math.tanh %172 : vector<8x128xf32>
    %179 = vector.extract_strided_slice %177 {offsets = [0, 0], sizes = [8, 32], strides = [1, 1]} : vector<8x128xf32> to vector<8x32xf32>
    %180 = vector.extract_strided_slice %177 {offsets = [0, 32], sizes = [8, 32], strides = [1, 1]} : vector<8x128xf32> to vector<8x32xf32>
    %181 = vector.extract_strided_slice %178 {offsets = [0, 64], sizes = [8, 32], strides = [1, 1]} : vector<8x128xf32> to vector<8x32xf32>
    %182 = vector.extract_strided_slice %177 {offsets = [0, 96], sizes = [8, 32], strides = [1, 1]} : vector<8x128xf32> to vector<8x32xf32>
    %183 = arith.mulf %180, %126 : vector<8x32xf32>
    %184 = arith.mulf %179, %181 : vector<8x32xf32>
    %185 = arith.addf %183, %184 : vector<8x32xf32>
    %186 = math.tanh %185 : vector<8x32xf32>
    %187 = arith.mulf %182, %186 : vector<8x32xf32>
    %cst_73 = arith.constant dense<0.000000e+00> : vector<8x128xf32>
    %188 = tpu.matmul %128, %12, %cst_73 {dimension_numbers = #tpu.dot_dimension_numbers<[1], [0], [0], [1], [0, 0, 1, 1], [], []>} : vector<8x32xf32>, vector<32x128xf32>, vector<8x128xf32> -> vector<8x128xf32>
    %cst_74 = arith.constant dense<0.000000e+00> : vector<8x128xf32>
    %189 = tpu.matmul %148, %18, %cst_74 {dimension_numbers = #tpu.dot_dimension_numbers<[1], [0], [0], [1], [0, 0, 1, 1], [], []>} : vector<8x32xf32>, vector<32x128xf32>, vector<8x128xf32> -> vector<8x128xf32>
    %190 = arith.addf %188, %189 : vector<8x128xf32>
    %191 = vector.broadcast %22 : vector<1x128xf32> to vector<8x128xf32>
    %192 = arith.addf %190, %191 : vector<8x128xf32>
    %193 = arith.negf %192 : vector<8x128xf32>
    %194 = math.exp %193 : vector<8x128xf32>
    %cst_75 = arith.constant 1.000000e+00 : f32
    %195 = vector.broadcast %cst_75 : f32 to vector<8x128xf32>
    %196 = arith.addf %195, %194 : vector<8x128xf32>
    %197 = arith.divf %195, %196 : vector<8x128xf32>
    %198 = math.tanh %192 : vector<8x128xf32>
    %199 = vector.extract_strided_slice %197 {offsets = [0, 0], sizes = [8, 32], strides = [1, 1]} : vector<8x128xf32> to vector<8x32xf32>
    %200 = vector.extract_strided_slice %197 {offsets = [0, 32], sizes = [8, 32], strides = [1, 1]} : vector<8x128xf32> to vector<8x32xf32>
    %201 = vector.extract_strided_slice %198 {offsets = [0, 64], sizes = [8, 32], strides = [1, 1]} : vector<8x128xf32> to vector<8x32xf32>
    %202 = vector.extract_strided_slice %197 {offsets = [0, 96], sizes = [8, 32], strides = [1, 1]} : vector<8x128xf32> to vector<8x32xf32>
    %203 = arith.mulf %200, %146 : vector<8x32xf32>
    %204 = arith.mulf %199, %201 : vector<8x32xf32>
    %205 = arith.addf %203, %204 : vector<8x32xf32>
    %206 = math.tanh %205 : vector<8x32xf32>
    %207 = arith.mulf %202, %206 : vector<8x32xf32>
    %c8_76 = arith.constant 8 : index
    %c0_77 = arith.constant 0 : index
    %208 = vector.load %arg12[%c8_76, %c0_77] : memref<64x32xf32, #tpu.memory_space<vmem>>, vector<8x32xf32>
    tpu.vector_store %arg12[%c8_76, %c0_77], %207 {strides = array<i32>} : memref<64x32xf32, #tpu.memory_space<vmem>>, vector<8x32xf32>,
    %c32 = arith.constant 32 : index
    %c0_78 = arith.constant 0 : index
    %209 = vector.load %arg11[%c32, %c0_78] : memref<64x128xf32, #tpu.memory_space<vmem>>, vector<8x128xf32>
    %cst_79 = arith.constant dense<0.000000e+00> : vector<8x128xf32>
    %210 = tpu.matmul %167, %14, %cst_79 {dimension_numbers = #tpu.dot_dimension_numbers<[1], [0], [0], [1], [0, 0, 1, 1], [], []>} : vector<8x32xf32>, vector<32x128xf32>, vector<8x128xf32> -> vector<8x128xf32>
    %211 = arith.addf %209, %210 : vector<8x128xf32>
    %212 = arith.negf %211 : vector<8x128xf32>
    %213 = math.exp %212 : vector<8x128xf32>
    %cst_80 = arith.constant 1.000000e+00 : f32
    %214 = vector.broadcast %cst_80 : f32 to vector<8x128xf32>
    %215 = arith.addf %214, %213 : vector<8x128xf32>
    %216 = arith.divf %214, %215 : vector<8x128xf32>
    %217 = math.tanh %211 : vector<8x128xf32>
    %218 = vector.extract_strided_slice %216 {offsets = [0, 0], sizes = [8, 32], strides = [1, 1]} : vector<8x128xf32> to vector<8x32xf32>
    %219 = vector.extract_strided_slice %216 {offsets = [0, 32], sizes = [8, 32], strides = [1, 1]} : vector<8x128xf32> to vector<8x32xf32>
    %220 = vector.extract_strided_slice %217 {offsets = [0, 64], sizes = [8, 32], strides = [1, 1]} : vector<8x128xf32> to vector<8x32xf32>
    %221 = vector.extract_strided_slice %216 {offsets = [0, 96], sizes = [8, 32], strides = [1, 1]} : vector<8x128xf32> to vector<8x32xf32>
    %222 = arith.mulf %219, %165 : vector<8x32xf32>
    %223 = arith.mulf %218, %220 : vector<8x32xf32>
    %224 = arith.addf %222, %223 : vector<8x32xf32>
    %225 = math.tanh %224 : vector<8x32xf32>
    %226 = arith.mulf %221, %225 : vector<8x32xf32>
    %cst_81 = arith.constant dense<0.000000e+00> : vector<8x128xf32>
    %227 = tpu.matmul %167, %10, %cst_81 {dimension_numbers = #tpu.dot_dimension_numbers<[1], [0], [0], [1], [0, 0, 1, 1], [], []>} : vector<8x32xf32>, vector<32x128xf32>, vector<8x128xf32> -> vector<8x128xf32>
    %cst_82 = arith.constant dense<0.000000e+00> : vector<8x128xf32>
    %228 = tpu.matmul %187, %16, %cst_82 {dimension_numbers = #tpu.dot_dimension_numbers<[1], [0], [0], [1], [0, 0, 1, 1], [], []>} : vector<8x32xf32>, vector<32x128xf32>, vector<8x128xf32> -> vector<8x128xf32>
    %229 = arith.addf %227, %228 : vector<8x128xf32>
    %230 = vector.broadcast %20 : vector<1x128xf32> to vector<8x128xf32>
    %231 = arith.addf %229, %230 : vector<8x128xf32>
    %232 = arith.negf %231 : vector<8x128xf32>
    %233 = math.exp %232 : vector<8x128xf32>
    %cst_83 = arith.constant 1.000000e+00 : f32
    %234 = vector.broadcast %cst_83 : f32 to vector<8x128xf32>
    %235 = arith.addf %234, %233 : vector<8x128xf32>
    %236 = arith.divf %234, %235 : vector<8x128xf32>
    %237 = math.tanh %231 : vector<8x128xf32>
    %238 = vector.extract_strided_slice %236 {offsets = [0, 0], sizes = [8, 32], strides = [1, 1]} : vector<8x128xf32> to vector<8x32xf32>
    %239 = vector.extract_strided_slice %236 {offsets = [0, 32], sizes = [8, 32], strides = [1, 1]} : vector<8x128xf32> to vector<8x32xf32>
    %240 = vector.extract_strided_slice %237 {offsets = [0, 64], sizes = [8, 32], strides = [1, 1]} : vector<8x128xf32> to vector<8x32xf32>
    %241 = vector.extract_strided_slice %236 {offsets = [0, 96], sizes = [8, 32], strides = [1, 1]} : vector<8x128xf32> to vector<8x32xf32>
    %242 = arith.mulf %239, %185 : vector<8x32xf32>
    %243 = arith.mulf %238, %240 : vector<8x32xf32>
    %244 = arith.addf %242, %243 : vector<8x32xf32>
    %245 = math.tanh %244 : vector<8x32xf32>
    %246 = arith.mulf %241, %245 : vector<8x32xf32>
    %cst_84 = arith.constant dense<0.000000e+00> : vector<8x128xf32>
    %247 = tpu.matmul %187, %12, %cst_84 {dimension_numbers = #tpu.dot_dimension_numbers<[1], [0], [0], [1], [0, 0, 1, 1], [], []>} : vector<8x32xf32>, vector<32x128xf32>, vector<8x128xf32> -> vector<8x128xf32>
    %cst_85 = arith.constant dense<0.000000e+00> : vector<8x128xf32>
    %248 = tpu.matmul %207, %18, %cst_85 {dimension_numbers = #tpu.dot_dimension_numbers<[1], [0], [0], [1], [0, 0, 1, 1], [], []>} : vector<8x32xf32>, vector<32x128xf32>, vector<8x128xf32> -> vector<8x128xf32>
    %249 = arith.addf %247, %248 : vector<8x128xf32>
    %250 = vector.broadcast %22 : vector<1x128xf32> to vector<8x128xf32>
    %251 = arith.addf %249, %250 : vector<8x128xf32>
    %252 = arith.negf %251 : vector<8x128xf32>
    %253 = math.exp %252 : vector<8x128xf32>
    %cst_86 = arith.constant 1.000000e+00 : f32
    %254 = vector.broadcast %cst_86 : f32 to vector<8x128xf32>
    %255 = arith.addf %254, %253 : vector<8x128xf32>
    %256 = arith.divf %254, %255 : vector<8x128xf32>
    %257 = math.tanh %251 : vector<8x128xf32>
    %258 = vector.extract_strided_slice %256 {offsets = [0, 0], sizes = [8, 32], strides = [1, 1]} : vector<8x128xf32> to vector<8x32xf32>
    %259 = vector.extract_strided_slice %256 {offsets = [0, 32], sizes = [8, 32], strides = [1, 1]} : vector<8x128xf32> to vector<8x32xf32>
    %260 = vector.extract_strided_slice %257 {offsets = [0, 64], sizes = [8, 32], strides = [1, 1]} : vector<8x128xf32> to vector<8x32xf32>
    %261 = vector.extract_strided_slice %256 {offsets = [0, 96], sizes = [8, 32], strides = [1, 1]} : vector<8x128xf32> to vector<8x32xf32>
    %262 = arith.mulf %259, %205 : vector<8x32xf32>
    %263 = arith.mulf %258, %260 : vector<8x32xf32>
    %264 = arith.addf %262, %263 : vector<8x32xf32>
    %265 = math.tanh %264 : vector<8x32xf32>
    %266 = arith.mulf %261, %265 : vector<8x32xf32>
    %c16_87 = arith.constant 16 : index
    %c0_88 = arith.constant 0 : index
    %267 = vector.load %arg12[%c16_87, %c0_88] : memref<64x32xf32, #tpu.memory_space<vmem>>, vector<8x32xf32>
    tpu.vector_store %arg12[%c16_87, %c0_88], %266 {strides = array<i32>} : memref<64x32xf32, #tpu.memory_space<vmem>>, vector<8x32xf32>,
    %c40 = arith.constant 40 : index
    %c0_89 = arith.constant 0 : index
    %268 = vector.load %arg11[%c40, %c0_89] : memref<64x128xf32, #tpu.memory_space<vmem>>, vector<8x128xf32>
    %cst_90 = arith.constant dense<0.000000e+00> : vector<8x128xf32>
    %269 = tpu.matmul %226, %14, %cst_90 {dimension_numbers = #tpu.dot_dimension_numbers<[1], [0], [0], [1], [0, 0, 1, 1], [], []>} : vector<8x32xf32>, vector<32x128xf32>, vector<8x128xf32> -> vector<8x128xf32>
    %270 = arith.addf %268, %269 : vector<8x128xf32>
    %271 = arith.negf %270 : vector<8x128xf32>
    %272 = math.exp %271 : vector<8x128xf32>
    %cst_91 = arith.constant 1.000000e+00 : f32
    %273 = vector.broadcast %cst_91 : f32 to vector<8x128xf32>
    %274 = arith.addf %273, %272 : vector<8x128xf32>
    %275 = arith.divf %273, %274 : vector<8x128xf32>
    %276 = math.tanh %270 : vector<8x128xf32>
    %277 = vector.extract_strided_slice %275 {offsets = [0, 0], sizes = [8, 32], strides = [1, 1]} : vector<8x128xf32> to vector<8x32xf32>
    %278 = vector.extract_strided_slice %275 {offsets = [0, 32], sizes = [8, 32], strides = [1, 1]} : vector<8x128xf32> to vector<8x32xf32>
    %279 = vector.extract_strided_slice %276 {offsets = [0, 64], sizes = [8, 32], strides = [1, 1]} : vector<8x128xf32> to vector<8x32xf32>
    %280 = vector.extract_strided_slice %275 {offsets = [0, 96], sizes = [8, 32], strides = [1, 1]} : vector<8x128xf32> to vector<8x32xf32>
    %281 = arith.mulf %278, %224 : vector<8x32xf32>
    %282 = arith.mulf %277, %279 : vector<8x32xf32>
    %283 = arith.addf %281, %282 : vector<8x32xf32>
    %284 = math.tanh %283 : vector<8x32xf32>
    %285 = arith.mulf %280, %284 : vector<8x32xf32>
    %cst_92 = arith.constant dense<0.000000e+00> : vector<8x128xf32>
    %286 = tpu.matmul %226, %10, %cst_92 {dimension_numbers = #tpu.dot_dimension_numbers<[1], [0], [0], [1], [0, 0, 1, 1], [], []>} : vector<8x32xf32>, vector<32x128xf32>, vector<8x128xf32> -> vector<8x128xf32>
    %cst_93 = arith.constant dense<0.000000e+00> : vector<8x128xf32>
    %287 = tpu.matmul %246, %16, %cst_93 {dimension_numbers = #tpu.dot_dimension_numbers<[1], [0], [0], [1], [0, 0, 1, 1], [], []>} : vector<8x32xf32>, vector<32x128xf32>, vector<8x128xf32> -> vector<8x128xf32>
    %288 = arith.addf %286, %287 : vector<8x128xf32>
    %289 = vector.broadcast %20 : vector<1x128xf32> to vector<8x128xf32>
    %290 = arith.addf %288, %289 : vector<8x128xf32>
    %291 = arith.negf %290 : vector<8x128xf32>
    %292 = math.exp %291 : vector<8x128xf32>
    %cst_94 = arith.constant 1.000000e+00 : f32
    %293 = vector.broadcast %cst_94 : f32 to vector<8x128xf32>
    %294 = arith.addf %293, %292 : vector<8x128xf32>
    %295 = arith.divf %293, %294 : vector<8x128xf32>
    %296 = math.tanh %290 : vector<8x128xf32>
    %297 = vector.extract_strided_slice %295 {offsets = [0, 0], sizes = [8, 32], strides = [1, 1]} : vector<8x128xf32> to vector<8x32xf32>
    %298 = vector.extract_strided_slice %295 {offsets = [0, 32], sizes = [8, 32], strides = [1, 1]} : vector<8x128xf32> to vector<8x32xf32>
    %299 = vector.extract_strided_slice %296 {offsets = [0, 64], sizes = [8, 32], strides = [1, 1]} : vector<8x128xf32> to vector<8x32xf32>
    %300 = vector.extract_strided_slice %295 {offsets = [0, 96], sizes = [8, 32], strides = [1, 1]} : vector<8x128xf32> to vector<8x32xf32>
    %301 = arith.mulf %298, %244 : vector<8x32xf32>
    %302 = arith.mulf %297, %299 : vector<8x32xf32>
    %303 = arith.addf %301, %302 : vector<8x32xf32>
    %304 = math.tanh %303 : vector<8x32xf32>
    %305 = arith.mulf %300, %304 : vector<8x32xf32>
    %cst_95 = arith.constant dense<0.000000e+00> : vector<8x128xf32>
    %306 = tpu.matmul %246, %12, %cst_95 {dimension_numbers = #tpu.dot_dimension_numbers<[1], [0], [0], [1], [0, 0, 1, 1], [], []>} : vector<8x32xf32>, vector<32x128xf32>, vector<8x128xf32> -> vector<8x128xf32>
    %cst_96 = arith.constant dense<0.000000e+00> : vector<8x128xf32>
    %307 = tpu.matmul %266, %18, %cst_96 {dimension_numbers = #tpu.dot_dimension_numbers<[1], [0], [0], [1], [0, 0, 1, 1], [], []>} : vector<8x32xf32>, vector<32x128xf32>, vector<8x128xf32> -> vector<8x128xf32>
    %308 = arith.addf %306, %307 : vector<8x128xf32>
    %309 = vector.broadcast %22 : vector<1x128xf32> to vector<8x128xf32>
    %310 = arith.addf %308, %309 : vector<8x128xf32>
    %311 = arith.negf %310 : vector<8x128xf32>
    %312 = math.exp %311 : vector<8x128xf32>
    %cst_97 = arith.constant 1.000000e+00 : f32
    %313 = vector.broadcast %cst_97 : f32 to vector<8x128xf32>
    %314 = arith.addf %313, %312 : vector<8x128xf32>
    %315 = arith.divf %313, %314 : vector<8x128xf32>
    %316 = math.tanh %310 : vector<8x128xf32>
    %317 = vector.extract_strided_slice %315 {offsets = [0, 0], sizes = [8, 32], strides = [1, 1]} : vector<8x128xf32> to vector<8x32xf32>
    %318 = vector.extract_strided_slice %315 {offsets = [0, 32], sizes = [8, 32], strides = [1, 1]} : vector<8x128xf32> to vector<8x32xf32>
    %319 = vector.extract_strided_slice %316 {offsets = [0, 64], sizes = [8, 32], strides = [1, 1]} : vector<8x128xf32> to vector<8x32xf32>
    %320 = vector.extract_strided_slice %315 {offsets = [0, 96], sizes = [8, 32], strides = [1, 1]} : vector<8x128xf32> to vector<8x32xf32>
    %321 = arith.mulf %318, %264 : vector<8x32xf32>
    %322 = arith.mulf %317, %319 : vector<8x32xf32>
    %323 = arith.addf %321, %322 : vector<8x32xf32>
    %324 = math.tanh %323 : vector<8x32xf32>
    %325 = arith.mulf %320, %324 : vector<8x32xf32>
    %c24_98 = arith.constant 24 : index
    %c0_99 = arith.constant 0 : index
    %326 = vector.load %arg12[%c24_98, %c0_99] : memref<64x32xf32, #tpu.memory_space<vmem>>, vector<8x32xf32>
    tpu.vector_store %arg12[%c24_98, %c0_99], %325 {strides = array<i32>} : memref<64x32xf32, #tpu.memory_space<vmem>>, vector<8x32xf32>,
    %c48 = arith.constant 48 : index
    %c0_100 = arith.constant 0 : index
    %327 = vector.load %arg11[%c48, %c0_100] : memref<64x128xf32, #tpu.memory_space<vmem>>, vector<8x128xf32>
    %cst_101 = arith.constant dense<0.000000e+00> : vector<8x128xf32>
    %328 = tpu.matmul %285, %14, %cst_101 {dimension_numbers = #tpu.dot_dimension_numbers<[1], [0], [0], [1], [0, 0, 1, 1], [], []>} : vector<8x32xf32>, vector<32x128xf32>, vector<8x128xf32> -> vector<8x128xf32>
    %329 = arith.addf %327, %328 : vector<8x128xf32>
    %330 = arith.negf %329 : vector<8x128xf32>
    %331 = math.exp %330 : vector<8x128xf32>
    %cst_102 = arith.constant 1.000000e+00 : f32
    %332 = vector.broadcast %cst_102 : f32 to vector<8x128xf32>
    %333 = arith.addf %332, %331 : vector<8x128xf32>
    %334 = arith.divf %332, %333 : vector<8x128xf32>
    %335 = math.tanh %329 : vector<8x128xf32>
    %336 = vector.extract_strided_slice %334 {offsets = [0, 0], sizes = [8, 32], strides = [1, 1]} : vector<8x128xf32> to vector<8x32xf32>
    %337 = vector.extract_strided_slice %334 {offsets = [0, 32], sizes = [8, 32], strides = [1, 1]} : vector<8x128xf32> to vector<8x32xf32>
    %338 = vector.extract_strided_slice %335 {offsets = [0, 64], sizes = [8, 32], strides = [1, 1]} : vector<8x128xf32> to vector<8x32xf32>
    %339 = vector.extract_strided_slice %334 {offsets = [0, 96], sizes = [8, 32], strides = [1, 1]} : vector<8x128xf32> to vector<8x32xf32>
    %340 = arith.mulf %337, %283 : vector<8x32xf32>
    %341 = arith.mulf %336, %338 : vector<8x32xf32>
    %342 = arith.addf %340, %341 : vector<8x32xf32>
    %343 = math.tanh %342 : vector<8x32xf32>
    %344 = arith.mulf %339, %343 : vector<8x32xf32>
    %cst_103 = arith.constant dense<0.000000e+00> : vector<8x128xf32>
    %345 = tpu.matmul %285, %10, %cst_103 {dimension_numbers = #tpu.dot_dimension_numbers<[1], [0], [0], [1], [0, 0, 1, 1], [], []>} : vector<8x32xf32>, vector<32x128xf32>, vector<8x128xf32> -> vector<8x128xf32>
    %cst_104 = arith.constant dense<0.000000e+00> : vector<8x128xf32>
    %346 = tpu.matmul %305, %16, %cst_104 {dimension_numbers = #tpu.dot_dimension_numbers<[1], [0], [0], [1], [0, 0, 1, 1], [], []>} : vector<8x32xf32>, vector<32x128xf32>, vector<8x128xf32> -> vector<8x128xf32>
    %347 = arith.addf %345, %346 : vector<8x128xf32>
    %348 = vector.broadcast %20 : vector<1x128xf32> to vector<8x128xf32>
    %349 = arith.addf %347, %348 : vector<8x128xf32>
    %350 = arith.negf %349 : vector<8x128xf32>
    %351 = math.exp %350 : vector<8x128xf32>
    %cst_105 = arith.constant 1.000000e+00 : f32
    %352 = vector.broadcast %cst_105 : f32 to vector<8x128xf32>
    %353 = arith.addf %352, %351 : vector<8x128xf32>
    %354 = arith.divf %352, %353 : vector<8x128xf32>
    %355 = math.tanh %349 : vector<8x128xf32>
    %356 = vector.extract_strided_slice %354 {offsets = [0, 0], sizes = [8, 32], strides = [1, 1]} : vector<8x128xf32> to vector<8x32xf32>
    %357 = vector.extract_strided_slice %354 {offsets = [0, 32], sizes = [8, 32], strides = [1, 1]} : vector<8x128xf32> to vector<8x32xf32>
    %358 = vector.extract_strided_slice %355 {offsets = [0, 64], sizes = [8, 32], strides = [1, 1]} : vector<8x128xf32> to vector<8x32xf32>
    %359 = vector.extract_strided_slice %354 {offsets = [0, 96], sizes = [8, 32], strides = [1, 1]} : vector<8x128xf32> to vector<8x32xf32>
    %360 = arith.mulf %357, %303 : vector<8x32xf32>
    %361 = arith.mulf %356, %358 : vector<8x32xf32>
    %362 = arith.addf %360, %361 : vector<8x32xf32>
    %363 = math.tanh %362 : vector<8x32xf32>
    %364 = arith.mulf %359, %363 : vector<8x32xf32>
    %cst_106 = arith.constant dense<0.000000e+00> : vector<8x128xf32>
    %365 = tpu.matmul %305, %12, %cst_106 {dimension_numbers = #tpu.dot_dimension_numbers<[1], [0], [0], [1], [0, 0, 1, 1], [], []>} : vector<8x32xf32>, vector<32x128xf32>, vector<8x128xf32> -> vector<8x128xf32>
    %cst_107 = arith.constant dense<0.000000e+00> : vector<8x128xf32>
    %366 = tpu.matmul %325, %18, %cst_107 {dimension_numbers = #tpu.dot_dimension_numbers<[1], [0], [0], [1], [0, 0, 1, 1], [], []>} : vector<8x32xf32>, vector<32x128xf32>, vector<8x128xf32> -> vector<8x128xf32>
    %367 = arith.addf %365, %366 : vector<8x128xf32>
    %368 = vector.broadcast %22 : vector<1x128xf32> to vector<8x128xf32>
    %369 = arith.addf %367, %368 : vector<8x128xf32>
    %370 = arith.negf %369 : vector<8x128xf32>
    %371 = math.exp %370 : vector<8x128xf32>
    %cst_108 = arith.constant 1.000000e+00 : f32
    %372 = vector.broadcast %cst_108 : f32 to vector<8x128xf32>
    %373 = arith.addf %372, %371 : vector<8x128xf32>
    %374 = arith.divf %372, %373 : vector<8x128xf32>
    %375 = math.tanh %369 : vector<8x128xf32>
    %376 = vector.extract_strided_slice %374 {offsets = [0, 0], sizes = [8, 32], strides = [1, 1]} : vector<8x128xf32> to vector<8x32xf32>
    %377 = vector.extract_strided_slice %374 {offsets = [0, 32], sizes = [8, 32], strides = [1, 1]} : vector<8x128xf32> to vector<8x32xf32>
    %378 = vector.extract_strided_slice %375 {offsets = [0, 64], sizes = [8, 32], strides = [1, 1]} : vector<8x128xf32> to vector<8x32xf32>
    %379 = vector.extract_strided_slice %374 {offsets = [0, 96], sizes = [8, 32], strides = [1, 1]} : vector<8x128xf32> to vector<8x32xf32>
    %380 = arith.mulf %377, %323 : vector<8x32xf32>
    %381 = arith.mulf %376, %378 : vector<8x32xf32>
    %382 = arith.addf %380, %381 : vector<8x32xf32>
    %383 = math.tanh %382 : vector<8x32xf32>
    %384 = arith.mulf %379, %383 : vector<8x32xf32>
    %c32_109 = arith.constant 32 : index
    %c0_110 = arith.constant 0 : index
    %385 = vector.load %arg12[%c32_109, %c0_110] : memref<64x32xf32, #tpu.memory_space<vmem>>, vector<8x32xf32>
    tpu.vector_store %arg12[%c32_109, %c0_110], %384 {strides = array<i32>} : memref<64x32xf32, #tpu.memory_space<vmem>>, vector<8x32xf32>,
    %c56 = arith.constant 56 : index
    %c0_111 = arith.constant 0 : index
    %386 = vector.load %arg11[%c56, %c0_111] : memref<64x128xf32, #tpu.memory_space<vmem>>, vector<8x128xf32>
    %cst_112 = arith.constant dense<0.000000e+00> : vector<8x128xf32>
    %387 = tpu.matmul %344, %14, %cst_112 {dimension_numbers = #tpu.dot_dimension_numbers<[1], [0], [0], [1], [0, 0, 1, 1], [], []>} : vector<8x32xf32>, vector<32x128xf32>, vector<8x128xf32> -> vector<8x128xf32>
    %388 = arith.addf %386, %387 : vector<8x128xf32>
    %389 = arith.negf %388 : vector<8x128xf32>
    %390 = math.exp %389 : vector<8x128xf32>
    %cst_113 = arith.constant 1.000000e+00 : f32
    %391 = vector.broadcast %cst_113 : f32 to vector<8x128xf32>
    %392 = arith.addf %391, %390 : vector<8x128xf32>
    %393 = arith.divf %391, %392 : vector<8x128xf32>
    %394 = math.tanh %388 : vector<8x128xf32>
    %395 = vector.extract_strided_slice %393 {offsets = [0, 0], sizes = [8, 32], strides = [1, 1]} : vector<8x128xf32> to vector<8x32xf32>
    %396 = vector.extract_strided_slice %393 {offsets = [0, 32], sizes = [8, 32], strides = [1, 1]} : vector<8x128xf32> to vector<8x32xf32>
    %397 = vector.extract_strided_slice %394 {offsets = [0, 64], sizes = [8, 32], strides = [1, 1]} : vector<8x128xf32> to vector<8x32xf32>
    %398 = vector.extract_strided_slice %393 {offsets = [0, 96], sizes = [8, 32], strides = [1, 1]} : vector<8x128xf32> to vector<8x32xf32>
    %399 = arith.mulf %396, %342 : vector<8x32xf32>
    %400 = arith.mulf %395, %397 : vector<8x32xf32>
    %401 = arith.addf %399, %400 : vector<8x32xf32>
    %402 = math.tanh %401 : vector<8x32xf32>
    %403 = arith.mulf %398, %402 : vector<8x32xf32>
    %cst_114 = arith.constant dense<0.000000e+00> : vector<8x128xf32>
    %404 = tpu.matmul %344, %10, %cst_114 {dimension_numbers = #tpu.dot_dimension_numbers<[1], [0], [0], [1], [0, 0, 1, 1], [], []>} : vector<8x32xf32>, vector<32x128xf32>, vector<8x128xf32> -> vector<8x128xf32>
    %cst_115 = arith.constant dense<0.000000e+00> : vector<8x128xf32>
    %405 = tpu.matmul %364, %16, %cst_115 {dimension_numbers = #tpu.dot_dimension_numbers<[1], [0], [0], [1], [0, 0, 1, 1], [], []>} : vector<8x32xf32>, vector<32x128xf32>, vector<8x128xf32> -> vector<8x128xf32>
    %406 = arith.addf %404, %405 : vector<8x128xf32>
    %407 = vector.broadcast %20 : vector<1x128xf32> to vector<8x128xf32>
    %408 = arith.addf %406, %407 : vector<8x128xf32>
    %409 = arith.negf %408 : vector<8x128xf32>
    %410 = math.exp %409 : vector<8x128xf32>
    %cst_116 = arith.constant 1.000000e+00 : f32
    %411 = vector.broadcast %cst_116 : f32 to vector<8x128xf32>
    %412 = arith.addf %411, %410 : vector<8x128xf32>
    %413 = arith.divf %411, %412 : vector<8x128xf32>
    %414 = math.tanh %408 : vector<8x128xf32>
    %415 = vector.extract_strided_slice %413 {offsets = [0, 0], sizes = [8, 32], strides = [1, 1]} : vector<8x128xf32> to vector<8x32xf32>
    %416 = vector.extract_strided_slice %413 {offsets = [0, 32], sizes = [8, 32], strides = [1, 1]} : vector<8x128xf32> to vector<8x32xf32>
    %417 = vector.extract_strided_slice %414 {offsets = [0, 64], sizes = [8, 32], strides = [1, 1]} : vector<8x128xf32> to vector<8x32xf32>
    %418 = vector.extract_strided_slice %413 {offsets = [0, 96], sizes = [8, 32], strides = [1, 1]} : vector<8x128xf32> to vector<8x32xf32>
    %419 = arith.mulf %416, %362 : vector<8x32xf32>
    %420 = arith.mulf %415, %417 : vector<8x32xf32>
    %421 = arith.addf %419, %420 : vector<8x32xf32>
    %422 = math.tanh %421 : vector<8x32xf32>
    %423 = arith.mulf %418, %422 : vector<8x32xf32>
    %cst_117 = arith.constant dense<0.000000e+00> : vector<8x128xf32>
    %424 = tpu.matmul %364, %12, %cst_117 {dimension_numbers = #tpu.dot_dimension_numbers<[1], [0], [0], [1], [0, 0, 1, 1], [], []>} : vector<8x32xf32>, vector<32x128xf32>, vector<8x128xf32> -> vector<8x128xf32>
    %cst_118 = arith.constant dense<0.000000e+00> : vector<8x128xf32>
    %425 = tpu.matmul %384, %18, %cst_118 {dimension_numbers = #tpu.dot_dimension_numbers<[1], [0], [0], [1], [0, 0, 1, 1], [], []>} : vector<8x32xf32>, vector<32x128xf32>, vector<8x128xf32> -> vector<8x128xf32>
    %426 = arith.addf %424, %425 : vector<8x128xf32>
    %427 = vector.broadcast %22 : vector<1x128xf32> to vector<8x128xf32>
    %428 = arith.addf %426, %427 : vector<8x128xf32>
    %429 = arith.negf %428 : vector<8x128xf32>
    %430 = math.exp %429 : vector<8x128xf32>
    %cst_119 = arith.constant 1.000000e+00 : f32
    %431 = vector.broadcast %cst_119 : f32 to vector<8x128xf32>
    %432 = arith.addf %431, %430 : vector<8x128xf32>
    %433 = arith.divf %431, %432 : vector<8x128xf32>
    %434 = math.tanh %428 : vector<8x128xf32>
    %435 = vector.extract_strided_slice %433 {offsets = [0, 0], sizes = [8, 32], strides = [1, 1]} : vector<8x128xf32> to vector<8x32xf32>
    %436 = vector.extract_strided_slice %433 {offsets = [0, 32], sizes = [8, 32], strides = [1, 1]} : vector<8x128xf32> to vector<8x32xf32>
    %437 = vector.extract_strided_slice %434 {offsets = [0, 64], sizes = [8, 32], strides = [1, 1]} : vector<8x128xf32> to vector<8x32xf32>
    %438 = vector.extract_strided_slice %433 {offsets = [0, 96], sizes = [8, 32], strides = [1, 1]} : vector<8x128xf32> to vector<8x32xf32>
    %439 = arith.mulf %436, %382 : vector<8x32xf32>
    %440 = arith.mulf %435, %437 : vector<8x32xf32>
    %441 = arith.addf %439, %440 : vector<8x32xf32>
    %442 = math.tanh %441 : vector<8x32xf32>
    %443 = arith.mulf %438, %442 : vector<8x32xf32>
    %c40_120 = arith.constant 40 : index
    %c0_121 = arith.constant 0 : index
    %444 = vector.load %arg12[%c40_120, %c0_121] : memref<64x32xf32, #tpu.memory_space<vmem>>, vector<8x32xf32>
    tpu.vector_store %arg12[%c40_120, %c0_121], %443 {strides = array<i32>} : memref<64x32xf32, #tpu.memory_space<vmem>>, vector<8x32xf32>,
    %cst_122 = arith.constant dense<0.000000e+00> : vector<8x128xf32>
    %445 = tpu.matmul %403, %10, %cst_122 {dimension_numbers = #tpu.dot_dimension_numbers<[1], [0], [0], [1], [0, 0, 1, 1], [], []>} : vector<8x32xf32>, vector<32x128xf32>, vector<8x128xf32> -> vector<8x128xf32>
    %cst_123 = arith.constant dense<0.000000e+00> : vector<8x128xf32>
    %446 = tpu.matmul %423, %16, %cst_123 {dimension_numbers = #tpu.dot_dimension_numbers<[1], [0], [0], [1], [0, 0, 1, 1], [], []>} : vector<8x32xf32>, vector<32x128xf32>, vector<8x128xf32> -> vector<8x128xf32>
    %447 = arith.addf %445, %446 : vector<8x128xf32>
    %448 = vector.broadcast %20 : vector<1x128xf32> to vector<8x128xf32>
    %449 = arith.addf %447, %448 : vector<8x128xf32>
    %450 = arith.negf %449 : vector<8x128xf32>
    %451 = math.exp %450 : vector<8x128xf32>
    %cst_124 = arith.constant 1.000000e+00 : f32
    %452 = vector.broadcast %cst_124 : f32 to vector<8x128xf32>
    %453 = arith.addf %452, %451 : vector<8x128xf32>
    %454 = arith.divf %452, %453 : vector<8x128xf32>
    %455 = math.tanh %449 : vector<8x128xf32>
    %456 = vector.extract_strided_slice %454 {offsets = [0, 0], sizes = [8, 32], strides = [1, 1]} : vector<8x128xf32> to vector<8x32xf32>
    %457 = vector.extract_strided_slice %454 {offsets = [0, 32], sizes = [8, 32], strides = [1, 1]} : vector<8x128xf32> to vector<8x32xf32>
    %458 = vector.extract_strided_slice %455 {offsets = [0, 64], sizes = [8, 32], strides = [1, 1]} : vector<8x128xf32> to vector<8x32xf32>
    %459 = vector.extract_strided_slice %454 {offsets = [0, 96], sizes = [8, 32], strides = [1, 1]} : vector<8x128xf32> to vector<8x32xf32>
    %460 = arith.mulf %457, %421 : vector<8x32xf32>
    %461 = arith.mulf %456, %458 : vector<8x32xf32>
    %462 = arith.addf %460, %461 : vector<8x32xf32>
    %463 = math.tanh %462 : vector<8x32xf32>
    %464 = arith.mulf %459, %463 : vector<8x32xf32>
    %cst_125 = arith.constant dense<0.000000e+00> : vector<8x128xf32>
    %465 = tpu.matmul %423, %12, %cst_125 {dimension_numbers = #tpu.dot_dimension_numbers<[1], [0], [0], [1], [0, 0, 1, 1], [], []>} : vector<8x32xf32>, vector<32x128xf32>, vector<8x128xf32> -> vector<8x128xf32>
    %cst_126 = arith.constant dense<0.000000e+00> : vector<8x128xf32>
    %466 = tpu.matmul %443, %18, %cst_126 {dimension_numbers = #tpu.dot_dimension_numbers<[1], [0], [0], [1], [0, 0, 1, 1], [], []>} : vector<8x32xf32>, vector<32x128xf32>, vector<8x128xf32> -> vector<8x128xf32>
    %467 = arith.addf %465, %466 : vector<8x128xf32>
    %468 = vector.broadcast %22 : vector<1x128xf32> to vector<8x128xf32>
    %469 = arith.addf %467, %468 : vector<8x128xf32>
    %470 = arith.negf %469 : vector<8x128xf32>
    %471 = math.exp %470 : vector<8x128xf32>
    %cst_127 = arith.constant 1.000000e+00 : f32
    %472 = vector.broadcast %cst_127 : f32 to vector<8x128xf32>
    %473 = arith.addf %472, %471 : vector<8x128xf32>
    %474 = arith.divf %472, %473 : vector<8x128xf32>
    %475 = math.tanh %469 : vector<8x128xf32>
    %476 = vector.extract_strided_slice %474 {offsets = [0, 0], sizes = [8, 32], strides = [1, 1]} : vector<8x128xf32> to vector<8x32xf32>
    %477 = vector.extract_strided_slice %474 {offsets = [0, 32], sizes = [8, 32], strides = [1, 1]} : vector<8x128xf32> to vector<8x32xf32>
    %478 = vector.extract_strided_slice %475 {offsets = [0, 64], sizes = [8, 32], strides = [1, 1]} : vector<8x128xf32> to vector<8x32xf32>
    %479 = vector.extract_strided_slice %474 {offsets = [0, 96], sizes = [8, 32], strides = [1, 1]} : vector<8x128xf32> to vector<8x32xf32>
    %480 = arith.mulf %477, %441 : vector<8x32xf32>
    %481 = arith.mulf %476, %478 : vector<8x32xf32>
    %482 = arith.addf %480, %481 : vector<8x32xf32>
    %483 = math.tanh %482 : vector<8x32xf32>
    %484 = arith.mulf %479, %483 : vector<8x32xf32>
    %c48_128 = arith.constant 48 : index
    %c0_129 = arith.constant 0 : index
    %485 = vector.load %arg12[%c48_128, %c0_129] : memref<64x32xf32, #tpu.memory_space<vmem>>, vector<8x32xf32>
    tpu.vector_store %arg12[%c48_128, %c0_129], %484 {strides = array<i32>} : memref<64x32xf32, #tpu.memory_space<vmem>>, vector<8x32xf32>,
    %cst_130 = arith.constant dense<0.000000e+00> : vector<8x128xf32>
    %486 = tpu.matmul %464, %12, %cst_130 {dimension_numbers = #tpu.dot_dimension_numbers<[1], [0], [0], [1], [0, 0, 1, 1], [], []>} : vector<8x32xf32>, vector<32x128xf32>, vector<8x128xf32> -> vector<8x128xf32>
    %cst_131 = arith.constant dense<0.000000e+00> : vector<8x128xf32>
    %487 = tpu.matmul %484, %18, %cst_131 {dimension_numbers = #tpu.dot_dimension_numbers<[1], [0], [0], [1], [0, 0, 1, 1], [], []>} : vector<8x32xf32>, vector<32x128xf32>, vector<8x128xf32> -> vector<8x128xf32>
    %488 = arith.addf %486, %487 : vector<8x128xf32>
    %489 = vector.broadcast %22 : vector<1x128xf32> to vector<8x128xf32>
    %490 = arith.addf %488, %489 : vector<8x128xf32>
    %491 = arith.negf %490 : vector<8x128xf32>
    %492 = math.exp %491 : vector<8x128xf32>
    %cst_132 = arith.constant 1.000000e+00 : f32
    %493 = vector.broadcast %cst_132 : f32 to vector<8x128xf32>
    %494 = arith.addf %493, %492 : vector<8x128xf32>
    %495 = arith.divf %493, %494 : vector<8x128xf32>
    %496 = math.tanh %490 : vector<8x128xf32>
    %497 = vector.extract_strided_slice %495 {offsets = [0, 0], sizes = [8, 32], strides = [1, 1]} : vector<8x128xf32> to vector<8x32xf32>
    %498 = vector.extract_strided_slice %495 {offsets = [0, 32], sizes = [8, 32], strides = [1, 1]} : vector<8x128xf32> to vector<8x32xf32>
    %499 = vector.extract_strided_slice %496 {offsets = [0, 64], sizes = [8, 32], strides = [1, 1]} : vector<8x128xf32> to vector<8x32xf32>
    %500 = vector.extract_strided_slice %495 {offsets = [0, 96], sizes = [8, 32], strides = [1, 1]} : vector<8x128xf32> to vector<8x32xf32>
    %501 = arith.mulf %498, %482 : vector<8x32xf32>
    %502 = arith.mulf %497, %499 : vector<8x32xf32>
    %503 = arith.addf %501, %502 : vector<8x32xf32>
    %504 = math.tanh %503 : vector<8x32xf32>
    %505 = arith.mulf %500, %504 : vector<8x32xf32>
    %c56_133 = arith.constant 56 : index
    %c0_134 = arith.constant 0 : index
    %506 = vector.load %arg12[%c56_133, %c0_134] : memref<64x32xf32, #tpu.memory_space<vmem>>, vector<8x32xf32>
    tpu.vector_store %arg12[%c56_133, %c0_134], %505 {strides = array<i32>} : memref<64x32xf32, #tpu.memory_space<vmem>>, vector<8x32xf32>,
    %c0_135 = arith.constant 0 : index
    %c0_136 = arith.constant 0 : index
    %c0_137 = arith.constant 0 : index
    %507 = vector.load %arg9[%c0_135, %c0_136, %c0_137] : memref<3x8x32xf32, #tpu.memory_space<vmem>>, vector<1x8x32xf32>
    %508 = vector.shape_cast %507 : vector<1x8x32xf32> to vector<8x32xf32>
    %509 = vector.shape_cast %403 : vector<8x32xf32> to vector<1x8x32xf32>
    tpu.vector_store %arg9[%c0_135, %c0_136, %c0_137], %509 {strides = array<i32>} : memref<3x8x32xf32, #tpu.memory_space<vmem>>, vector<1x8x32xf32>,
    %c0_138 = arith.constant 0 : index
    %c0_139 = arith.constant 0 : index
    %c0_140 = arith.constant 0 : index
    %510 = vector.load %arg10[%c0_138, %c0_139, %c0_140] : memref<3x8x32xf32, #tpu.memory_space<vmem>>, vector<1x8x32xf32>
    %511 = vector.shape_cast %510 : vector<1x8x32xf32> to vector<8x32xf32>
    %512 = vector.shape_cast %401 : vector<8x32xf32> to vector<1x8x32xf32>
    tpu.vector_store %arg10[%c0_138, %c0_139, %c0_140], %512 {strides = array<i32>} : memref<3x8x32xf32, #tpu.memory_space<vmem>>, vector<1x8x32xf32>,
    %c1_141 = arith.constant 1 : index
    %c0_142 = arith.constant 0 : index
    %c0_143 = arith.constant 0 : index
    %513 = vector.load %arg9[%c1_141, %c0_142, %c0_143] : memref<3x8x32xf32, #tpu.memory_space<vmem>>, vector<1x8x32xf32>
    %514 = vector.shape_cast %513 : vector<1x8x32xf32> to vector<8x32xf32>
    %515 = vector.shape_cast %464 : vector<8x32xf32> to vector<1x8x32xf32>
    tpu.vector_store %arg9[%c1_141, %c0_142, %c0_143], %515 {strides = array<i32>} : memref<3x8x32xf32, #tpu.memory_space<vmem>>, vector<1x8x32xf32>,
    %c1_144 = arith.constant 1 : index
    %c0_145 = arith.constant 0 : index
    %c0_146 = arith.constant 0 : index
    %516 = vector.load %arg10[%c1_144, %c0_145, %c0_146] : memref<3x8x32xf32, #tpu.memory_space<vmem>>, vector<1x8x32xf32>
    %517 = vector.shape_cast %516 : vector<1x8x32xf32> to vector<8x32xf32>
    %518 = vector.shape_cast %462 : vector<8x32xf32> to vector<1x8x32xf32>
    tpu.vector_store %arg10[%c1_144, %c0_145, %c0_146], %518 {strides = array<i32>} : memref<3x8x32xf32, #tpu.memory_space<vmem>>, vector<1x8x32xf32>,
    %c2_147 = arith.constant 2 : index
    %c0_148 = arith.constant 0 : index
    %c0_149 = arith.constant 0 : index
    %519 = vector.load %arg9[%c2_147, %c0_148, %c0_149] : memref<3x8x32xf32, #tpu.memory_space<vmem>>, vector<1x8x32xf32>
    %520 = vector.shape_cast %519 : vector<1x8x32xf32> to vector<8x32xf32>
    %521 = vector.shape_cast %505 : vector<8x32xf32> to vector<1x8x32xf32>
    tpu.vector_store %arg9[%c2_147, %c0_148, %c0_149], %521 {strides = array<i32>} : memref<3x8x32xf32, #tpu.memory_space<vmem>>, vector<1x8x32xf32>,
    %c2_150 = arith.constant 2 : index
    %c0_151 = arith.constant 0 : index
    %c0_152 = arith.constant 0 : index
    %522 = vector.load %arg10[%c2_150, %c0_151, %c0_152] : memref<3x8x32xf32, #tpu.memory_space<vmem>>, vector<1x8x32xf32>
    %523 = vector.shape_cast %522 : vector<1x8x32xf32> to vector<8x32xf32>
    %524 = vector.shape_cast %503 : vector<8x32xf32> to vector<1x8x32xf32>
    tpu.vector_store %arg10[%c2_150, %c0_151, %c0_152], %524 {strides = array<i32>} : memref<3x8x32xf32, #tpu.memory_space<vmem>>, vector<1x8x32xf32>,
    %c0_153 = arith.constant 0 : index
    %c0_154 = arith.constant 0 : index
    %525 = vector.load %arg12[%c0_153, %c0_154] : memref<64x32xf32, #tpu.memory_space<vmem>>, vector<64x32xf32>
    %c0_155 = arith.constant 0 : index
    %c0_156 = arith.constant 0 : index
    %526 = vector.load %arg6[%c0_155, %c0_156] : memref<32x8xf32, #tpu.memory_space<vmem>>, vector<32x8xf32>
    %cst_157 = arith.constant dense<0.000000e+00> : vector<64x8xf32>
    %527 = tpu.matmul %525, %526, %cst_157 {dimension_numbers = #tpu.dot_dimension_numbers<[1], [0], [0], [1], [0, 0, 1, 1], [], []>} : vector<64x32xf32>, vector<32x8xf32>, vector<64x8xf32> -> vector<64x8xf32>
    %c0_158 = arith.constant 0 : index
    %c0_159 = arith.constant 0 : index
    %528 = vector.load %arg7[%c0_158, %c0_159] : memref<1x8xf32, #tpu.memory_space<vmem>>, vector<1x8xf32>
    %529 = vector.broadcast %528 : vector<1x8xf32> to vector<64x8xf32>
    %530 = arith.addf %527, %529 : vector<64x8xf32>
    %c0_160 = arith.constant 0 : index
    %c0_161 = arith.constant 0 : index
    %531 = vector.load %arg8[%c0_160, %c0_161] : memref<64x8xf32, #tpu.memory_space<vmem>>, vector<64x8xf32>
    tpu.vector_store %arg8[%c0_160, %c0_161], %530 {strides = array<i32>} : memref<64x8xf32, #tpu.memory_space<vmem>>, vector<64x8xf32>,
    return
  }
}

</mosaic_0001>

<bundles_post_ra>
// kernel: lstm_forward.1
= control target key start
LH: loop header
LB: loop body
LE: loop exit
PB: predicated region body
PF: predicated region fallthrough
CT: control target
= control target key end

     0   :  { %vm51_vm0 = vcmask 261120   ;;  %v5037_v8 = vmov 0.0   ;;  %vm5038_vm1 = vmmov 0   ;;  %s5039_s25 = smov 64   ;;  %s5040_s28 = smov 32   ;;  %vm3974_vm2 = vcmask 64512   ;;  %s6152_s1 = inlined_call_operand.vmem [shape: f32[3,32,128], index: 1, kind: input, shape index: {}]   ;;  %s6153_s0 = inlined_call_operand.vmem [shape: f32[64,32], index: 0, kind: input, shape index: {}]   ;;  %s6154_s2 = inlined_call_operand.vmem [shape: f32[3,32,128], index: 2, kind: input, shape index: {}]   ;;  %s6155_s4 = inlined_call_operand.vmem [shape: f32[3,8,32], index: 4, kind: input, shape index: {}]   ;;  %s6156_s3 = inlined_call_operand.vmem [shape: f32[3,1,128], index: 3, kind: input, shape index: {}]   ;;  %s6157_s5 = inlined_call_operand.vmem [shape: f32[3,8,32], index: 5, kind: input, shape index: {}]   ;;  %s6158_s9 = inlined_call_operand.vmem [shape: f32[3,8,32], index: 9, kind: output, shape index: {1}]   ;;  %s6159_s6 = inlined_call_operand.vmem [shape: f32[32,8], index: 6, kind: input, shape index: {}]   ;;  %s6160_s7 = inlined_call_operand.vmem [shape: f32[1,8], index: 7, kind: input, shape index: {}]   ;;  %s6161_s8 = inlined_call_operand.vmem [shape: f32[64,8], index: 8, kind: output, shape index: {0}]   ;;  %s6162_s10 = inlined_call_operand.vmem [shape: f32[3,8,32], index: 10, kind: output, shape index: {2}]  }
   0x1   :  { %v43_v0 = vld [vmem:[%s6152_s1 + $0x18] sm:$0xff]  ;;  %v42_v1 = vld [vmem:[%s6152_s1 + $0x10] sm:$0xff]  ;;  %v41_v2 = vld [vmem:[%s6152_s1 + $0x8] sm:$0xff] }
   0x2   :  { %4809 = vmatprep.subr.mxu1 %v43_v0  ;;  %4329 = vmatprep.subr.mxu0 %v43_v0  ;;  %v36_v3 = vld [vmem:[%s6153_s0 + $0x20] sm:$0xff]  ;;  %v37_v5 = vld [vmem:[%s6153_s0 + $0x28] sm:$0xff]  ;;  %v5119_v6 = vld [vmem:[%s6154_s2 + $0x18] sm:$0xff] }
   0x3   :  { %4813 = vmatpush3.msra.mxu1 %v43_v0  ;;  %4330 = vmatpush3.msra.mxu0 %v43_v0  ;;  %v40_v4 = vld [vmem:[%s6152_s1] sm:$0xff]  ;;  %v33_v9 = vld [vmem:[%s6153_s0 + $0x8] sm:$0xff]  ;;  %v38_v10 = vld [vmem:[%s6153_s0 + $0x30] sm:$0xff] }
   0x4   :  { %4810 = vmatprep.subr.mxu1 %v42_v1  ;;  %4331 = vmatprep.subr.mxu0 %v42_v1  ;;  %v32_v7 = vld [vmem:[%s6153_s0] sm:$0xff]  ;;  %v5136_v11 = vld [vmem:[%s6154_s2 + $0x10] sm:$0xff]  ;;  %v39_v12 = vld [vmem:[%s6153_s0 + $0x38] sm:$0xff] }
   0x5   :  { %4814 = vmatpush3.msra.mxu1 %v42_v1  ;;  %4332 = vmatpush3.msra.mxu0 %v42_v1  ;;  %v5148_v13 = vld [vmem:[%s6154_s2 + $0x8] sm:$0xff]  ;;  %v5157_v14 = vld [vmem:[%s6154_s2] sm:$0xff]  ;;  %v5207_v39 = vld [vmem:[%s6154_s2 + $0x38] sm:$0xff] }
   0x6   :  { %4811 = vmatprep.subr.mxu1 %v41_v2  ;;  %4333 = vmatprep.subr.mxu0 %v41_v2  ;;  %v217_v15 = vld [vmem:[%s6155_s4] sm:$0xff]  ;;  %v34_v41 = vld [vmem:[%s6153_s0 + $0x10] sm:$0xff]  ;;  %v35_v43 = vld [vmem:[%s6153_s0 + $0x18] sm:$0xff] }
   0x7   :  { %4815 = vmatpush3.msra.mxu1 %v41_v2  ;;  %4343 = vmatprep.mubr.msk.f32.mxu1 %vm51_vm0, %v36_v3  ;;  %v5190_v21 = vld [vmem:[%s6156_s3] ss:$0 sm:$0xff]  ;;  %v5218_v42 = vld [vmem:[%s6154_s2 + $0x30] sm:$0xff]  ;;  %v5230_v44 = vld [vmem:[%s6154_s2 + $0x28] sm:$0xff] }
   0x8   :  { %4812 = vmatprep.subr.mxu1 %v40_v4  ;;  %4334 = vmatpush3.msra.mxu0 %v41_v2  ;;  %v222_v28 = vld [vmem:[%s6157_s5] sm:$0xff]  ;;  %v4022_v46 = vld [vmem:[%s6155_s4 + $0x8] sm:$0xff]  ;;  %v5261_v49 = vld [vmem:[%s6152_s1 + $0x38] sm:$0xff] }
   0x9   :  { %4816 = vmatpush3.msra.mxu1 %v40_v4  ;;  %4335 = vmatprep.subr.mxu0 %v40_v4  ;;  %v5239_v45 = vld [vmem:[%s6154_s2 + $0x20] sm:$0xff]  ;;  %v5267_v51 = vld [vmem:[%s6152_s1 + $0x30] sm:$0xff]  ;;  %v5276_v52 = vld [vmem:[%s6152_s1 + $0x28] sm:$0xff] }
   0xa   :  { %4344 = vmatmul.mubr.msk.f32.vlgmr.msra.gmra.mxu1 %vm51_vm0, %v37_v5  ;;  %4349 = vmatprep.subr.mxu1 %v5037_v8  ;;  %v5283_v53 = vld [vmem:[%s6152_s1 + $0x20] sm:$0xff]  ;;  %v4024_v5 = vld [vmem:[%s6157_s5 + $0x8] sm:$0xff] }
   0xb   :  { %4350 = vmatpush3.msra.mxu1 %v5119_v6  ;;  %4336 = vmatpush3.msra.mxu0 %v40_v4  ;;  %v5309_v62 = vld [vmem:[%s6156_s3 + $0x1] ss:$0 sm:$0xff] }
   0xc   :  { %4337 = vmatprep.mubr.msk.f32.mxu0 %vm51_vm0, %v32_v7  ;;  %4351 = vmatprep.subr.mxu1 %v5037_v8 }
   0xd   :  { %4338 = vmatmul.mubr.msk.f32.vlgmr.msra.gmra.mxu0 %vm51_vm0, %v33_v9  ;;  %4346 = vmatprep.mubr.msk.f32.mxu1 %vm51_vm0, %v38_v10 }
   0xe   :  { %4352 = vmatpush3.msra.mxu1 %v5136_v11  ;;  %4371 = vmatprep.subr.mxu0 %v5037_v8 }
   0xf   :  { %4347 = vmatmul.mubr.msk.f32.gmra.mxu1 %vm51_vm0, %v39_v12  ;;  %4353 = vmatprep.subr.mxu1 %v5037_v8 }
  0x10   :  { %4354 = vmatpush3.msra.mxu1 %v5148_v13  ;;  %4357 = vmatprep.mubr.msk.f32.mxu1 %vm5038_vm1, %v5037_v8 }
  0x11   :  { %4355 = vmatprep.subr.mxu1 %v5037_v8  ;;  %4372 = vmatpush3.msra.mxu0 %v5207_v39 }
  0x12   :  { %4356 = vmatpush3.msra.mxu1 %v5157_v14  ;;  %4373 = vmatprep.subr.mxu0 %v5037_v8 }
  0x13   :  { %4358 = vmatmul.mubr.msk.f32.vlgmr.msra.gmra.mxu1 %vm51_vm0, %v217_v15  ;;  %4360 = vmatprep.subr.mxu1 %v5037_v8 }
  0x14   :  { %4361 = vmatpush3.msra.mxu1 %v5119_v6  ;;  %4368 = vmatprep.mubr.msk.f32.mxu1 %vm5038_vm1, %v5037_v8 }
  0x15   :  { %4362 = vmatprep.subr.mxu1 %v5037_v8  ;;  %4340 = vmatprep.mubr.msk.f32.mxu0 %vm51_vm0, %v34_v41 }
  0x16   :  { %4363 = vmatpush3.msra.mxu1 %v5136_v11  ;;  %4374 = vmatpush3.msra.mxu0 %v5218_v42 }
  0x17   :  { %4364 = vmatprep.subr.mxu1 %v5037_v8  ;;  %4341 = vmatmul.mubr.msk.f32.gmra.mxu0 %vm51_vm0, %v35_v43 }
  0x18   :  { %4365 = vmatpush3.msra.mxu1 %v5148_v13  ;;  %4375 = vmatprep.subr.mxu0 %v5037_v8 }
  0x19   :  { %4366 = vmatprep.subr.mxu1 %v5037_v8  ;;  %4376 = vmatpush3.msra.mxu0 %v5230_v44 }
  0x1a   :  { %4367 = vmatpush3.msra.mxu1 %v5157_v14  ;;  %4379 = vmatprep.mubr.msk.f32.mxu0 %vm5038_vm1, %v5037_v8 }
  0x1b   :  { %4382 = vmatprep.subr.mxu1 %v5037_v8  ;;  %4377 = vmatprep.subr.mxu0 %v5037_v8 }
  0x1c   :  { %4378 = vmatpush3.msra.mxu0 %v5239_v45 }
  0x1d   :  { %4380 = vmatmul.mubr.msk.f32.vlgmr.msra.gmra.mxu0 %vm51_vm0, %v4022_v46  ;;  %4393 = vmatprep.subr.mxu0 %v5037_v8  ;;  %v5343_v46 = vld [vmem:[%s6152_s1 + $0x58] sm:$0xff] }
  0x1e   :  { %4394 = vmatpush3.msra.mxu0 %v5119_v6  ;;  %4401 = vmatprep.mubr.msk.f32.mxu0 %vm5038_vm1, %v5037_v8 }
  0x1f   :  { %4395 = vmatprep.subr.mxu0 %v5037_v8 }
  0x20   :  { %4396 = vmatpush3.msra.mxu0 %v5136_v11 }
  0x21   :  { %4397 = vmatprep.subr.mxu0 %v5037_v8 }
  0x22   :  { %4398 = vmatpush3.msra.mxu0 %v5148_v13 }
  0x23   :  { %4399 = vmatprep.subr.mxu0 %v5037_v8 }
  0x24   :  { %4400 = vmatpush3.msra.mxu0 %v5157_v14 }
  0x25   :  { %4415 = vmatprep.subr.mxu0 %v5037_v8 }
  0xca   :  { %v5179_v16 = vpop.f32.mrf.mxu1 }
  0xcc   :  { %v5181_v17 = vpop.f32.mrf.mxu1 }
  0xcd   :  { %v5183_v18 = vpop.f32.mrf.mxu0 }
  0xce   :  { %v148_v58 = vadd.f32 %v5183_v18, %v5190_v21 }
  0xcf   :  { %v5185_v19 = vpop.f32.mrf.mxu1  ;;  %v142_v20 = vpop.f32.mrf.mxu0 }
  0xd0   :  { %v143_v23 = vadd.f32 %v5190_v21, %v142_v20 }
  0xd1   :  { %v5192_v22 = vpop.f32.mrf.mxu1 }
  0xd3   :  { %v297_v24 = vpop.f32.mrf.mxu1 }
  0xd4   :  { %v301_v25 = vadd.f32 %v297_v24, %v143_v23 }
  0xd5   :  { %v4359_v26 = vpop.f32.mrf.mxu1 }
  0xd6   :  { %4822 = vtanh.f32 %v301_v25  ;;  %v4027_v29 = vmul.f32 -1.442695, %v301_v25 }
  0xd7   :  { %v5300_v54 = vpop.f32.mrf.mxu0 }
  0xd8   :  { %4824 = vpow2.f32 %v4027_v29 }
  0xd9   :  { %v5302_v55 = vpop.f32.mrf.mxu0 }
  0xdd   :  { %v500_v56 = vpop.f32.mrf.mxu0 }
  0xdf   :  { %v4381_v57 = vpop.f32.mrf.mxu0 }
  0xe0   :  { %v5371_v57 = vld [vmem:[%s6152_s1 + $0x48] sm:$0xff] }
  0xe3   :  { %v4823_v27 = vpop.eup %4822 }
  0xe4   :  { %315 = vrot.lane.b32.xlu0 %v4823_v27, %s5039_s25 }
  0xe5   :  { %v4825_v30 = vpop.eup %4824 }
  0xe6   :  { %v305_v31 = vadd.f32 1.0, %v4825_v30 }
  0xe8   :  { %310 = vrot.lane.b32.xlu0 %v222_v28, %s5040_s28  ;;  %4826 = vrcp.f32 %v305_v31 }
  0xf5   :  { %v4827_v32 = vpop.eup %4826 }
 0x156   :  { %v316_v33 = vpop.permute.xlu0 %315 }
 0x157   :  { %v318_v34 = vmul.f32 %v4827_v32, %v316_v33 }
 0x159   :  { %320 = vrot.lane.b32.xlu1 %v318_v34, %s5040_s28 }
 0x15a   :  { %v311_v35 = vpop.permute.xlu0 %310 }
 0x15b   :  { %v313_v36 = vmul.f32 %v4827_v32, %v311_v35 }
 0x1cb   :  { %v321_v37 = vpop.permute.xlu1 %320 }
 0x1cc   :  { %v5201_v38 = vadd.f32 %v321_v37, %v313_v36 }
 0x1ce   :  { %4828 = vtanh.f32 %v5201_v38 }
 0x1db   :  { %v4829_v40 = vpop.eup %4828 }
 0x1dc   :  { %326 = vrot.lane.b32.xlu1 %v4829_v40, %s5039_s25 }
 0x24e   :  { %v327_v47 = vpop.permute.xlu1 %326 }
 0x24f   :  { %v329_v48 = vmul.f32 %v4827_v32, %v327_v47  ;;  %v5351_v47 = vld [vmem:[%s6154_s2 + $0x58] sm:$0xff] }
 0x251   :  { %332 = vrot.lane.b32.xlu0 %v329_v48, %s5040_s28  ;;  %v5356_v48 = vld [vmem:[%s6152_s1 + $0x50] sm:$0xff] }
 0x2c3   :  { %v333_v50 = vpop.permute.xlu0 %332 }
 0x2c4   :  { %4369 = vmatmul.mubr.msk.f32.vlgmr.msra.gmra.mxu1 %vm51_vm0, %v333_v50 }
 0x2c5   :  { %4383 = vmatpush3.msra.mxu1 %v5261_v49  ;;  %4390 = vmatprep.mubr.msk.f32.mxu1 %vm5038_vm1, %v5037_v8 }
 0x2c6   :  { %4384 = vmatprep.subr.mxu1 %v5037_v8 }
 0x2c7   :  { %4385 = vmatpush3.msra.mxu1 %v5267_v51 }
 0x2c8   :  { %4386 = vmatprep.subr.mxu1 %v5037_v8 }
 0x2c9   :  { %4387 = vmatpush3.msra.mxu1 %v5276_v52 }
 0x2ca   :  { %4388 = vmatprep.subr.mxu1 %v5037_v8 }
 0x2cb   :  { %4389 = vmatpush3.msra.mxu1 %v5283_v53 }
 0x2cc   :  { %4391 = vmatmul.mubr.msk.f32.vlgmr.msra.gmra.mxu1 %vm51_vm0, %v333_v50  ;;  %4404 = vmatprep.subr.mxu1 %v5037_v8 }
 0x2cd   :  { %4405 = vmatpush3.msra.mxu1 %v5207_v39  ;;  %4412 = vmatprep.mubr.msk.f32.mxu1 %vm5038_vm1, %v5037_v8 }
 0x2ce   :  { %4406 = vmatprep.subr.mxu1 %v5037_v8 }
 0x2cf   :  { %4407 = vmatpush3.msra.mxu1 %v5218_v42 }
 0x2d0   :  { %4408 = vmatprep.subr.mxu1 %v5037_v8 }
 0x2d1   :  { %4409 = vmatpush3.msra.mxu1 %v5230_v44 }
 0x2d2   :  { %4410 = vmatprep.subr.mxu1 %v5037_v8 }
 0x2d3   :  { %4411 = vmatpush3.msra.mxu1 %v5239_v45 }
 0x2d4   :  { %4426 = vmatprep.subr.mxu1 %v5037_v8 }
 0x384   :  { %v402_v59 = vpop.f32.mrf.mxu1 }
 0x385   :  { %v406_v60 = vadd.f32 %v402_v59, %v148_v58  ;;  %v5380_v58 = vld [vmem:[%s6154_s2 + $0x48] sm:$0xff]  ;;  %v5385_v59 = vld [vmem:[%s6152_s1 + $0x40] sm:$0xff] }
 0x386   :  { %v4370_v61 = vpop.f32.mrf.mxu1 }
 0x387   :  { %4830 = vtanh.f32 %v406_v60  ;;  %v4029_v7 = vmul.f32 -1.442695, %v406_v60  ;;  %v5394_v60 = vld [vmem:[%s6154_s2 + $0x40] sm:$0xff]  ;;  %v4023_v61 = vld [vmem:[%s6155_s4 + $0x10] sm:$0xff] }
 0x38c   :  { %v570_v63 = vpop.f32.mrf.mxu1 }
 0x38d   :  { %v571_v0 = vadd.f32 %v570_v63, %v500_v56  ;;  %v5366_v56 = vld [vmem:[%s6154_s2 + $0x50] sm:$0xff]  ;;  %v153_v63 = vadd.f32 %v5190_v21, %v5302_v55  ;;  %v5436_v55 = vld [vmem:[%s6156_s3 + $0x2] ss:$0 sm:$0xff] }
 0x38e   :  { %v4392_v1 = vpop.f32.mrf.mxu1 }
 0x38f   :  { %v580_v2 = vadd.f32 %v5309_v62, %v571_v0 }
 0x391   :  { %4832 = vtanh.f32 %v580_v2  ;;  %v4033_v9 = vmul.f32 -1.442695, %v580_v2 }
 0x392   :  { %4834 = vpow2.f32 %v4029_v7 }
 0x393   :  { %4836 = vpow2.f32 %v4033_v9 }
 0x394   :  { %v4831_v3 = vpop.eup %4830 }
 0x395   :  { %416 = vrot.lane.b32.xlu1 %v4831_v3, %s5039_s25 }
 0x39e   :  { %v4833_v4 = vpop.eup %4832 }
 0x39f   :  { %594 = vrot.lane.b32.xlu0 %v4833_v4, %s5039_s25  ;;  %v4835_v10 = vpop.eup %4834 }
 0x3a0   :  { %v410_v12 = vadd.f32 1.0, %v4835_v10  ;;  %v4837_v15 = vpop.eup %4836 }
 0x3a1   :  { %v584_v18 = vadd.f32 1.0, %v4837_v15 }
 0x3a2   :  { %4838 = vrcp.f32 %v410_v12 }
 0x3a3   :  { %589 = vrot.lane.b32.xlu0 %v4024_v5, %s5040_s28  ;;  %4840 = vrcp.f32 %v584_v18 }
 0x3af   :  { %v4839_v20 = vpop.eup %4838 }
 0x3b0   :  { %v4841_v25 = vpop.eup %4840  ;;  %v414_v28 = vmul.f32 %v4839_v20, %v5201_v38 }
 0x407   :  { %v417_v23 = vpop.permute.xlu1 %416 }
 0x408   :  { %v419_v24 = vmul.f32 %v4839_v20, %v417_v23 }
 0x40a   :  { %421 = vrot.lane.b32.xlu1 %v419_v24, %s5040_s28 }
 0x411   :  { %v595_v26 = vpop.permute.xlu0 %594 }
 0x412   :  { %v597_v27 = vmul.f32 %v4841_v25, %v595_v26 }
 0x414   :  { %599 = vrot.lane.b32.xlu1 %v597_v27, %s5040_s28 }
 0x415   :  { %v590_v31 = vpop.permute.xlu0 %589 }
 0x416   :  { %v592_v32 = vmul.f32 %v4841_v25, %v590_v31 }
 0x47c   :  { %v422_v29 = vpop.permute.xlu1 %421 }
 0x47d   :  { %v5321_v30 = vadd.f32 %v422_v29, %v414_v28 }
 0x47f   :  { %4842 = vtanh.f32 %v5321_v30 }
 0x486   :  { %v600_v33 = vpop.permute.xlu1 %599 }
 0x487   :  { %v5324_v34 = vadd.f32 %v600_v33, %v592_v32 }
 0x489   :  { %4844 = vtanh.f32 %v5324_v34 }
 0x48c   :  { %v4843_v35 = vpop.eup %4842 }
 0x48d   :  { %427 = vrot.lane.b32.xlu0 %v4843_v35, %s5039_s25 }
 0x496   :  { %v4845_v36 = vpop.eup %4844 }
 0x497   :  { %605 = vrot.lane.b32.xlu1 %v4845_v36, %s5039_s25 }
 0x4ff   :  { %v428_v37 = vpop.permute.xlu0 %427 }
 0x500   :  { %v430_v38 = vmul.f32 %v4839_v20, %v428_v37 }
 0x502   :  { %611 = vrot.lane.b32.xlu0 %v430_v38, %s5040_s28 }
 0x509   :  { %v606_v40 = vpop.permute.xlu1 %605 }
 0x50a   :  { %v608_v41 = vmul.f32 %v4841_v25, %v606_v40 }
 0x50c   :  { %711 = vrot.lane.b32.xlu1 %v608_v41, %s5040_s28 }
 0x574   :  { %v612_v43 = vpop.permute.xlu0 %611 }
 0x575   :  { %4402 = vmatmul.mubr.msk.f32.vlgmr.msra.gmra.mxu0 %vm51_vm0, %v612_v43 }
 0x576   :  { %4416 = vmatpush3.msra.mxu0 %v5261_v49  ;;  %4423 = vmatprep.mubr.msk.f32.mxu0 %vm5038_vm1, %v5037_v8 }
 0x577   :  { %4417 = vmatprep.subr.mxu0 %v5037_v8 }
 0x578   :  { %4418 = vmatpush3.msra.mxu0 %v5267_v51 }
 0x579   :  { %4419 = vmatprep.subr.mxu0 %v5037_v8 }
 0x57a   :  { %4420 = vmatpush3.msra.mxu0 %v5276_v52 }
 0x57b   :  { %4421 = vmatprep.subr.mxu0 %v5037_v8 }
 0x57c   :  { %4422 = vmatpush3.msra.mxu0 %v5283_v53 }
 0x57d   :  { %4424 = vmatmul.mubr.msk.f32.vlgmr.msra.gmra.mxu0 %vm51_vm0, %v612_v43  ;;  %4437 = vmatprep.subr.mxu0 %v5037_v8 }
 0x57e   :  { %4438 = vmatpush3.msra.mxu0 %v5343_v46  ;;  %v712_v50 = vpop.permute.xlu1 %711  ;;  %4445 = vmatprep.mubr.msk.f32.mxu0 %vm5038_vm1, %v5037_v8 }
 0x57f   :  { %4413 = vmatmul.mubr.msk.f32.vlgmr.msra.gmra.mxu1 %vm51_vm0, %v712_v50  ;;  %4439 = vmatprep.subr.mxu0 %v5037_v8 }
 0x580   :  { %4427 = vmatpush3.msra.mxu1 %v5351_v47  ;;  %4440 = vmatpush3.msra.mxu0 %v5356_v48 }
 0x581   :  { %4428 = vmatprep.subr.mxu1 %v5037_v8  ;;  %4441 = vmatprep.subr.mxu0 %v5037_v8 }
 0x582   :  { %4429 = vmatpush3.msra.mxu1 %v5366_v56  ;;  %4442 = vmatpush3.msra.mxu0 %v5371_v57 }
 0x583   :  { %4430 = vmatprep.subr.mxu1 %v5037_v8  ;;  %4443 = vmatprep.subr.mxu0 %v5037_v8 }
 0x584   :  { %4431 = vmatpush3.msra.mxu1 %v5380_v58  ;;  %4444 = vmatpush3.msra.mxu0 %v5385_v59 }
 0x585   :  { %4432 = vmatprep.subr.mxu1 %v5037_v8  ;;  %4434 = vmatprep.mubr.msk.f32.mxu1 %vm5038_vm1, %v5037_v8 }
 0x586   :  { %4433 = vmatpush3.msra.mxu1 %v5394_v60  ;;  %4446 = vmatmul.mubr.msk.f32.vlgmr.msra.gmra.mxu0 %vm51_vm0, %v712_v50  ;;  %v4025_v50 = vld [vmem:[%s6157_s5 + $0x10] sm:$0xff] }
 0x587   :  { %4435 = vmatmul.mubr.msk.f32.vlgmr.msra.gmra.mxu1 %vm51_vm0, %v4023_v61  ;;  %4448 = vmatprep.subr.mxu1 %v5037_v8 }
 0x588   :  { %4449 = vmatpush3.msra.mxu1 %v5119_v6  ;;  %4456 = vmatprep.mubr.msk.f32.mxu1 %vm5038_vm1, %v5037_v8 }
 0x589   :  { %4450 = vmatprep.subr.mxu1 %v5037_v8  ;;  %4459 = vmatprep.subr.mxu0 %v5037_v8 }
 0x58a   :  { %4451 = vmatpush3.msra.mxu1 %v5136_v11  ;;  %4460 = vmatpush3.msra.mxu0 %v5207_v39 }
 0x58b   :  { %4452 = vmatprep.subr.mxu1 %v5037_v8  ;;  %4461 = vmatprep.subr.mxu0 %v5037_v8 }
 0x58c   :  { %4453 = vmatpush3.msra.mxu1 %v5148_v13  ;;  %4462 = vmatpush3.msra.mxu0 %v5218_v42 }
 0x58d   :  { %4454 = vmatprep.subr.mxu1 %v5037_v8  ;;  %4463 = vmatprep.subr.mxu0 %v5037_v8 }
 0x58e   :  { %4455 = vmatpush3.msra.mxu1 %v5157_v14  ;;  %4464 = vmatpush3.msra.mxu0 %v5230_v44 }
 0x58f   :  { %4470 = vmatprep.subr.mxu1 %v5037_v8  ;;  %4465 = vmatprep.subr.mxu0 %v5037_v8 }
 0x590   :  { %4466 = vmatpush3.msra.mxu0 %v5239_v45  ;;  %4467 = vmatprep.mubr.msk.f32.mxu0 %vm5038_vm1, %v5037_v8 }
 0x591   :  { %4481 = vmatprep.subr.mxu0 %v5037_v8 }
 0x635   :  { %v681_v0 = vpop.f32.mrf.mxu0 }
 0x636   :  { %v685_v1 = vadd.f32 %v681_v0, %v153_v63 }
 0x637   :  { %v4403_v2 = vpop.f32.mrf.mxu0 }
 0x638   :  { %4846 = vtanh.f32 %v685_v1  ;;  %v4035_v28 = vmul.f32 -1.442695, %v685_v1 }
 0x63d   :  { %v851_v3 = vpop.f32.mrf.mxu0 }
 0x63f   :  { %v781_v4 = vpop.f32.mrf.mxu1  ;;  %v4425_v5 = vpop.f32.mrf.mxu0 }
 0x640   :  { %v852_v7 = vadd.f32 %v851_v3, %v781_v4 }
 0x641   :  { %v4414_v9 = vpop.f32.mrf.mxu1 }
 0x642   :  { %v855_v10 = vadd.f32 %v5309_v62, %v852_v7 }
 0x644   :  { %4848 = vtanh.f32 %v855_v10  ;;  %v4038_v29 = vmul.f32 -1.442695, %v855_v10 }
 0x645   :  { %v4847_v12 = vpop.eup %4846 }
 0x646   :  { %v1019_v15 = vpop.f32.mrf.mxu0  ;;  %695 = vrot.lane.b32.xlu0 %v4847_v12, %s5039_s25 }
 0x647   :  { %v949_v18 = vpop.f32.mrf.mxu1 }
 0x648   :  { %v1020_v20 = vadd.f32 %v1019_v15, %v949_v18  ;;  %v4447_v23 = vpop.f32.mrf.mxu0 }
 0x649   :  { %v4436_v24 = vpop.f32.mrf.mxu1 }
 0x64a   :  { %v1029_v25 = vadd.f32 %v5436_v55, %v1020_v20 }
 0x64c   :  { %4850 = vtanh.f32 %v1029_v25  ;;  %v4042_v33 = vmul.f32 -1.442695, %v1029_v25 }
 0x64d   :  { %4852 = vpow2.f32 %v4035_v28 }
 0x64e   :  { %4854 = vpow2.f32 %v4038_v29 }
 0x651   :  { %v4849_v26 = vpop.eup %4848 }
 0x652   :  { %865 = vrot.lane.b32.xlu1 %v4849_v26, %s5039_s25 }
 0x659   :  { %v4851_v27 = vpop.eup %4850 }
 0x65a   :  { %1043 = vrot.lane.b32.xlu0 %v4851_v27, %s5039_s25  ;;  %v4853_v31 = vpop.eup %4852 }
 0x65b   :  { %v689_v32 = vadd.f32 1.0, %v4853_v31  ;;  %v4855_v35 = vpop.eup %4854 }
 0x65c   :  { %v859_v36 = vadd.f32 1.0, %v4855_v35 }
 0x65d   :  { %4856 = vrcp.f32 %v689_v32 }
 0x65e   :  { %4858 = vpow2.f32 %v4042_v33 }
 0x65f   :  { %4860 = vrcp.f32 %v859_v36  ;;  %v158_v36 = vadd.f32 %v5300_v54, %v5190_v21 }
 0x66a   :  { %v4857_v37 = vpop.eup %4856 }
 0x66b   :  { %v4859_v38 = vpop.eup %4858  ;;  %v693_v4 = vmul.f32 %v4857_v37, %v5321_v30 }
 0x66c   :  { %v1033_v43 = vadd.f32 1.0, %v4859_v38  ;;  %v4861_v61 = vpop.eup %4860 }
 0x66d   :  { %v863_v9 = vmul.f32 %v4861_v61, %v5324_v34 }
 0x66e   :  { %4862 = vrcp.f32 %v1033_v43 }
 0x67b   :  { %v4863_v1 = vpop.eup %4862 }
 0x6b8   :  { %v696_v40 = vpop.permute.xlu0 %695 }
 0x6b9   :  { %v698_v41 = vmul.f32 %v4857_v37, %v696_v40 }
 0x6bb   :  { %700 = vrot.lane.b32.xlu1 %v698_v41, %s5040_s28 }
 0x6bf   :  { %1038 = vrot.lane.b32.xlu1 %v4025_v50, %s5040_s28 }
 0x6c4   :  { %v866_v63 = vpop.permute.xlu1 %865 }
 0x6c5   :  { %v868_v0 = vmul.f32 %v4861_v61, %v866_v63 }
 0x6c7   :  { %870 = vrot.lane.b32.xlu0 %v868_v0, %s5040_s28 }
 0x6cc   :  { %v1044_v2 = vpop.permute.xlu0 %1043 }
 0x6cd   :  { %v1046_v3 = vmul.f32 %v4863_v1, %v1044_v2 }
 0x6cf   :  { %1048 = vrot.lane.b32.xlu0 %v1046_v3, %s5040_s28 }
 0x72d   :  { %v701_v5 = vpop.permute.xlu1 %700 }
 0x72e   :  { %v5449_v7 = vadd.f32 %v701_v5, %v693_v4 }
 0x730   :  { %4864 = vtanh.f32 %v5449_v7 }
 0x731   :  { %v1039_v18 = vpop.permute.xlu1 %1038 }
 0x732   :  { %v1041_v20 = vmul.f32 %v4863_v1, %v1039_v18 }
 0x739   :  { %v871_v10 = vpop.permute.xlu0 %870 }
 0x73a   :  { %v5453_v12 = vadd.f32 %v871_v10, %v863_v9 }
 0x73c   :  { %4866 = vtanh.f32 %v5453_v12 }
 0x73d   :  { %v4865_v15 = vpop.eup %4864 }
 0x73e   :  { %706 = vrot.lane.b32.xlu1 %v4865_v15, %s5039_s25 }
 0x741   :  { %v1049_v23 = vpop.permute.xlu0 %1048 }
 0x742   :  { %v5457_v24 = vadd.f32 %v1049_v23, %v1041_v20 }
 0x744   :  { %4868 = vtanh.f32 %v5457_v24 }
 0x749   :  { %v4867_v30 = vpop.eup %4866 }
 0x74a   :  { %876 = vrot.lane.b32.xlu0 %v4867_v30, %s5039_s25 }
 0x751   :  { %v4869_v25 = vpop.eup %4868 }
 0x752   :  { %1054 = vrot.lane.b32.xlu1 %v4869_v25, %s5039_s25 }
 0x7b0   :  { %v707_v34 = vpop.permute.xlu1 %706 }
 0x7b1   :  { %v709_v26 = vmul.f32 %v4857_v37, %v707_v34 }
 0x7b3   :  { %1065 = vrot.lane.b32.xlu0 %v709_v26, %s5040_s28 }
 0x7bc   :  { %v877_v27 = vpop.permute.xlu0 %876 }
 0x7bd   :  { %v879_v28 = vmul.f32 %v4861_v61, %v877_v27 }
 0x7bf   :  { %1165 = vrot.lane.b32.xlu1 %v879_v28, %s5040_s28 }
 0x7c4   :  { %v1055_v29 = vpop.permute.xlu1 %1054 }
 0x7c5   :  { %v1057_v31 = vmul.f32 %v4863_v1, %v1055_v29 }
 0x7c7   :  { %1059 = vrot.lane.b32.xlu0 %v1057_v31, %s5040_s28 }
 0x825   :  { %v1066_v32 = vpop.permute.xlu0 %1065 }
 0x826   :  { %4457 = vmatmul.mubr.msk.f32.vlgmr.msra.gmra.mxu1 %vm51_vm0, %v1066_v32 }
 0x827   :  { %4471 = vmatpush3.msra.mxu1 %v5261_v49  ;;  %4478 = vmatprep.mubr.msk.f32.mxu1 %vm5038_vm1, %v5037_v8 }
 0x828   :  { %4472 = vmatprep.subr.mxu1 %v5037_v8 }
 0x829   :  { %4473 = vmatpush3.msra.mxu1 %v5267_v51 }
 0x82a   :  { %4474 = vmatprep.subr.mxu1 %v5037_v8 }
 0x82b   :  { %4475 = vmatpush3.msra.mxu1 %v5276_v52 }
 0x82c   :  { %4476 = vmatprep.subr.mxu1 %v5037_v8 }
 0x82d   :  { %4477 = vmatpush3.msra.mxu1 %v5283_v53 }
 0x82e   :  { %4479 = vmatmul.mubr.msk.f32.vlgmr.msra.gmra.mxu1 %vm51_vm0, %v1066_v32  ;;  %4492 = vmatprep.subr.mxu1 %v5037_v8 }
 0x82f   :  { %4493 = vmatpush3.msra.mxu1 %v5343_v46  ;;  %4500 = vmatprep.mubr.msk.f32.mxu1 %vm5038_vm1, %v5037_v8 }
 0x830   :  { %4494 = vmatprep.subr.mxu1 %v5037_v8 }
 0x831   :  { %4495 = vmatpush3.msra.mxu1 %v5356_v48  ;;  %v1166_v33 = vpop.permute.xlu1 %1165 }
 0x832   :  { %4468 = vmatmul.mubr.msk.f32.vlgmr.msra.gmra.mxu0 %vm51_vm0, %v1166_v33  ;;  %4496 = vmatprep.subr.mxu1 %v5037_v8 }
 0x833   :  { %4482 = vmatpush3.msra.mxu0 %v5351_v47  ;;  %4497 = vmatpush3.msra.mxu1 %v5371_v57 }
 0x834   :  { %4483 = vmatprep.subr.mxu0 %v5037_v8  ;;  %4498 = vmatprep.subr.mxu1 %v5037_v8 }
 0x835   :  { %4484 = vmatpush3.msra.mxu0 %v5366_v56  ;;  %4499 = vmatpush3.msra.mxu1 %v5385_v59 }
 0x836   :  { %4485 = vmatprep.subr.mxu0 %v5037_v8  ;;  %4501 = vmatmul.mubr.msk.f32.vlgmr.msra.gmra.mxu1 %vm51_vm0, %v1166_v33 }
 0x837   :  { %4486 = vmatpush3.msra.mxu0 %v5380_v58  ;;  %4489 = vmatprep.mubr.msk.f32.mxu0 %vm5038_vm1, %v5037_v8 }
 0x838   :  { %4487 = vmatprep.subr.mxu0 %v5037_v8  ;;  %4514 = vmatprep.subr.mxu1 %v5037_v8 }
 0x839   :  { %v1060_v35 = vpop.permute.xlu0 %1059  ;;  %4488 = vmatpush3.msra.mxu0 %v5394_v60  ;;  %4515 = vmatpush3.msra.mxu1 %v5207_v39 }
 0x83a   :  { %1062 = vst.msk [vmem:[#allocation3] sm:$0xff] %vm51_vm0, %v1060_v35  ;;  %4490 = vmatmul.mubr.msk.f32.vlgmr.msra.gmra.mxu0 %vm51_vm0, %v1060_v35  ;;  %4503 = vmatprep.subr.mxu0 %v5037_v8 }
 0x83b   :  { %4504 = vmatpush3.msra.mxu0 %v5119_v6  ;;  %4511 = vmatprep.mubr.msk.f32.mxu0 %vm5038_vm1, %v5037_v8 }
 0x83c   :  { %4505 = vmatprep.subr.mxu0 %v5037_v8  ;;  %4516 = vmatprep.subr.mxu1 %v5037_v8 }
 0x83d   :  { %4506 = vmatpush3.msra.mxu0 %v5136_v11  ;;  %4517 = vmatpush3.msra.mxu1 %v5218_v42 }
 0x83e   :  { %4507 = vmatprep.subr.mxu0 %v5037_v8  ;;  %4518 = vmatprep.subr.mxu1 %v5037_v8 }
 0x83f   :  { %4508 = vmatpush3.msra.mxu0 %v5148_v13  ;;  %4519 = vmatpush3.msra.mxu1 %v5230_v44 }
 0x840   :  { %4509 = vmatprep.subr.mxu0 %v5037_v8  ;;  %4520 = vmatprep.subr.mxu1 %v5037_v8 }
 0x841   :  { %4510 = vmatpush3.msra.mxu0 %v5157_v14  ;;  %4521 = vmatpush3.msra.mxu1 %v5239_v45 }
 0x842   :  { %4525 = vmatprep.subr.mxu0 %v5037_v8  ;;  %4522 = vmatprep.mubr.msk.f32.mxu1 %vm5038_vm1, %v5037_v8 }
 0x843   :  { %4536 = vmatprep.subr.mxu1 %v5037_v8 }
 0x8e6   :  { %v1135_v37 = vpop.f32.mrf.mxu1 }
 0x8e7   :  { %v1139_v38 = vadd.f32 %v1135_v37, %v158_v36 }
 0x8e8   :  { %v4458_v40 = vpop.f32.mrf.mxu1 }
 0x8e9   :  { %4870 = vtanh.f32 %v1139_v38  ;;  %v4044_v18 = vmul.f32 -1.442695, %v1139_v38 }
 0x8ee   :  { %v1305_v41 = vpop.f32.mrf.mxu1 }
 0x8f0   :  { %v4480_v43 = vpop.f32.mrf.mxu1 }
 0x8f2   :  { %v1235_v50 = vpop.f32.mrf.mxu0 }
 0x8f3   :  { %v1306_v61 = vadd.f32 %v1305_v41, %v1235_v50 }
 0x8f4   :  { %v4469_v63 = vpop.f32.mrf.mxu0 }
 0x8f5   :  { %v1309_v0 = vadd.f32 %v5309_v62, %v1306_v61 }
 0x8f6   :  { %v4871_v1 = vpop.eup %4870  ;;  %v1472_v2 = vpop.f32.mrf.mxu1 }
 0x8f7   :  { %4872 = vtanh.f32 %v1309_v0  ;;  %1149 = vrot.lane.b32.xlu1 %v4871_v1, %s5039_s25  ;;  %v4047_v20 = vmul.f32 -1.442695, %v1309_v0 }
 0x8f8   :  { %v4502_v3 = vpop.f32.mrf.mxu1 }
 0x8fa   :  { %v1402_v4 = vpop.f32.mrf.mxu0 }
 0x8fb   :  { %v1473_v5 = vadd.f32 %v1472_v2, %v1402_v4 }
 0x8fc   :  { %v4491_v54 = vpop.f32.mrf.mxu0 }
 0x8fd   :  { %v1476_v9 = vadd.f32 %v5436_v55, %v1473_v5 }
 0x8ff   :  { %4874 = vtanh.f32 %v1476_v9  ;;  %v4050_v25 = vmul.f32 -1.442695, %v1476_v9 }
 0x900   :  { %4876 = vpow2.f32 %v4044_v18 }
 0x901   :  { %4878 = vpow2.f32 %v4047_v20 }
 0x904   :  { %v4873_v10 = vpop.eup %4872 }
 0x905   :  { %1319 = vrot.lane.b32.xlu0 %v4873_v10, %s5039_s25 }
 0x90c   :  { %v4875_v15 = vpop.eup %4874 }
 0x90d   :  { %1486 = vrot.lane.b32.xlu1 %v4875_v15, %s5039_s25  ;;  %v4877_v23 = vpop.eup %4876 }
 0x90e   :  { %v1143_v30 = vadd.f32 1.0, %v4877_v23  ;;  %v4879_v34 = vpop.eup %4878 }
 0x90f   :  { %v1313_v26 = vadd.f32 1.0, %v4879_v34 }
 0x910   :  { %4880 = vrcp.f32 %v1143_v30 }
 0x911   :  { %4882 = vpow2.f32 %v4050_v25 }
 0x912   :  { %4884 = vrcp.f32 %v1313_v26 }
 0x91d   :  { %v4881_v27 = vpop.eup %4880 }
 0x91e   :  { %v4883_v31 = vpop.eup %4882  ;;  %v1147_v41 = vmul.f32 %v4881_v27, %v5449_v7 }
 0x91f   :  { %v1480_v32 = vadd.f32 1.0, %v4883_v31  ;;  %v4885_v33 = vpop.eup %4884 }
 0x920   :  { %v1317_v61 = vmul.f32 %v4885_v33, %v5453_v12 }
 0x921   :  { %4886 = vrcp.f32 %v1480_v32 }
 0x92e   :  { %v4887_v37 = vpop.eup %4886 }
 0x92f   :  { %v1484_v2 = vmul.f32 %v4887_v37, %v5457_v24 }
 0x969   :  { %v1150_v28 = vpop.permute.xlu1 %1149 }
 0x96a   :  { %v1152_v29 = vmul.f32 %v4881_v27, %v1150_v28 }
 0x96c   :  { %1154 = vrot.lane.b32.xlu0 %v1152_v29, %s5040_s28 }
 0x977   :  { %v1320_v35 = vpop.permute.xlu0 %1319 }
 0x978   :  { %v1322_v36 = vmul.f32 %v4885_v33, %v1320_v35 }
 0x97a   :  { %1324 = vrot.lane.b32.xlu1 %v1322_v36, %s5040_s28 }
 0x97f   :  { %v1487_v38 = vpop.permute.xlu1 %1486 }
 0x980   :  { %v1489_v40 = vmul.f32 %v4887_v37, %v1487_v38 }
 0x982   :  { %1491 = vrot.lane.b32.xlu0 %v1489_v40, %s5040_s28 }
 0x9de   :  { %v1155_v43 = vpop.permute.xlu0 %1154 }
 0x9df   :  { %v5532_v50 = vadd.f32 %v1155_v43, %v1147_v41 }
 0x9e1   :  { %4888 = vtanh.f32 %v5532_v50 }
 0x9ec   :  { %v1325_v63 = vpop.permute.xlu1 %1324 }
 0x9ed   :  { %v5536_v0 = vadd.f32 %v1325_v63, %v1317_v61 }
 0x9ee   :  { %v4889_v1 = vpop.eup %4888 }
 0x9ef   :  { %4890 = vtanh.f32 %v5536_v0  ;;  %1160 = vrot.lane.b32.xlu1 %v4889_v1, %s5039_s25 }
 0x9f4   :  { %v1492_v3 = vpop.permute.xlu0 %1491 }
 0x9f5   :  { %v5541_v4 = vadd.f32 %v1492_v3, %v1484_v2 }
 0x9f7   :  { %4892 = vtanh.f32 %v5541_v4 }
 0x9fc   :  { %v4891_v7 = vpop.eup %4890 }
 0x9fd   :  { %1330 = vrot.lane.b32.xlu0 %v4891_v7, %s5039_s25 }
 0xa04   :  { %v4893_v5 = vpop.eup %4892 }
 0xa05   :  { %1497 = vrot.lane.b32.xlu1 %v4893_v5, %s5039_s25 }
 0xa61   :  { %v1161_v12 = vpop.permute.xlu1 %1160 }
 0xa62   :  { %v1163_v54 = vmul.f32 %v4881_v27, %v1161_v12 }
 0xa64   :  { %1508 = vrot.lane.b32.xlu0 %v1163_v54, %s5040_s28 }
 0xa6f   :  { %v1331_v9 = vpop.permute.xlu0 %1330 }
 0xa70   :  { %v1333_v10 = vmul.f32 %v4885_v33, %v1331_v9 }
 0xa72   :  { %1608 = vrot.lane.b32.xlu1 %v1333_v10, %s5040_s28 }
 0xa77   :  { %v1498_v24 = vpop.permute.xlu1 %1497 }
 0xa78   :  { %v1500_v15 = vmul.f32 %v4887_v37, %v1498_v24 }
 0xa7a   :  { %1502 = vrot.lane.b32.xlu0 %v1500_v15, %s5040_s28 }
 0xad6   :  { %v1509_v18 = vpop.permute.xlu0 %1508 }
 0xad7   :  { %4512 = vmatmul.mubr.msk.f32.vlgmr.msra.gmra.mxu0 %vm51_vm0, %v1509_v18 }
 0xad8   :  { %4526 = vmatpush3.msra.mxu0 %v5261_v49  ;;  %4533 = vmatprep.mubr.msk.f32.mxu0 %vm5038_vm1, %v5037_v8 }
 0xad9   :  { %4527 = vmatprep.subr.mxu0 %v5037_v8 }
 0xada   :  { %4528 = vmatpush3.msra.mxu0 %v5267_v51 }
 0xadb   :  { %4529 = vmatprep.subr.mxu0 %v5037_v8 }
 0xadc   :  { %4530 = vmatpush3.msra.mxu0 %v5276_v52 }
 0xadd   :  { %4531 = vmatprep.subr.mxu0 %v5037_v8 }
 0xade   :  { %4532 = vmatpush3.msra.mxu0 %v5283_v53 }
 0xadf   :  { %4534 = vmatmul.mubr.msk.f32.vlgmr.msra.gmra.mxu0 %vm51_vm0, %v1509_v18  ;;  %4547 = vmatprep.subr.mxu0 %v5037_v8 }
 0xae0   :  { %4548 = vmatpush3.msra.mxu0 %v5343_v46  ;;  %4555 = vmatprep.mubr.msk.f32.mxu0 %vm5038_vm1, %v5037_v8 }
 0xae1   :  { %4549 = vmatprep.subr.mxu0 %v5037_v8 }
 0xae2   :  { %4550 = vmatpush3.msra.mxu0 %v5356_v48 }
 0xae3   :  { %4551 = vmatprep.subr.mxu0 %v5037_v8 }
 0xae4   :  { %4552 = vmatpush3.msra.mxu0 %v5371_v57  ;;  %v1609_v20 = vpop.permute.xlu1 %1608 }
 0xae5   :  { %4523 = vmatmul.mubr.msk.f32.vlgmr.msra.gmra.mxu1 %vm51_vm0, %v1609_v20  ;;  %4553 = vmatprep.subr.mxu0 %v5037_v8 }
 0xae6   :  { %4537 = vmatpush3.msra.mxu1 %v5351_v47  ;;  %4554 = vmatpush3.msra.mxu0 %v5385_v59 }
 0xae7   :  { %4538 = vmatprep.subr.mxu1 %v5037_v8  ;;  %4556 = vmatmul.mubr.msk.f32.vlgmr.msra.gmra.mxu0 %vm51_vm0, %v1609_v20 }
 0xae8   :  { %4539 = vmatpush3.msra.mxu1 %v5366_v56  ;;  %4544 = vmatprep.mubr.msk.f32.mxu1 %vm5038_vm1, %v5037_v8 }
 0xae9   :  { %4540 = vmatprep.subr.mxu1 %v5037_v8  ;;  %4569 = vmatprep.subr.mxu0 %v5037_v8 }
 0xaea   :  { %4541 = vmatpush3.msra.mxu1 %v5380_v58  ;;  %4570 = vmatpush3.msra.mxu0 %v5207_v39 }
 0xaeb   :  { %4542 = vmatprep.subr.mxu1 %v5037_v8  ;;  %4571 = vmatprep.subr.mxu0 %v5037_v8 }
 0xaec   :  { %v1503_v23 = vpop.permute.xlu0 %1502  ;;  %4543 = vmatpush3.msra.mxu1 %v5394_v60  ;;  %4572 = vmatpush3.msra.mxu0 %v5218_v42 }
 0xaed   :  { %1505 = vst.msk [vmem:[#allocation3 + $0x8] sm:$0xff] %vm51_vm0, %v1503_v23  ;;  %4545 = vmatmul.mubr.msk.f32.vlgmr.msra.gmra.mxu1 %vm51_vm0, %v1503_v23  ;;  %4558 = vmatprep.subr.mxu1 %v5037_v8 }
 0xaee   :  { %4559 = vmatpush3.msra.mxu1 %v5119_v6  ;;  %4566 = vmatprep.mubr.msk.f32.mxu1 %vm5038_vm1, %v5037_v8  ;;  %v163_v6 = vadd.f32 %v5190_v21, %v5181_v17 }
 0xaef   :  { %4560 = vmatprep.subr.mxu1 %v5037_v8  ;;  %4573 = vmatprep.subr.mxu0 %v5037_v8 }
 0xaf0   :  { %4561 = vmatpush3.msra.mxu1 %v5136_v11  ;;  %4574 = vmatpush3.msra.mxu0 %v5230_v44 }
 0xaf1   :  { %4562 = vmatprep.subr.mxu1 %v5037_v8  ;;  %4575 = vmatprep.subr.mxu0 %v5037_v8 }
 0xaf2   :  { %4563 = vmatpush3.msra.mxu1 %v5148_v13  ;;  %4576 = vmatpush3.msra.mxu0 %v5239_v45 }
 0xaf3   :  { %4564 = vmatprep.subr.mxu1 %v5037_v8  ;;  %4577 = vmatprep.mubr.msk.f32.mxu0 %vm5038_vm1, %v5037_v8 }
 0xaf4   :  { %4565 = vmatpush3.msra.mxu1 %v5157_v14  ;;  %4591 = vmatprep.subr.mxu0 %v5037_v8 }
 0xaf5   :  { %4580 = vmatprep.subr.mxu1 %v5037_v8 }
 0xb97   :  { %v1578_v11 = vpop.f32.mrf.mxu0 }
 0xb98   :  { %v1582_v39 = vadd.f32 %v1578_v11, %v163_v6 }
 0xb99   :  { %v4513_v42 = vpop.f32.mrf.mxu0 }
 0xb9a   :  { %4894 = vtanh.f32 %v1582_v39  ;;  %v4052_v33 = vmul.f32 -1.442695, %v1582_v39 }
 0xb9f   :  { %v1748_v13 = vpop.f32.mrf.mxu0 }
 0xba1   :  { %v4535_v44 = vpop.f32.mrf.mxu0 }
 0xba5   :  { %v1678_v45 = vpop.f32.mrf.mxu1 }
 0xba6   :  { %v1749_v30 = vadd.f32 %v1748_v13, %v1678_v45 }
 0xba7   :  { %v4895_v25 = vpop.eup %4894  ;;  %v4524_v34 = vpop.f32.mrf.mxu1 }
 0xba8   :  { %v1915_v26 = vpop.f32.mrf.mxu0  ;;  %v1752_v14 = vadd.f32 %v5309_v62, %v1749_v30  ;;  %1592 = vrot.lane.b32.xlu1 %v4895_v25, %s5039_s25 }
 0xbaa   :  { %v4557_v27 = vpop.f32.mrf.mxu0  ;;  %4896 = vtanh.f32 %v1752_v14  ;;  %v4055_v35 = vmul.f32 -1.442695, %v1752_v14 }
 0xbad   :  { %v1845_v28 = vpop.f32.mrf.mxu1 }
 0xbae   :  { %v1916_v29 = vadd.f32 %v1915_v26, %v1845_v28 }
 0xbaf   :  { %v4546_v17 = vpop.f32.mrf.mxu1 }
 0xbb0   :  { %v1919_v21 = vadd.f32 %v5436_v55, %v1916_v29 }
 0xbb2   :  { %4898 = vtanh.f32 %v1919_v21  ;;  %v4058_v37 = vmul.f32 -1.442695, %v1919_v21 }
 0xbb3   :  { %4900 = vpow2.f32 %v4052_v33 }
 0xbb4   :  { %4902 = vpow2.f32 %v4055_v35  ;;  %v5740_v35 = vld [vmem:[%s6156_s3 + $0x1] ss:$0 sm:$0xff] }
 0xbb7   :  { %v4897_v31 = vpop.eup %4896 }
 0xbb8   :  { %1762 = vrot.lane.b32.xlu0 %v4897_v31, %s5039_s25 }
 0xbbf   :  { %v4899_v32 = vpop.eup %4898 }
 0xbc0   :  { %1929 = vrot.lane.b32.xlu1 %v4899_v32, %s5039_s25  ;;  %v4901_v62 = vpop.eup %4900 }
 0xbc1   :  { %v1586_v36 = vadd.f32 1.0, %v4901_v62  ;;  %v4903_v38 = vpop.eup %4902 }
 0xbc2   :  { %v1756_v40 = vadd.f32 1.0, %v4903_v38 }
 0xbc3   :  { %4904 = vrcp.f32 %v1586_v36 }
 0xbc4   :  { %4906 = vpow2.f32 %v4058_v37 }
 0xbc5   :  { %4908 = vrcp.f32 %v1756_v40 }
 0xbd0   :  { %v4905_v41 = vpop.eup %4904 }
 0xbd1   :  { %v4907_v63 = vpop.eup %4906  ;;  %v1590_v9 = vmul.f32 %v4905_v41, %v5532_v50 }
 0xbd2   :  { %v1923_v1 = vadd.f32 1.0, %v4907_v63  ;;  %v4909_v2 = vpop.eup %4908 }
 0xbd3   :  { %v1760_v15 = vmul.f32 %v4909_v2, %v5536_v0 }
 0xbd4   :  { %4910 = vrcp.f32 %v1923_v1 }
 0xbe1   :  { %v4911_v5 = vpop.eup %4910 }
 0xbe2   :  { %v1927_v6 = vmul.f32 %v4911_v5, %v5541_v4 }
 0xc1a   :  { %v1593_v43 = vpop.permute.xlu1 %1592 }
 0xc1b   :  { %v1595_v61 = vmul.f32 %v4905_v41, %v1593_v43 }
 0xc1d   :  { %1597 = vrot.lane.b32.xlu0 %v1595_v61, %s5040_s28 }
 0xc2a   :  { %v1763_v3 = vpop.permute.xlu0 %1762 }
 0xc2b   :  { %v1765_v7 = vmul.f32 %v4909_v2, %v1763_v3 }
 0xc2d   :  { %1767 = vrot.lane.b32.xlu1 %v1765_v7, %s5040_s28 }
 0xc32   :  { %v1930_v12 = vpop.permute.xlu1 %1929 }
 0xc33   :  { %v1932_v54 = vmul.f32 %v4911_v5, %v1930_v12 }
 0xc35   :  { %1934 = vrot.lane.b32.xlu0 %v1932_v54, %s5040_s28 }
 0xc8f   :  { %v1598_v10 = vpop.permute.xlu0 %1597 }
 0xc90   :  { %v5616_v24 = vadd.f32 %v1598_v10, %v1590_v9 }
 0xc92   :  { %4912 = vtanh.f32 %v5616_v24 }
 0xc9f   :  { %v4913_v18 = vpop.eup %4912  ;;  %v1768_v20 = vpop.permute.xlu1 %1767 }
 0xca0   :  { %v5620_v23 = vadd.f32 %v1768_v20, %v1760_v15  ;;  %1603 = vrot.lane.b32.xlu1 %v4913_v18, %s5039_s25 }
 0xca2   :  { %4914 = vtanh.f32 %v5620_v23 }
 0xca7   :  { %v1935_v11 = vpop.permute.xlu0 %1934 }
 0xca8   :  { %v5625_v39 = vadd.f32 %v1935_v11, %v1927_v6 }
 0xcaa   :  { %4916 = vtanh.f32 %v5625_v39 }
 0xcaf   :  { %v4915_v50 = vpop.eup %4914 }
 0xcb0   :  { %1773 = vrot.lane.b32.xlu0 %v4915_v50, %s5039_s25 }
 0xcb7   :  { %v4917_v42 = vpop.eup %4916 }
 0xcb8   :  { %1940 = vrot.lane.b32.xlu1 %v4917_v42, %s5039_s25 }
 0xd12   :  { %v1604_v0 = vpop.permute.xlu1 %1603 }
 0xd13   :  { %v1606_v13 = vmul.f32 %v4905_v41, %v1604_v0 }
 0xd15   :  { %1951 = vrot.lane.b32.xlu0 %v1606_v13, %s5040_s28 }
 0xd22   :  { %v1774_v44 = vpop.permute.xlu0 %1773 }
 0xd23   :  { %v1776_v45 = vmul.f32 %v4909_v2, %v1774_v44 }
 0xd25   :  { %2051 = vrot.lane.b32.xlu1 %v1776_v45, %s5040_s28 }
 0xd2a   :  { %v1941_v4 = vpop.permute.xlu1 %1940 }
 0xd2b   :  { %v1943_v30 = vmul.f32 %v4911_v5, %v1941_v4 }
 0xd2d   :  { %1945 = vrot.lane.b32.xlu0 %v1943_v30, %s5040_s28 }
 0xd87   :  { %v1952_v25 = vpop.permute.xlu0 %1951 }
 0xd88   :  { %4567 = vmatmul.mubr.msk.f32.vlgmr.msra.gmra.mxu1 %vm51_vm0, %v1952_v25 }
 0xd89   :  { %4581 = vmatpush3.msra.mxu1 %v5261_v49  ;;  %4588 = vmatprep.mubr.msk.f32.mxu1 %vm5038_vm1, %v5037_v8 }
 0xd8a   :  { %4582 = vmatprep.subr.mxu1 %v5037_v8 }
 0xd8b   :  { %4583 = vmatpush3.msra.mxu1 %v5267_v51  ;;  %v5665_v51 = vld [vmem:[%s6154_s2 + $0x38] sm:$0xff] }
 0xd8c   :  { %4584 = vmatprep.subr.mxu1 %v5037_v8 }
 0xd8d   :  { %4585 = vmatpush3.msra.mxu1 %v5276_v52  ;;  %v5674_v52 = vld [vmem:[%s6154_s2 + $0x30] sm:$0xff] }
 0xd8e   :  { %4586 = vmatprep.subr.mxu1 %v5037_v8 }
 0xd8f   :  { %4587 = vmatpush3.msra.mxu1 %v5283_v53 }
 0xd90   :  { %4589 = vmatmul.mubr.msk.f32.vlgmr.msra.gmra.mxu1 %vm51_vm0, %v1952_v25  ;;  %4602 = vmatprep.subr.mxu1 %v5037_v8 }
 0xd91   :  { %4603 = vmatpush3.msra.mxu1 %v5343_v46  ;;  %4610 = vmatprep.mubr.msk.f32.mxu1 %vm5038_vm1, %v5037_v8  ;;  %v5683_v46 = vld [vmem:[%s6154_s2 + $0x28] sm:$0xff] }
 0xd92   :  { %4604 = vmatprep.subr.mxu1 %v5037_v8 }
 0xd93   :  { %4605 = vmatpush3.msra.mxu1 %v5356_v48  ;;  %v5702_v48 = vld [vmem:[%s6154_s2 + $0x10] sm:$0xff] }
 0xd94   :  { %4606 = vmatprep.subr.mxu1 %v5037_v8 }
 0xd95   :  { %4607 = vmatpush3.msra.mxu1 %v5371_v57  ;;  %v5717_v57 = vld [vmem:[%s6154_s2 + $0x8] sm:$0xff] }
 0xd96   :  { %4608 = vmatprep.subr.mxu1 %v5037_v8 }
 0xd97   :  { %4609 = vmatpush3.msra.mxu1 %v5385_v59  ;;  %v2052_v49 = vpop.permute.xlu1 %2051  ;;  %v5732_v59 = vld [vmem:[%s6156_s3] ss:$0 sm:$0xff] }
 0xd98   :  { %4578 = vmatmul.mubr.msk.f32.vlgmr.msra.gmra.mxu0 %vm51_vm0, %v2052_v49  ;;  %4611 = vmatmul.mubr.msk.f32.vlgmr.msra.gmra.mxu1 %vm51_vm0, %v2052_v49 }
 0xd99   :  { %4592 = vmatpush3.msra.mxu0 %v5351_v47  ;;  %4599 = vmatprep.mubr.msk.f32.mxu0 %vm5038_vm1, %v5037_v8  ;;  %v5692_v47 = vld [vmem:[%s6154_s2 + $0x18] sm:$0xff] }
 0xd9a   :  { %4593 = vmatprep.subr.mxu0 %v5037_v8  ;;  %4624 = vmatprep.subr.mxu1 %v5037_v8 }
 0xd9b   :  { %4594 = vmatpush3.msra.mxu0 %v5366_v56  ;;  %4625 = vmatpush3.msra.mxu1 %v5665_v51  ;;  %v5708_v56 = vld [vmem:[%s6154_s2 + $0x20] sm:$0xff] }
 0xd9c   :  { %4595 = vmatprep.subr.mxu0 %v5037_v8  ;;  %4626 = vmatprep.subr.mxu1 %v5037_v8 }
 0xd9d   :  { %4596 = vmatpush3.msra.mxu0 %v5380_v58  ;;  %4627 = vmatpush3.msra.mxu1 %v5674_v52  ;;  %v5725_v58 = vld [vmem:[%s6154_s2] sm:$0xff] }
 0xd9e   :  { %4597 = vmatprep.subr.mxu0 %v5037_v8  ;;  %4628 = vmatprep.subr.mxu1 %v5037_v8 }
 0xd9f   :  { %v1946_v53 = vpop.permute.xlu0 %1945  ;;  %4598 = vmatpush3.msra.mxu0 %v5394_v60  ;;  %4629 = vmatpush3.msra.mxu1 %v5683_v46  ;;  %v168_v60 = vadd.f32 %v5732_v59, %v5179_v16 }
 0xda0   :  { %1948 = vst.msk [vmem:[#allocation3 + $0x10] sm:$0xff] %vm51_vm0, %v1946_v53  ;;  %4600 = vmatmul.mubr.msk.f32.vlgmr.msra.gmra.mxu0 %vm51_vm0, %v1946_v53  ;;  %4613 = vmatprep.subr.mxu0 %v5037_v8 }
 0xda1   :  { %4614 = vmatpush3.msra.mxu0 %v5692_v47  ;;  %4621 = vmatprep.mubr.msk.f32.mxu0 %vm5038_vm1, %v5037_v8 }
 0xda2   :  { %4615 = vmatprep.subr.mxu0 %v5037_v8  ;;  %4630 = vmatprep.subr.mxu1 %v5037_v8 }
 0xda3   :  { %4616 = vmatpush3.msra.mxu0 %v5702_v48  ;;  %4631 = vmatpush3.msra.mxu1 %v5708_v56 }
 0xda4   :  { %4617 = vmatprep.subr.mxu0 %v5037_v8  ;;  %4632 = vmatprep.mubr.msk.f32.mxu1 %vm5038_vm1, %v5037_v8 }
 0xda5   :  { %4618 = vmatpush3.msra.mxu0 %v5717_v57  ;;  %4646 = vmatprep.subr.mxu1 %v5037_v8 }
 0xda6   :  { %4619 = vmatprep.subr.mxu0 %v5037_v8 }
 0xda7   :  { %4620 = vmatpush3.msra.mxu0 %v5725_v58 }
 0xda8   :  { %4635 = vmatprep.subr.mxu0 %v5037_v8 }
 0xe48   :  { %v2021_v34 = vpop.f32.mrf.mxu1 }
 0xe49   :  { %v2025_v26 = vadd.f32 %v2021_v34, %v168_v60 }
 0xe4a   :  { %v4568_v14 = vpop.f32.mrf.mxu1 }
 0xe4b   :  { %4918 = vtanh.f32 %v2025_v26  ;;  %v4060_v43 = vmul.f32 -1.442695, %v2025_v26 }
 0xe50   :  { %v2191_v27 = vpop.f32.mrf.mxu1 }
 0xe52   :  { %v4590_v28 = vpop.f32.mrf.mxu1 }
 0xe53   :  { %v5771_v28 = vld [vmem:[%s6152_s1 + $0x38] sm:$0xff] }
 0xe58   :  { %v4919_v29 = vpop.eup %4918  ;;  %v2121_v17 = vpop.f32.mrf.mxu0 }
 0xe59   :  { %v2358_v21 = vpop.f32.mrf.mxu1  ;;  %v2192_v31 = vadd.f32 %v2191_v27, %v2121_v17  ;;  %2035 = vrot.lane.b32.xlu1 %v4919_v29, %s5039_s25  ;;  %v5780_v29 = vld [vmem:[%s6152_s1 + $0x30] sm:$0xff]  ;;  %v5787_v17 = vld [vmem:[%s6152_s1 + $0x28] sm:$0xff] }
 0xe5a   :  { %v4579_v32 = vpop.f32.mrf.mxu0 }
 0xe5b   :  { %v4612_v33 = vpop.f32.mrf.mxu1  ;;  %v2195_v16 = vadd.f32 %v5740_v35, %v2192_v31  ;;  %v5802_v31 = vld [vmem:[%s6152_s1 + $0x58] sm:$0xff]  ;;  %v5811_v32 = vld [vmem:[%s6152_s1 + $0x50] sm:$0xff] }
 0xe5c   :  { %v5818_v33 = vld [vmem:[%s6152_s1 + $0x48] sm:$0xff] }
 0xe5d   :  { %4920 = vtanh.f32 %v2195_v16  ;;  %v4063_v63 = vmul.f32 -1.442695, %v2195_v16  ;;  %v5825_v16 = vld [vmem:[%s6152_s1 + $0x40] sm:$0xff] }
 0xe60   :  { %v2288_v62 = vpop.f32.mrf.mxu0 }
 0xe61   :  { %v2359_v36 = vadd.f32 %v2358_v21, %v2288_v62  ;;  %v5794_v21 = vld [vmem:[%s6152_s1 + $0x20] sm:$0xff] }
 0xe62   :  { %v4601_v37 = vpop.f32.mrf.mxu0 }
 0xe63   :  { %v2362_v38 = vadd.f32 %v5436_v55, %v2359_v36  ;;  %v5834_v36 = vld [vmem:[%s6154_s2 + $0x58] sm:$0xff]  ;;  %v5844_v37 = vld [vmem:[%s6154_s2 + $0x50] sm:$0xff] }
 0xe65   :  { %4922 = vtanh.f32 %v2362_v38  ;;  %v4066_v2 = vmul.f32 -1.442695, %v2362_v38  ;;  %v5853_v38 = vld [vmem:[%s6154_s2 + $0x48] sm:$0xff] }
 0xe66   :  { %4924 = vpow2.f32 %v4060_v43 }
 0xe67   :  { %4926 = vpow2.f32 %v4063_v63 }
 0xe6a   :  { %v4921_v40 = vpop.eup %4920 }
 0xe6b   :  { %2205 = vrot.lane.b32.xlu0 %v4921_v40, %s5039_s25 }
 0xe72   :  { %v4923_v41 = vpop.eup %4922 }
 0xe73   :  { %2372 = vrot.lane.b32.xlu1 %v4923_v41, %s5039_s25  ;;  %v4925_v61 = vpop.eup %4924  ;;  %v5863_v41 = vld [vmem:[%s6154_s2 + $0x40] sm:$0xff] }
 0xe74   :  { %v2029_v1 = vadd.f32 1.0, %v4925_v61  ;;  %v4927_v3 = vpop.eup %4926 }
 0xe75   :  { %v2199_v12 = vadd.f32 1.0, %v4927_v3 }
 0xe76   :  { %4928 = vrcp.f32 %v2029_v1 }
 0xe77   :  { %4930 = vpow2.f32 %v4066_v2 }
 0xe78   :  { %4932 = vrcp.f32 %v2199_v12 }
 0xe83   :  { %v4929_v7 = vpop.eup %4928 }
 0xe84   :  { %v4931_v54 = vpop.eup %4930  ;;  %v2033_v50 = vmul.f32 %v4929_v7, %v5616_v24 }
 0xe85   :  { %v2366_v9 = vadd.f32 1.0, %v4931_v54  ;;  %v4933_v10 = vpop.eup %4932 }
 0xe86   :  { %v2203_v44 = vmul.f32 %v4933_v10, %v5620_v23 }
 0xe87   :  { %4934 = vrcp.f32 %v2366_v9  ;;  %v5890_v9 = vld [vmem:[%s6156_s3 + $0x2] ss:$0 sm:$0xff]  ;;  %s5041_s3 = smov 96  }
 0xe94   :  { %v4935_v20 = vpop.eup %4934 }
 0xe95   :  { %v2370_v30 = vmul.f32 %v4935_v20, %v5625_v39 }
 0xecb   :  { %v2036_v5 = vpop.permute.xlu1 %2035 }
 0xecc   :  { %v2038_v55 = vmul.f32 %v4929_v7, %v2036_v5 }
 0xece   :  { %2040 = vrot.lane.b32.xlu0 %v2038_v55, %s5040_s28 }
 0xedd   :  { %v2206_v15 = vpop.permute.xlu0 %2205 }
 0xede   :  { %v2208_v18 = vmul.f32 %v4933_v10, %v2206_v15 }
 0xee0   :  { %2210 = vrot.lane.b32.xlu1 %v2208_v18, %s5040_s28 }
 0xee5   :  { %v2373_v6 = vpop.permute.xlu1 %2372 }
 0xee6   :  { %v2375_v11 = vmul.f32 %v4935_v20, %v2373_v6 }
 0xee8   :  { %2377 = vrot.lane.b32.xlu0 %v2375_v11, %s5040_s28 }
 0xf40   :  { %v2041_v42 = vpop.permute.xlu0 %2040 }
 0xf41   :  { %v5750_v0 = vadd.f32 %v2041_v42, %v2033_v50 }
 0xf43   :  { %4936 = vtanh.f32 %v5750_v0 }
 0xf50   :  { %v4937_v13 = vpop.eup %4936 }
 0xf51   :  { %2046 = vrot.lane.b32.xlu1 %v4937_v13, %s5039_s25 }
 0xf52   :  { %v2211_v45 = vpop.permute.xlu1 %2210 }
 0xf53   :  { %v5755_v4 = vadd.f32 %v2211_v45, %v2203_v44 }
 0xf55   :  { %4938 = vtanh.f32 %v5755_v4 }
 0xf5a   :  { %v2378_v25 = vpop.permute.xlu0 %2377 }
 0xf5b   :  { %v5759_v49 = vadd.f32 %v2378_v25, %v2370_v30 }
 0xf5d   :  { %4940 = vtanh.f32 %v5759_v49 }
 0xf62   :  { %v4939_v24 = vpop.eup %4938 }
 0xf63   :  { %2216 = vrot.lane.b32.xlu0 %v4939_v24, %s5039_s25 }
 0xf6a   :  { %v4941_v53 = vpop.eup %4940 }
 0xf6b   :  { %2383 = vrot.lane.b32.xlu1 %v4941_v53, %s5039_s25 }
 0xfc3   :  { %v2047_v60 = vpop.permute.xlu1 %2046 }
 0xfc4   :  { %v2049_v23 = vmul.f32 %v4929_v7, %v2047_v60 }
 0xfc6   :  { %2394 = vrot.lane.b32.xlu0 %v2049_v23, %s5040_s28 }
 0xfd5   :  { %v2217_v34 = vpop.permute.xlu0 %2216 }
 0xfd6   :  { %v2219_v26 = vmul.f32 %v4933_v10, %v2217_v34 }
 0xfd8   :  { %2494 = vrot.lane.b32.xlu1 %v2219_v26, %s5040_s28 }
 0xfdd   :  { %v2384_v39 = vpop.permute.xlu1 %2383 }
 0xfde   :  { %v2386_v14 = vmul.f32 %v4935_v20, %v2384_v39 }
 0xfe0   :  { %2388 = vrot.lane.b32.xlu0 %v2386_v14, %s5040_s28 }
0x1038   :  { %v2395_v27 = vpop.permute.xlu0 %2394 }
0x1039   :  { %4622 = vmatmul.mubr.msk.f32.vlgmr.msra.gmra.mxu0 %vm51_vm0, %v2395_v27 }
0x103a   :  { %4636 = vmatpush3.msra.mxu0 %v5771_v28  ;;  %4643 = vmatprep.mubr.msk.f32.mxu0 %vm5038_vm1, %v5037_v8 }
0x103b   :  { %4637 = vmatprep.subr.mxu0 %v5037_v8 }
0x103c   :  { %4638 = vmatpush3.msra.mxu0 %v5780_v29 }
0x103d   :  { %4639 = vmatprep.subr.mxu0 %v5037_v8 }
0x103e   :  { %4640 = vmatpush3.msra.mxu0 %v5787_v17 }
0x103f   :  { %4641 = vmatprep.subr.mxu0 %v5037_v8 }
0x1040   :  { %4642 = vmatpush3.msra.mxu0 %v5794_v21 }
0x1041   :  { %4644 = vmatmul.mubr.msk.f32.vlgmr.msra.gmra.mxu0 %vm51_vm0, %v2395_v27  ;;  %4657 = vmatprep.subr.mxu0 %v5037_v8 }
0x1042   :  { %4658 = vmatpush3.msra.mxu0 %v5802_v31  ;;  %4665 = vmatprep.mubr.msk.f32.mxu0 %vm5038_vm1, %v5037_v8 }
0x1043   :  { %4659 = vmatprep.subr.mxu0 %v5037_v8 }
0x1044   :  { %4660 = vmatpush3.msra.mxu0 %v5811_v32 }
0x1045   :  { %4661 = vmatprep.subr.mxu0 %v5037_v8 }
0x1046   :  { %4662 = vmatpush3.msra.mxu0 %v5818_v33 }
0x1047   :  { %4663 = vmatprep.subr.mxu0 %v5037_v8 }
0x1048   :  { %4664 = vmatpush3.msra.mxu0 %v5825_v16 }
0x1049   :  { %4679 = vmatprep.subr.mxu0 %v5037_v8 }
0x104a   :  { %v2495_v62 = vpop.permute.xlu1 %2494 }
0x104b   :  { %4633 = vmatmul.mubr.msk.f32.vlgmr.msra.gmra.mxu1 %vm51_vm0, %v2495_v62  ;;  %4666 = vmatmul.mubr.msk.f32.vlgmr.msra.gmra.mxu0 %vm51_vm0, %v2495_v62 }
0x104c   :  { %4647 = vmatpush3.msra.mxu1 %v5834_v36  ;;  %4654 = vmatprep.mubr.msk.f32.mxu1 %vm5038_vm1, %v5037_v8 }
0x104d   :  { %4648 = vmatprep.subr.mxu1 %v5037_v8  ;;  %4680 = vmatpush3.msra.mxu0 %v5665_v51 }
0x104e   :  { %4649 = vmatpush3.msra.mxu1 %v5844_v37  ;;  %4681 = vmatprep.subr.mxu0 %v5037_v8 }
0x104f   :  { %4650 = vmatprep.subr.mxu1 %v5037_v8  ;;  %4682 = vmatpush3.msra.mxu0 %v5674_v52 }
0x1050   :  { %4651 = vmatpush3.msra.mxu1 %v5853_v38  ;;  %4683 = vmatprep.subr.mxu0 %v5037_v8 }
0x1051   :  { %4652 = vmatprep.subr.mxu1 %v5037_v8  ;;  %4684 = vmatpush3.msra.mxu0 %v5683_v46 }
0x1052   :  { %v2389_v40 = vpop.permute.xlu0 %2388  ;;  %4653 = vmatpush3.msra.mxu1 %v5863_v41  ;;  %4685 = vmatprep.subr.mxu0 %v5037_v8 }
0x1053   :  { %2391 = vst.msk [vmem:[#allocation3 + $0x18] sm:$0xff] %vm51_vm0, %v2389_v40  ;;  %4655 = vmatmul.mubr.msk.f32.vlgmr.msra.gmra.mxu1 %vm51_vm0, %v2389_v40  ;;  %4668 = vmatprep.subr.mxu1 %v5037_v8 }
0x1054   :  { %4669 = vmatpush3.msra.mxu1 %v5692_v47  ;;  %4676 = vmatprep.mubr.msk.f32.mxu1 %vm5038_vm1, %v5037_v8  ;;  %v173_v47 = vadd.f32 %v5732_v59, %v5192_v22 }
0x1055   :  { %4670 = vmatprep.subr.mxu1 %v5037_v8  ;;  %4686 = vmatpush3.msra.mxu0 %v5708_v56 }
0x1056   :  { %4671 = vmatpush3.msra.mxu1 %v5702_v48  ;;  %4687 = vmatprep.mubr.msk.f32.mxu0 %vm5038_vm1, %v5037_v8 }
0x1057   :  { %4672 = vmatprep.subr.mxu1 %v5037_v8  ;;  %4701 = vmatprep.subr.mxu0 %v5037_v8 }
0x1058   :  { %4673 = vmatpush3.msra.mxu1 %v5717_v57 }
0x1059   :  { %4674 = vmatprep.subr.mxu1 %v5037_v8 }
0x105a   :  { %4675 = vmatpush3.msra.mxu1 %v5725_v58 }
0x105b   :  { %4690 = vmatprep.subr.mxu1 %v5037_v8 }
0x10f9   :  { %v2464_v43 = vpop.f32.mrf.mxu0 }
0x10fa   :  { %v2468_v48 = vadd.f32 %v2464_v43, %v173_v47 }
0x10fb   :  { %v4623_v61 = vpop.f32.mrf.mxu0 }
0x10fc   :  { %4942 = vtanh.f32 %v2468_v48  ;;  %v4068_v20 = vmul.f32 -1.442695, %v2468_v48 }
0x1101   :  { %v2634_v63 = vpop.f32.mrf.mxu0 }
0x1103   :  { %v4645_v1 = vpop.f32.mrf.mxu0 }
0x1109   :  { %v4943_v2 = vpop.eup %4942 }
0x110a   :  { %2478 = vrot.lane.b32.xlu1 %v4943_v2, %s5039_s25 }
0x110b   :  { %v2564_v3 = vpop.f32.mrf.mxu1  ;;  %v2801_v57 = vpop.f32.mrf.mxu0 }
0x110c   :  { %v2635_v7 = vadd.f32 %v2634_v63, %v2564_v3 }
0x110d   :  { %v4634_v5 = vpop.f32.mrf.mxu1  ;;  %v4667_v55 = vpop.f32.mrf.mxu0 }
0x110e   :  { %v2638_v58 = vadd.f32 %v5740_v35, %v2635_v7 }
0x1110   :  { %4944 = vtanh.f32 %v2638_v58  ;;  %v4071_v50 = vmul.f32 -1.442695, %v2638_v58 }
0x1113   :  { %v2731_v12 = vpop.f32.mrf.mxu1 }
0x1114   :  { %v2802_v54 = vadd.f32 %v2801_v57, %v2731_v12 }
0x1115   :  { %v4656_v22 = vpop.f32.mrf.mxu1 }
0x1116   :  { %v2805_v10 = vadd.f32 %v5890_v9, %v2802_v54 }
0x1118   :  { %4946 = vtanh.f32 %v2805_v10  ;;  %v4074_v42 = vmul.f32 -1.442695, %v2805_v10 }
0x1119   :  { %4948 = vpow2.f32 %v4068_v20 }
0x111d   :  { %v4945_v15 = vpop.eup %4944 }
0x111e   :  { %2648 = vrot.lane.b32.xlu0 %v4945_v15, %s5039_s25 }
0x1125   :  { %v4947_v18 = vpop.eup %4946 }
0x1126   :  { %2815 = vrot.lane.b32.xlu1 %v4947_v18, %s5039_s25  ;;  %v4949_v6 = vpop.eup %4948 }
0x1127   :  { %v2472_v11 = vadd.f32 1.0, %v4949_v6 }
0x1129   :  { %4950 = vrcp.f32 %v2472_v11 }
0x112a   :  { %4952 = vpow2.f32 %v4071_v50 }
0x112b   :  { %4954 = vpow2.f32 %v4074_v42 }
0x1136   :  { %v4951_v13 = vpop.eup %4950 }
0x1137   :  { %v4953_v45 = vpop.eup %4952  ;;  %v2476_v27 = vmul.f32 %v4951_v13, %v5750_v0 }
0x1138   :  { %v2642_v25 = vadd.f32 1.0, %v4953_v45  ;;  %v4955_v24 = vpop.eup %4954 }
0x1139   :  { %v2809_v53 = vadd.f32 1.0, %v4955_v24 }
0x113a   :  { %4956 = vrcp.f32 %v2642_v25 }
0x113b   :  { %4958 = vrcp.f32 %v2809_v53 }
0x1147   :  { %v4957_v60 = vpop.eup %4956 }
0x1148   :  { %v4959_v26 = vpop.eup %4958  ;;  %v2646_v43 = vmul.f32 %v4957_v60, %v5755_v4 }
0x1149   :  { %v2813_v63 = vmul.f32 %v4959_v26, %v5759_v49 }
0x117c   :  { %v2479_v44 = vpop.permute.xlu1 %2478 }
0x117d   :  { %v2481_v30 = vmul.f32 %v4951_v13, %v2479_v44 }
0x117f   :  { %2483 = vrot.lane.b32.xlu0 %v2481_v30, %s5040_s28 }
0x1190   :  { %v2649_v23 = vpop.permute.xlu0 %2648 }
0x1191   :  { %v2651_v34 = vmul.f32 %v4957_v60, %v2649_v23 }
0x1193   :  { %2653 = vrot.lane.b32.xlu1 %v2651_v34, %s5040_s28 }
0x1198   :  { %v2816_v39 = vpop.permute.xlu1 %2815 }
0x1199   :  { %v2818_v14 = vmul.f32 %v4959_v26, %v2816_v39 }
0x119b   :  { %2820 = vrot.lane.b32.xlu0 %v2818_v14, %s5040_s28 }
0x11f1   :  { %v2484_v62 = vpop.permute.xlu0 %2483 }
0x11f2   :  { %v5899_v40 = vadd.f32 %v2484_v62, %v2476_v27 }
0x11f4   :  { %4960 = vtanh.f32 %v5899_v40 }
0x1201   :  { %v4961_v47 = vpop.eup %4960 }
0x1202   :  { %2489 = vrot.lane.b32.xlu1 %v4961_v47, %s5039_s25 }
0x1205   :  { %v2654_v48 = vpop.permute.xlu1 %2653 }
0x1206   :  { %v5904_v61 = vadd.f32 %v2654_v48, %v2646_v43 }
0x1208   :  { %4962 = vtanh.f32 %v5904_v61 }
0x120d   :  { %v2821_v1 = vpop.permute.xlu0 %2820 }
0x120e   :  { %v5908_v2 = vadd.f32 %v2821_v1, %v2813_v63 }
0x1210   :  { %4964 = vtanh.f32 %v5908_v2 }
0x1215   :  { %v4963_v0 = vpop.eup %4962 }
0x1216   :  { %2659 = vrot.lane.b32.xlu0 %v4963_v0, %s5039_s25 }
0x121d   :  { %v4965_v3 = vpop.eup %4964 }
0x121e   :  { %2826 = vrot.lane.b32.xlu1 %v4965_v3, %s5039_s25 }
0x1274   :  { %v2490_v57 = vpop.permute.xlu1 %2489 }
0x1275   :  { %v2492_v4 = vmul.f32 %v4951_v13, %v2490_v57 }
0x1277   :  { %2837 = vrot.lane.b32.xlu0 %v2492_v4, %s5040_s28 }
0x1288   :  { %v2660_v7 = vpop.permute.xlu0 %2659 }
0x1289   :  { %v2662_v5 = vmul.f32 %v4957_v60, %v2660_v7 }
0x128b   :  { %2937 = vrot.lane.b32.xlu1 %v2662_v5, %s5040_s28 }
0x1290   :  { %v2827_v49 = vpop.permute.xlu1 %2826 }
0x1291   :  { %v2829_v55 = vmul.f32 %v4959_v26, %v2827_v49 }
0x1293   :  { %2831 = vrot.lane.b32.xlu0 %v2829_v55, %s5040_s28 }
0x12e9   :  { %v2838_v58 = vpop.permute.xlu0 %2837 }
0x12ea   :  { %4677 = vmatmul.mubr.msk.f32.vlgmr.msra.gmra.mxu1 %vm51_vm0, %v2838_v58 }
0x12eb   :  { %4691 = vmatpush3.msra.mxu1 %v5771_v28  ;;  %4698 = vmatprep.mubr.msk.f32.mxu1 %vm5038_vm1, %v5037_v8 }
0x12ec   :  { %4692 = vmatprep.subr.mxu1 %v5037_v8 }
0x12ed   :  { %4693 = vmatpush3.msra.mxu1 %v5780_v29 }
0x12ee   :  { %4694 = vmatprep.subr.mxu1 %v5037_v8 }
0x12ef   :  { %4695 = vmatpush3.msra.mxu1 %v5787_v17 }
0x12f0   :  { %4696 = vmatprep.subr.mxu1 %v5037_v8 }
0x12f1   :  { %4697 = vmatpush3.msra.mxu1 %v5794_v21 }
0x12f2   :  { %4699 = vmatmul.mubr.msk.f32.vlgmr.msra.gmra.mxu1 %vm51_vm0, %v2838_v58  ;;  %4712 = vmatprep.subr.mxu1 %v5037_v8 }
0x12f3   :  { %4713 = vmatpush3.msra.mxu1 %v5802_v31  ;;  %4720 = vmatprep.mubr.msk.f32.mxu1 %vm5038_vm1, %v5037_v8 }
0x12f4   :  { %4714 = vmatprep.subr.mxu1 %v5037_v8 }
0x12f5   :  { %4715 = vmatpush3.msra.mxu1 %v5811_v32 }
0x12f6   :  { %4716 = vmatprep.subr.mxu1 %v5037_v8 }
0x12f7   :  { %4717 = vmatpush3.msra.mxu1 %v5818_v33 }
0x12f8   :  { %4718 = vmatprep.subr.mxu1 %v5037_v8 }
0x12f9   :  { %4719 = vmatpush3.msra.mxu1 %v5825_v16 }
0x12fa   :  { %4734 = vmatprep.subr.mxu1 %v5037_v8 }
0x12fd   :  { %v2938_v12 = vpop.permute.xlu1 %2937 }
0x12fe   :  { %4688 = vmatmul.mubr.msk.f32.vlgmr.msra.gmra.mxu0 %vm51_vm0, %v2938_v12  ;;  %4721 = vmatmul.mubr.msk.f32.vlgmr.msra.gmra.mxu1 %vm51_vm0, %v2938_v12 }
0x12ff   :  { %4702 = vmatpush3.msra.mxu0 %v5834_v36  ;;  %4709 = vmatprep.mubr.msk.f32.mxu0 %vm5038_vm1, %v5037_v8 }
0x1300   :  { %4703 = vmatprep.subr.mxu0 %v5037_v8  ;;  %4735 = vmatpush3.msra.mxu1 %v5771_v28 }
0x1301   :  { %4704 = vmatpush3.msra.mxu0 %v5844_v37  ;;  %4736 = vmatprep.subr.mxu1 %v5037_v8 }
0x1302   :  { %4705 = vmatprep.subr.mxu0 %v5037_v8  ;;  %4737 = vmatpush3.msra.mxu1 %v5780_v29 }
0x1303   :  { %4706 = vmatpush3.msra.mxu0 %v5853_v38  ;;  %4738 = vmatprep.subr.mxu1 %v5037_v8 }
0x1304   :  { %4707 = vmatprep.subr.mxu0 %v5037_v8  ;;  %4739 = vmatpush3.msra.mxu1 %v5787_v17 }
0x1305   :  { %v2832_v54 = vpop.permute.xlu0 %2831  ;;  %4708 = vmatpush3.msra.mxu0 %v5863_v41  ;;  %4740 = vmatprep.subr.mxu1 %v5037_v8 }
0x1306   :  { %2834 = vst.msk [vmem:[#allocation3 + $0x20] sm:$0xff] %vm51_vm0, %v2832_v54  ;;  %4710 = vmatmul.mubr.msk.f32.vlgmr.msra.gmra.mxu0 %vm51_vm0, %v2832_v54  ;;  %4741 = vmatpush3.msra.mxu1 %v5794_v21 }
0x1307   :  { %4742 = vmatprep.mubr.msk.f32.mxu1 %vm5038_vm1, %v5037_v8  ;;  %4723 = vmatprep.subr.mxu0 %v5037_v8 }
0x1308   :  { %4724 = vmatpush3.msra.mxu0 %v5665_v51  ;;  %4756 = vmatprep.subr.mxu1 %v5037_v8  ;;  %v178_v51 = vadd.f32 %v5732_v59, %v5185_v19 }
0x1309   :  { %4725 = vmatprep.subr.mxu0 %v5037_v8  ;;  %4731 = vmatprep.mubr.msk.f32.mxu0 %vm5038_vm1, %v5037_v8 }
0x130a   :  { %4726 = vmatpush3.msra.mxu0 %v5674_v52 }
0x130b   :  { %4727 = vmatprep.subr.mxu0 %v5037_v8 }
0x130c   :  { %4728 = vmatpush3.msra.mxu0 %v5683_v46 }
0x130d   :  { %4729 = vmatprep.subr.mxu0 %v5037_v8 }
0x130e   :  { %4730 = vmatpush3.msra.mxu0 %v5708_v56 }
0x130f   :  { %4745 = vmatprep.subr.mxu0 %v5037_v8 }
0x13aa   :  { %v2907_v28 = vpop.f32.mrf.mxu1 }
0x13ab   :  { %v2911_v29 = vadd.f32 %v2907_v28, %v178_v51 }
0x13ac   :  { %v4678_v17 = vpop.f32.mrf.mxu1 }
0x13ad   :  { %4966 = vtanh.f32 %v2911_v29  ;;  %v4076_v13 = vmul.f32 -1.442695, %v2911_v29 }
0x13b2   :  { %v3077_v21 = vpop.f32.mrf.mxu1 }
0x13b4   :  { %v4700_v22 = vpop.f32.mrf.mxu1 }
0x13ba   :  { %v4967_v52 = vpop.eup %4966 }
0x13bb   :  { %2921 = vrot.lane.b32.xlu1 %v4967_v52, %s5039_s25 }
0x13be   :  { %v3007_v10 = vpop.f32.mrf.mxu0  ;;  %v3244_v46 = vpop.f32.mrf.mxu1 }
0x13bf   :  { %v3078_v15 = vadd.f32 %v3077_v21, %v3007_v10 }
0x13c0   :  { %v4689_v18 = vpop.f32.mrf.mxu0  ;;  %v4722_v20 = vpop.f32.mrf.mxu1 }
0x13c1   :  { %v3081_v56 = vadd.f32 %v5740_v35, %v3078_v15 }
0x13c3   :  { %4968 = vtanh.f32 %v3081_v56  ;;  %v4079_v30 = vmul.f32 -1.442695, %v3081_v56 }
0x13c6   :  { %v3174_v6 = vpop.f32.mrf.mxu0 }
0x13c7   :  { %v3245_v11 = vadd.f32 %v3244_v46, %v3174_v6 }
0x13c8   :  { %v4711_v19 = vpop.f32.mrf.mxu0 }
0x13c9   :  { %v3248_v59 = vadd.f32 %v5890_v9, %v3245_v11 }
0x13cb   :  { %4970 = vtanh.f32 %v3248_v59  ;;  %v4082_v25 = vmul.f32 -1.442695, %v3248_v59 }
0x13cc   :  { %4972 = vpow2.f32 %v4076_v13 }
0x13d0   :  { %v4969_v50 = vpop.eup %4968 }
0x13d1   :  { %3091 = vrot.lane.b32.xlu0 %v4969_v50, %s5039_s25 }
0x13d8   :  { %v4971_v42 = vpop.eup %4970 }
0x13d9   :  { %3258 = vrot.lane.b32.xlu1 %v4971_v42, %s5039_s25  ;;  %v4973_v44 = vpop.eup %4972 }
0x13da   :  { %v2915_v45 = vadd.f32 1.0, %v4973_v44 }
0x13dc   :  { %4974 = vrcp.f32 %v2915_v45 }
0x13dd   :  { %4976 = vpow2.f32 %v4079_v30 }
0x13de   :  { %4978 = vpow2.f32 %v4082_v25 }
0x13e9   :  { %v4975_v24 = vpop.eup %4974 }
0x13ea   :  { %v4977_v23 = vpop.eup %4976  ;;  %v2919_v63 = vmul.f32 %v4975_v24, %v5899_v40 }
0x13eb   :  { %v3085_v34 = vadd.f32 1.0, %v4977_v23  ;;  %v4979_v26 = vpop.eup %4978 }
0x13ec   :  { %v3252_v39 = vadd.f32 1.0, %v4979_v26  ;;  %v3837_v26 = vld [vmem:[%s6159_s6 + $0x18] sm:$0xff] }
0x13ed   :  { %4980 = vrcp.f32 %v3085_v34 }
0x13ee   :  { %4982 = vrcp.f32 %v3252_v39 }
0x13fa   :  { %v4981_v14 = vpop.eup %4980 }
0x13fb   :  { %v4983_v47 = vpop.eup %4982  ;;  %v3089_v57 = vmul.f32 %v4981_v14, %v5904_v61 }
0x13fc   :  { %v3256_v5 = vmul.f32 %v4983_v47, %v5908_v2 }
0x142d   :  { %v2922_v53 = vpop.permute.xlu1 %2921 }
0x142e   :  { %v2924_v60 = vmul.f32 %v4975_v24, %v2922_v53 }
0x1430   :  { %2926 = vrot.lane.b32.xlu0 %v2924_v60, %s5040_s28 }
0x1443   :  { %v3092_v27 = vpop.permute.xlu0 %3091 }
0x1444   :  { %v3094_v62 = vmul.f32 %v4981_v14, %v3092_v27 }
0x1446   :  { %3096 = vrot.lane.b32.xlu1 %v3094_v62, %s5040_s28 }
0x144b   :  { %v3259_v43 = vpop.permute.xlu1 %3258 }
0x144c   :  { %v3261_v48 = vmul.f32 %v4983_v47, %v3259_v43 }
0x144e   :  { %3263 = vrot.lane.b32.xlu0 %v3261_v48, %s5040_s28  ;;  %v3836_v48 = vld [vmem:[%s6159_s6 + $0x10] sm:$0xff] }
0x14a2   :  { %v2927_v1 = vpop.permute.xlu0 %2926 }
0x14a3   :  { %v5983_v0 = vadd.f32 %v2927_v1, %v2919_v63  ;;  %v3826_v63 = vld [vmem:[#allocation3] sm:$0xff]  ;;  %v3835_v1 = vld [vmem:[%s6159_s6 + $0x8] sm:$0xff] }
0x14a5   :  { %4984 = vtanh.f32 %v5983_v0 }
0x14b2   :  { %v4985_v3 = vpop.eup %4984 }
0x14b3   :  { %2932 = vrot.lane.b32.xlu1 %v4985_v3, %s5039_s25  ;;  %v3834_v3 = vld [vmem:[%s6159_s6] sm:$0xff] }
0x14b8   :  { %v3097_v4 = vpop.permute.xlu1 %3096 }
0x14b9   :  { %v5988_v7 = vadd.f32 %v3097_v4, %v3089_v57  ;;  %v3827_v57 = vld [vmem:[#allocation3 + $0x8] sm:$0xff]  ;;  %v3828_v4 = vld [vmem:[#allocation3 + $0x10] sm:$0xff] }
0x14bb   :  { %4986 = vtanh.f32 %v5988_v7 }
0x14c0   :  { %v3264_v49 = vpop.permute.xlu0 %3263 }
0x14c1   :  { %v5992_v55 = vadd.f32 %v3264_v49, %v3256_v5  ;;  %v3830_v5 = vld [vmem:[#allocation3 + $0x20] sm:$0xff] }
0x14c3   :  { %4988 = vtanh.f32 %v5992_v55 }
0x14c8   :  { %v4987_v40 = vpop.eup %4986 }
0x14c9   :  { %3102 = vrot.lane.b32.xlu0 %v4987_v40, %s5039_s25 }
0x14d0   :  { %v4989_v58 = vpop.eup %4988 }
0x14d1   :  { %3269 = vrot.lane.b32.xlu1 %v4989_v58, %s5039_s25 }
0x1525   :  { %v2933_v12 = vpop.permute.xlu1 %2932 }
0x1526   :  { %v2935_v61 = vmul.f32 %v4975_v24, %v2933_v12 }
0x1528   :  { %3354 = vrot.lane.b32.xlu1 %v2935_v61, %s5040_s28 }
0x153b   :  { %v3103_v54 = vpop.permute.xlu0 %3102 }
0x153c   :  { %v3105_v51 = vmul.f32 %v4981_v14, %v3103_v54 }
0x153e   :  { %3279 = vrot.lane.b32.xlu0 %v3105_v51, %s5040_s28 }
0x1543   :  { %v3270_v2 = vpop.permute.xlu1 %3269 }
0x1544   :  { %v3272_v28 = vmul.f32 %v4983_v47, %v3270_v2  ;;  %v4096_v2 = vld [vmem:[%s6160_s7] ss:$0 sm:$0xff] }
0x1546   :  { %3274 = vrot.lane.b32.xlu0 %v3272_v28, %s5040_s28 }
0x159a   :  { %v3355_v29 = vpop.permute.xlu1 %3354 }
0x159b   :  { %3803 = vst.msk [vmem:[%s6158_s9] sm:$0xff] %vm51_vm0, %v3355_v29  ;;  %4743 = vmatmul.mubr.msk.f32.vlgmr.msra.gmra.mxu1 %vm51_vm0, %v3355_v29 }
0x159c   :  { %4757 = vmatpush3.msra.mxu1 %v5802_v31  ;;  %4764 = vmatprep.mubr.msk.f32.mxu1 %vm5038_vm1, %v5037_v8 }
0x159d   :  { %4758 = vmatprep.subr.mxu1 %v5037_v8 }
0x159e   :  { %4759 = vmatpush3.msra.mxu1 %v5811_v32 }
0x159f   :  { %4760 = vmatprep.subr.mxu1 %v5037_v8 }
0x15a0   :  { %4761 = vmatpush3.msra.mxu1 %v5818_v33 }
0x15a1   :  { %4762 = vmatprep.subr.mxu1 %v5037_v8 }
0x15a2   :  { %4763 = vmatpush3.msra.mxu1 %v5825_v16 }
0x15a3   :  { %4778 = vmatprep.subr.mxu1 %v5037_v8 }
0x15b0   :  { %v3280_v17 = vpop.permute.xlu0 %3279 }
0x15b1   :  { %4732 = vmatmul.mubr.msk.f32.vlgmr.msra.gmra.mxu0 %vm51_vm0, %v3280_v17  ;;  %4765 = vmatmul.mubr.msk.f32.vlgmr.msra.gmra.mxu1 %vm51_vm0, %v3280_v17 }
0x15b2   :  { %4746 = vmatpush3.msra.mxu0 %v5834_v36  ;;  %4753 = vmatprep.mubr.msk.f32.mxu0 %vm5038_vm1, %v5037_v8 }
0x15b3   :  { %4747 = vmatprep.subr.mxu0 %v5037_v8  ;;  %4779 = vmatpush3.msra.mxu1 %v5802_v31 }
0x15b4   :  { %4748 = vmatpush3.msra.mxu0 %v5844_v37  ;;  %4780 = vmatprep.subr.mxu1 %v5037_v8 }
0x15b5   :  { %4749 = vmatprep.subr.mxu0 %v5037_v8  ;;  %4781 = vmatpush3.msra.mxu1 %v5811_v32 }
0x15b6   :  { %4750 = vmatpush3.msra.mxu0 %v5853_v38  ;;  %4782 = vmatprep.subr.mxu1 %v5037_v8 }
0x15b7   :  { %4751 = vmatprep.subr.mxu0 %v5037_v8  ;;  %4783 = vmatpush3.msra.mxu1 %v5818_v33 }
0x15b8   :  { %4752 = vmatpush3.msra.mxu0 %v5863_v41  ;;  %v3275_v21 = vpop.permute.xlu0 %3274  ;;  %4784 = vmatprep.subr.mxu1 %v5037_v8 }
0x15b9   :  { %3277 = vst.msk [vmem:[#allocation3 + $0x28] sm:$0xff] %vm51_vm0, %v3275_v21  ;;  %4754 = vmatmul.mubr.msk.f32.vlgmr.msra.gmra.mxu0 %vm51_vm0, %v3275_v21  ;;  %4767 = vmatprep.subr.mxu0 %v5037_v8 }
0x15ba   :  { %4768 = vmatpush3.msra.mxu0 %v5834_v36  ;;  %4785 = vmatpush3.msra.mxu1 %v5825_v16 }
0x15bb   :  { %4786 = vmatprep.mubr.msk.f32.mxu1 %vm5038_vm1, %v5037_v8  ;;  %4769 = vmatprep.subr.mxu0 %v5037_v8 }
0x15bc   :  { %4770 = vmatpush3.msra.mxu0 %v5844_v37  ;;  %4775 = vmatprep.mubr.msk.f32.mxu0 %vm5038_vm1, %v5037_v8 }
0x15bd   :  { %4771 = vmatprep.subr.mxu0 %v5037_v8 }
0x15be   :  { %4772 = vmatpush3.msra.mxu0 %v5853_v38 }
0x15bf   :  { %4773 = vmatprep.subr.mxu0 %v5037_v8 }
0x15c0   :  { %4774 = vmatpush3.msra.mxu0 %v5863_v41  ;;  %v3831_v49 = vld [vmem:[#allocation3 + $0x28] sm:$0xff] }
0x15c1   :  { %4789 = vmatprep.subr.mxu0 %v3837_v26 }
0x165b   :  { %v3424_v31 = vpop.f32.mrf.mxu1 }
0x165d   :  { %v4744_v32 = vpop.f32.mrf.mxu1 }
0x1671   :  { %v3349_v33 = vpop.f32.mrf.mxu0  ;;  %v3591_v16 = vpop.f32.mrf.mxu1 }
0x1672   :  { %v3425_v36 = vadd.f32 %v3424_v31, %v3349_v33 }
0x1673   :  { %v4733_v22 = vpop.f32.mrf.mxu0  ;;  %v4766_v52 = vpop.f32.mrf.mxu1 }
0x1674   :  { %v3428_v37 = vadd.f32 %v5740_v35, %v3425_v36 }
0x1676   :  { %4990 = vtanh.f32 %v3428_v37  ;;  %v4085_v41 = vmul.f32 -1.442695, %v3428_v37 }
0x1679   :  { %v3521_v10 = vpop.f32.mrf.mxu0 }
0x167a   :  { %v3592_v46 = vadd.f32 %v3591_v16, %v3521_v10 }
0x167b   :  { %v4755_v15 = vpop.f32.mrf.mxu0 }
0x167c   :  { %v3595_v18 = vadd.f32 %v5890_v9, %v3592_v46 }
0x167e   :  { %4992 = vtanh.f32 %v3595_v18  ;;  %v4088_v20 = vmul.f32 -1.442695, %v3595_v18 }
0x167f   :  { %4994 = vpow2.f32 %v4085_v41 }
0x1680   :  { %4996 = vpow2.f32 %v4088_v20 }
0x1683   :  { %v4991_v38 = vpop.eup %4990 }
0x1684   :  { %3438 = vrot.lane.b32.xlu1 %v4991_v38, %s5039_s25 }
0x168b   :  { %v4993_v8 = vpop.eup %4992 }
0x168c   :  { %3605 = vrot.lane.b32.xlu0 %v4993_v8, %s5039_s25  ;;  %v4995_v56 = vpop.eup %4994 }
0x168d   :  { %v3432_v6 = vadd.f32 1.0, %v4995_v56  ;;  %v4997_v35 = vpop.eup %4996 }
0x168e   :  { %v3599_v11 = vadd.f32 1.0, %v4997_v35 }
0x168f   :  { %4998 = vrcp.f32 %v3432_v6 }
0x1690   :  { %5000 = vrcp.f32 %v3599_v11 }
0x169c   :  { %v4999_v19 = vpop.eup %4998 }
0x169d   :  { %v5001_v42 = vpop.eup %5000  ;;  %v3436_v45 = vmul.f32 %v4999_v19, %v5988_v7  ;;  %v3829_v7 = vld [vmem:[#allocation3 + $0x18] sm:$0xff] }
0x169e   :  { %v3603_v24 = vmul.f32 %v5001_v42, %v5992_v55 }
0x16f6   :  { %v3439_v59 = vpop.permute.xlu1 %3438 }
0x16f7   :  { %v3441_v50 = vmul.f32 %v4999_v19, %v3439_v59 }
0x16f9   :  { %3443 = vrot.lane.b32.xlu1 %v3441_v50, %s5040_s28 }
0x16fe   :  { %v3606_v13 = vpop.permute.xlu0 %3605 }
0x16ff   :  { %v3608_v44 = vmul.f32 %v5001_v42, %v3606_v13 }
0x1701   :  { %3610 = vrot.lane.b32.xlu0 %v3608_v44, %s5040_s28 }
0x176b   :  { %v3444_v30 = vpop.permute.xlu1 %3443 }
0x176c   :  { %v6054_v25 = vadd.f32 %v3444_v30, %v3436_v45 }
0x176e   :  { %5002 = vtanh.f32 %v6054_v25 }
0x1773   :  { %v3611_v53 = vpop.permute.xlu0 %3610 }
0x1774   :  { %v6058_v60 = vadd.f32 %v3611_v53, %v3603_v24 }
0x1776   :  { %5004 = vtanh.f32 %v6058_v60 }
0x177b   :  { %v5003_v23 = vpop.eup %5002 }
0x177c   :  { %3449 = vrot.lane.b32.xlu1 %v5003_v23, %s5039_s25 }
0x1783   :  { %v5005_v34 = vpop.eup %5004 }
0x1784   :  { %3616 = vrot.lane.b32.xlu0 %v5005_v34, %s5039_s25 }
0x17ee   :  { %v3450_v39 = vpop.permute.xlu1 %3449 }
0x17ef   :  { %v3452_v14 = vmul.f32 %v4999_v19, %v3450_v39 }
0x17f1   :  { %3698 = vrot.lane.b32.xlu0 %v3452_v14, %s5040_s28 }
0x17f6   :  { %v3617_v27 = vpop.permute.xlu0 %3616 }
0x17f7   :  { %v3619_v62 = vmul.f32 %v5001_v42, %v3617_v27 }
0x17f9   :  { %3621 = vrot.lane.b32.xlu1 %v3619_v62, %s5040_s28 }
0x1863   :  { %v3699_v47 = vpop.permute.xlu0 %3698 }
0x1864   :  { %4092 = vst.msk [vmem:[%s6158_s9 + $0x8] sm:$0xff] %vm51_vm0, %v3699_v47  ;;  %4787 = vmatmul.mubr.msk.f32.vlgmr.msra.gmra.mxu1 %vm51_vm0, %v3699_v47 }
0x186b   :  { %v3622_v43 = vpop.permute.xlu1 %3621 }
0x186c   :  { %3624 = vst.msk [vmem:[#allocation3 + $0x30] sm:$0xff] %vm51_vm0, %v3622_v43  ;;  %4776 = vmatmul.mubr.msk.f32.vlgmr.msra.gmra.mxu0 %vm51_vm0, %v3622_v43 }
0x186d   :  { %4790 = vmatpush3.msra.mxu0 %v3837_v26  ;;  %4797 = vmatprep.mubr.msk.f32.mxu0 %vm51_vm0, %v3826_v63 }
0x186e   :  { %4791 = vmatprep.subr.mxu0 %v3836_v48 }
0x186f   :  { %4792 = vmatpush3.msra.mxu0 %v3836_v48 }
0x1870   :  { %4793 = vmatprep.subr.mxu0 %v3835_v1 }
0x1871   :  { %4794 = vmatpush3.msra.mxu0 %v3835_v1 }
0x1872   :  { %4795 = vmatprep.subr.mxu0 %v3834_v3 }
0x1873   :  { %4796 = vmatpush3.msra.mxu0 %v3834_v3  ;;  %v3832_v55 = vld [vmem:[#allocation3 + $0x30] sm:$0xff] }
0x1874   :  { %4798 = vmatmul.mubr.msk.f32.vlgmr.msra.gmra.mxu0 %vm51_vm0, %v3827_v57 }
0x1875   :  { %4800 = vmatprep.mubr.msk.f32.mxu0 %vm51_vm0, %v3828_v4 }
0x1878   :  { %4801 = vmatmul.mubr.msk.f32.gmra.mxu0 %vm51_vm0, %v3829_v7 }
0x1879   :  { %4803 = vmatprep.mubr.msk.f32.mxu0 %vm51_vm0, %v3830_v5 }
0x187c   :  { %4804 = vmatmul.mubr.msk.f32.gmra.mxu0 %vm51_vm0, %v3831_v49 }
0x187d   :  { %4806 = vmatprep.mubr.msk.f32.mxu0 %vm51_vm0, %v3832_v55 }
0x1924   :  { %v3768_v40 = vpop.f32.mrf.mxu1 }
0x1926   :  { %v4788_v58 = vpop.f32.mrf.mxu1 }
0x192c   :  { %v3693_v12 = vpop.f32.mrf.mxu0 }
0x192d   :  { %v3769_v61 = vadd.f32 %v3768_v40, %v3693_v12 }
0x192e   :  { %v4777_v54 = vpop.f32.mrf.mxu0 }
0x192f   :  { %v3772_v51 = vadd.f32 %v5890_v9, %v3769_v61 }
0x1931   :  { %5006 = vtanh.f32 %v3772_v51  ;;  %v4091_v10 = vmul.f32 -1.442695, %v3772_v51 }
0x1933   :  { %5008 = vpow2.f32 %v4091_v10 }
0x1934   :  { %v4799_v28 = vpop.f32.mrf.mxu0 }
0x1935   :  { %v3941_v29 = vadd.f32 %v4799_v28, %v4096_v2 }
0x1936   :  { %v3935_v17 = vpop.f32.mrf.mxu0 }
0x1937   :  { %3976 = vst.msk [vmem:[%s6161_s8 + $0x8] sm:$0xff] %vm3974_vm2, %v3941_v29  ;;  %v3936_v21 = vadd.f32 %v4096_v2, %v3935_v17 }
0x1938   :  { %v4802_v31 = vpop.f32.mrf.mxu0 }
0x1939   :  { %3975 = vst.msk [vmem:[%s6161_s8] sm:$0xff] %vm3974_vm2, %v3936_v21  ;;  %v3951_v9 = vadd.f32 %v4802_v31, %v4096_v2 }
0x193a   :  { %v3945_v32 = vpop.f32.mrf.mxu0 }
0x193b   :  { %3978 = vst.msk [vmem:[%s6161_s8 + $0x18] sm:$0xff] %vm3974_vm2, %v3951_v9  ;;  %v3946_v33 = vadd.f32 %v4096_v2, %v3945_v32 }
0x193c   :  { %v4805_v16 = vpop.f32.mrf.mxu0 }
0x193d   :  { %3977 = vst.msk [vmem:[%s6161_s8 + $0x10] sm:$0xff] %vm3974_vm2, %v3946_v33  ;;  %v3961_v36 = vadd.f32 %v4805_v16, %v4096_v2 }
0x193e   :  { %v5007_v22 = vpop.eup %5006  ;;  %v3955_v52 = vpop.f32.mrf.mxu0 }
0x193f   :  { %3980 = vst.msk [vmem:[%s6161_s8 + $0x28] sm:$0xff] %vm3974_vm2, %v3961_v36  ;;  %v3956_v37 = vadd.f32 %v4096_v2, %v3955_v52  ;;  %3782 = vrot.lane.b32.xlu1 %v5007_v22, %s5039_s25 }
0x1940   :  { %v5009_v46 = vpop.eup %5008 }
0x1941   :  { %3979 = vst.msk [vmem:[%s6161_s8 + $0x20] sm:$0xff] %vm3974_vm2, %v3956_v37  ;;  %v3776_v15 = vadd.f32 1.0, %v5009_v46 }
0x1943   :  { %5010 = vrcp.f32 %v3776_v15 }
0x1950   :  { %v5011_v18 = vpop.eup %5010 }
0x1951   :  { %v3780_v41 = vmul.f32 %v5011_v18, %v6058_v60 }
0x19b1   :  { %v3783_v38 = vpop.permute.xlu1 %3782 }
0x19b2   :  { %v3785_v8 = vmul.f32 %v5011_v18, %v3783_v38 }
0x19b4   :  { %3787 = vrot.lane.b32.xlu0 %v3785_v8, %s5040_s28 }
0x1a26   :  { %v3788_v20 = vpop.permute.xlu0 %3787 }
0x1a27   :  { %v3790_v56 = vadd.f32 %v3788_v20, %v3780_v41 }
0x1a29   :  { %5012 = vtanh.f32 %v3790_v56 }
0x1a36   :  { %v5013_v6 = vpop.eup %5012 }
0x1a37   :  { %3793 = vrot.lane.b32.xlu1 %v5013_v6, %s5039_s25 }
0x1a3b   :  { %3805 = vrot.lane.b32.xlu1 %v5983_v0, %s5041_s3 }
0x1a3f   :  { %3821 = vrot.lane.b32.xlu1 %v3790_v56, %s5041_s3 }
0x1aa9   :  { %v3794_v35 = vpop.permute.xlu1 %3793 }
0x1aaa   :  { %v3796_v11 = vmul.f32 %v5011_v18, %v3794_v35 }
0x1aac   :  { %3798 = vrot.lane.b32.xlu0 %v3796_v11, %s5040_s28 }
0x1aad   :  { %v3806_v19 = vpop.permute.xlu1 %3805 }
0x1aae   :  { %3808 = vst.msk [vmem:[%s6162_s10] sm:$0xff] %vm51_vm0, %v3806_v19 }
0x1ab0   :  { %3813 = vrot.lane.b32.xlu0 %v6054_v25, %s5041_s3 }
0x1ab1   :  { %v3822_v59 = vpop.permute.xlu1 %3821 }
0x1ab2   :  { %4095 = vst.msk [vmem:[%s6162_s10 + $0x10] sm:$0xff] %vm51_vm0, %v3822_v59 }
0x1b1e   :  { %v3799_v0 = vpop.permute.xlu0 %3798 }
0x1b1f   :  { %3801 = vst.msk [vmem:[#allocation3 + $0x38] sm:$0xff] %vm51_vm0, %v3799_v0  ;;  %4094 = vst.msk [vmem:[%s6158_s9 + $0x10] sm:$0xff] %vm51_vm0, %v3799_v0 }
0x1b22   :  { %v3814_v50 = vpop.permute.xlu0 %3813 }
0x1b23   :  { %4093 = vst.msk [vmem:[%s6162_s10 + $0x8] sm:$0xff] %vm51_vm0, %v3814_v50 }
0x1b26   :  { %v3833_v42 = vld [vmem:[#allocation3 + $0x38] sm:$0xff] }
0x1b27   :  { %4807 = vmatmul.mubr.msk.f32.gmra.mxu0 %vm51_vm0, %v3833_v42 }
0x1be7   :  { %v4808_v13 = vpop.f32.mrf.mxu0 }
0x1be8   :  { %v3971_v44 = vadd.f32 %v4808_v13, %v4096_v2 }
0x1be9   :  { %v3965_v45 = vpop.f32.mrf.mxu0 }
0x1bea   :  { %3982 = vst.msk [vmem:[%s6161_s8 + $0x38] sm:$0xff] %vm3974_vm2, %v3971_v44  ;;  %v3966_v30 = vadd.f32 %v4096_v2, %v3965_v45 }
0x1bec   :  { %3981 = vst.msk [vmem:[%s6161_s8 + $0x30] sm:$0xff] %vm3974_vm2, %v3966_v30 }

</bundles_post_ra>
